<compile_context>
chip_gen: v7x
topology: tpu7x:2x2x1
jax: 0.10.0
libtpu: 0.0.40
codegen_flags: <defaults>
</compile_context>

<pallas_src>
import functools
import math

import jax
import jax.numpy as jnp
from jax import lax
from jax.experimental import pallas as pl
from jax.experimental.pallas import tpu as pltpu

# ----------------------------- model configuration -----------------------------
INPUT_SIZE = 8       # input_size
HIDDEN = 32          # hidden_size
NUM_LAYERS = 2       # num_layers per nn.LSTM
PRICE_OUT = 1
TREND_OUT = 1
NUM_HEADS = 4        # nn.MultiheadAttention(hidden_size, 4)
BATCH = 2
SEQ = 8

H1 = 2 * HIDDEN          # lstm1 hidden width (64)
H2 = HIDDEN              # lstm2 hidden width (32)
E = HIDDEN               # attention embed dim (32)
HD = E // NUM_HEADS      # head dim (8)
BP = 8                   # batch padded to one f32 sublane tile
HP = 128                 # padded lane width used by the fused prediction heads
OUT_LANES = 128          # lane-dense output width (price -> lane 0, trend -> lane 1)


def _offsets(sizes):
    offs, o = [], 0
    for s in sizes:
        offs.append(o)
        o += s
    return offs, o


# ---- wavefront LSTM configuration (4 stacked layers) ----------------------------
NL = 4
LAYER_H = (H1, H1, H2, H2)                   # hidden width per stacked layer
GATE_W = tuple(4 * h for h in LAYER_H)       # tightly packed gate widths (256,256,128,128)
GATE_OFF, GT = _offsets(GATE_W)              # (0,256,512,640), 768
STATE_OFF, HS = _offsets(LAYER_H)            # (0,64,128,160),  192

# lstm_pack row layout (width GT = 768):
XW_ROW = HS                    # [192,200): W_ih of layer 0 (transposed), cols [0,256)
B0_ROW = XW_ROW + INPUT_SIZE   # 200: layer-0 bias row (b_ih + b_hh), cols [0,256)
B123_ROW = B0_ROW + 1          # 201: biases of layers 1..3 in their gate blocks
S_ROW = B123_ROW + 1           # 202: per-lane tanh pre/post scale (0.5 sigmoid / 1.0 tanh)
C_ROW = S_ROW + 1              # 203: per-lane offset               (0.5 sigmoid / 0.0 tanh)
LSTM_PACK_ROWS = C_ROW + 1     # 204

# attn_pack row layout: Wq, Wk, Wv, Wo (transposed) then bq, bk, bv, bo.
_ATTN_SIZES = [E, E, E, E, 1, 1, 1, 1]
_ATTN_OFFS, _ATTN_ROWS = _offsets(_ATTN_SIZES)               # 132 logical rows
ATTN_PACK_SHAPE = (136, 128)                                 # padded for clean DMA

# head_pack row layout: fused W1 (E x HP), W2 (HP x HP), W3 (HP x HP), b1, b2, b3.
_HEAD_SIZES = [E, HP, HP, 1, 1, 1]
_HEAD_OFFS, _HEAD_ROWS = _offsets(_HEAD_SIZES)               # 291 logical rows
HEAD_PACK_SHAPE = (296, HP)                                  # padded for clean DMA


# --------------------------------- kernel --------------------------------------
def stock_lstm_kernel(x_ref, lstm_ref, attn_hbm, head_hbm, out_ref,
                      xp_buf, attn_ref, head_ref, dma_sem, *, batch, seq):
    Bp, S = batch, seq
    SB = S * Bp
    f32 = jnp.float32

    # ---- start the attention / head weight DMAs so they hide behind the LSTM ----
    attn_cp = pltpu.make_async_copy(attn_hbm, attn_ref, dma_sem.at[0])
    head_cp = pltpu.make_async_copy(head_hbm, head_ref, dma_sem.at[1])
    attn_cp.start()
    head_cp.start()

    # ---- hoisted layer-0 input projection over the whole sequence (bias folded) --
    xw = lstm_ref[XW_ROW:XW_ROW + INPUT_SIZE, 0:GATE_W[0]]            # (8, 256)
    b0 = lstm_ref[B0_ROW:B0_ROW + 1, 0:GATE_W[0]]                     # (1, 256)
    xp_buf[...] = jnp.dot(x_ref[...], xw, preferred_element_type=f32) + b0

    # small per-layer constant rows (activation scale/offset, layer>0 biases)
    s_rows, c_rows, b_rows = [], [], []
    for l in range(NL):
        lo, gw = GATE_OFF[l], GATE_W[l]
        s_rows.append(lstm_ref[S_ROW:S_ROW + 1, lo:lo + gw])
        c_rows.append(lstm_ref[C_ROW:C_ROW + 1, lo:lo + gw])
        b_rows.append(None if l == 0 else lstm_ref[B123_ROW:B123_ROW + 1, lo:lo + gw])

    # ---- wavefront over the 4 stacked layers: layer l runs step t at wavefront
    #      w = t + l, so all concurrent cell matmuls fuse into ONE block-bidiagonal
    #      (Bp, HS) x (HS, GT) matmul; the serial MXU chain is S + 3 steps. ----
    #      (Dropout between layers is identity in eval mode.)
    h = [jnp.zeros((Bp, LAYER_H[l]), f32) for l in range(NL)]
    c = [jnp.zeros((Bp, LAYER_H[l]), f32) for l in range(NL)]
    y_rows = [None] * S                                  # last layer's h per time step

    for w in range(S + NL - 1):                          # 11 wavefronts for S=8
        Hcat = jnp.concatenate(h, axis=1)                # (Bp, HS), current states
        # W_rec streamed from VMEM each step (not held live across the unrolled loop)
        gates = jnp.dot(Hcat, lstm_ref[0:HS, :], preferred_element_type=f32)  # (Bp, GT)
        for l in range(NL):
            t = w - l
            if t < 0 or t >= S:
                continue                                 # layer inactive (static skip)
            hd = LAYER_H[l]
            g = gates[:, GATE_OFF[l]:GATE_OFF[l] + GATE_W[l]]
            if l == 0:
                g = g + xp_buf[t * Bp:(t + 1) * Bp, :]   # hoisted x proj (+ bias)
            else:
                g = g + b_rows[l]
            # all 4 gates in one EUP pass:
            #   i/f/o lanes: sigmoid(x) = 0.5*tanh(0.5*x) + 0.5 ; g lanes: tanh(x)
            a = jnp.tanh(g * s_rows[l]) * s_rows[l] + c_rows[l]
            i_g = a[:, 0 * hd:1 * hd]
            f_g = a[:, 1 * hd:2 * hd]
            g_g = a[:, 2 * hd:3 * hd]
            o_g = a[:, 3 * hd:4 * hd]
            c[l] = f_g * c[l] + i_g * g_g
            h[l] = o_g * jnp.tanh(c[l])
            if l == NL - 1:
                y_rows[t] = h[l]                         # kept in vregs (no scratch)

    Y = jnp.concatenate(y_rows, axis=0)                  # (SB, E), row = t*Bp + b

    # ---- attention / head weights must have landed by now ----
    attn_cp.wait()
    head_cp.wait()

    def aw(i):
        o = _ATTN_OFFS[i]
        return attn_ref[o:o + _ATTN_SIZES[i], 0:E]

    def hw(i):
        o = _HEAD_OFFS[i]
        return head_ref[o:o + _HEAD_SIZES[i], :]

    # -------- multi-head self-attention (last query position only) --------------
    Wq, Wk, Wv, Wo = aw(0), aw(1), aw(2), aw(3)
    bq, bk, bv, bo = aw(4), aw(5), aw(6), aw(7)

    q_in = Y[(S - 1) * Bp:S * Bp, :]                                    # (Bp, E)
    Q = jnp.dot(q_in, Wq, preferred_element_type=f32) + bq              # (Bp, E)
    K = jnp.dot(Y, Wk, preferred_element_type=f32) + bk                 # (SB, E)
    V = jnp.dot(Y, Wv, preferred_element_type=f32) + bv                 # (SB, E)

    # head-membership masks and batch-selection matrices (tiny, built once)
    e_i = lax.broadcasted_iota(jnp.int32, (E, NUM_HEADS), 0)
    h_i = lax.broadcasted_iota(jnp.int32, (E, NUM_HEADS), 1)
    M = ((e_i >= h_i * HD) & (e_i < (h_i + 1) * HD)).astype(f32)        # (E, NH)
    h_j = lax.broadcasted_iota(jnp.int32, (NUM_HEADS, E), 0)
    e_j = lax.broadcasted_iota(jnp.int32, (NUM_HEADS, E), 1)
    Mt = ((e_j >= h_j * HD) & (e_j < (h_j + 1) * HD)).astype(f32)       # (NH, E)
    # Bp is a power of 2, so row -> batch index is a bitwise and.
    r1 = lax.broadcasted_iota(jnp.int32, (SB, Bp), 0)
    b1 = lax.broadcasted_iota(jnp.int32, (SB, Bp), 1)
    sel_t = (jnp.bitwise_and(r1, Bp - 1) == b1).astype(f32)             # (SB, Bp)
    b2 = lax.broadcasted_iota(jnp.int32, (Bp, SB), 0)
    r2 = lax.broadcasted_iota(jnp.int32, (Bp, SB), 1)
    sel = (jnp.bitwise_and(r2, Bp - 1) == b2).astype(f32)               # (Bp, SB)

    # per-row query replica (row r belongs to batch r % Bp in the seq-major layout)
    q_rows = jnp.dot(sel_t, Q, preferred_element_type=f32)              # (SB, E)
    scores = jnp.dot(K * q_rows, M,
                     preferred_element_type=f32) * (1.0 / math.sqrt(HD))  # (SB, NH)
    # NOTE: a single global max is subtracted; softmax is shift-invariant per row and
    # the global max upper-bounds every row, so this is exact -- do not "fix" it.
    m = jnp.max(jnp.max(scores, axis=1, keepdims=True), axis=0, keepdims=True)
    p = jnp.exp(scores - m)                                             # (SB, NH)
    p_lanes = jnp.dot(p, Mt, preferred_element_type=f32)                # (SB, E)
    num = jnp.dot(sel, p_lanes * V, preferred_element_type=f32)         # (Bp, E)
    den = jnp.dot(jnp.dot(sel, p, preferred_element_type=f32), Mt,
                  preferred_element_type=f32)                           # (Bp, E)
    attn = num / den
    last_out = jnp.dot(attn, Wo, preferred_element_type=f32) + bo       # (Bp, E)

    # -------- fused price/trend heads (Dropout / BatchNorm inactive in eval) ----
    W1h, W2h, W3h = hw(0), hw(1), hw(2)
    b1h, b2h, b3h = hw(3), hw(4), hw(5)
    h1 = jax.nn.relu(jnp.dot(last_out, W1h, preferred_element_type=f32) + b1h)
    h2 = jax.nn.relu(jnp.dot(h1, W2h, preferred_element_type=f32) + b2h)
    z = jnp.dot(h2, W3h, preferred_element_type=f32) + b3h              # (Bp, HP)
    lane = lax.broadcasted_iota(jnp.int32, (Bp, OUT_LANES), 1)
    # lanes [0, PRICE_OUT): price head (ReLU); next TREND_OUT lanes: Sigmoid.
    out_ref[...] = jnp.where(lane < PRICE_OUT, jax.nn.relu(z), jax.nn.sigmoid(z))


# ----------------------------- parameters / packing -----------------------------
def init_params(key):
    """Synthetic parameters with the exact shapes / layouts of the PyTorch module
    (PyTorch (out, in) weight layout, LSTM gate order [i, f, g, o])."""
    keys = iter(jax.random.split(key, 64))

    def u(shape, scale):
        return jax.random.uniform(next(keys), shape, jnp.float32, -scale, scale)

    p = {"lstm1": [], "lstm2": []}
    s1 = 1.0 / math.sqrt(H1)
    for layer in range(NUM_LAYERS):
        in_dim = INPUT_SIZE if layer == 0 else H1
        p["lstm1"].append(dict(w_ih=u((4 * H1, in_dim), s1), w_hh=u((4 * H1, H1), s1),
                               b_ih=u((4 * H1,), s1), b_hh=u((4 * H1,), s1)))
    s2 = 1.0 / math.sqrt(H2)
    for layer in range(NUM_LAYERS):
        in_dim = H1 if layer == 0 else H2
        p["lstm2"].append(dict(w_ih=u((4 * H2, in_dim), s2), w_hh=u((4 * H2, H2), s2),
                               b_ih=u((4 * H2,), s2), b_hh=u((4 * H2,), s2)))

    sa = 1.0 / math.sqrt(E)
    p["attn"] = dict(in_proj_w=u((3 * E, E), sa), in_proj_b=u((3 * E,), sa),
                     out_w=u((E, E), sa), out_b=u((E,), sa))

    def head(out_size):
        layers = []
        for din, dout in [(E, E), (E, E // 2), (E // 2, out_size)]:
            sw = 1.0 / math.sqrt(din)
            layers.append(dict(w=u((dout, din), sw), b=u((dout,), sw)))
        return layers

    p["price"] = head(PRICE_OUT)
    p["trend"] = head(TREND_OUT)
    return p


def pack_params(p):
    """Pack all weights into 3 arrays (lstm / attention / heads)."""
    f32 = jnp.float32
    layers = [p["lstm1"][0], p["lstm1"][1], p["lstm2"][0], p["lstm2"][1]]

    # ---- LSTM pack: block-bidiagonal wavefront weights + x projection + consts ----
    lstm_pack = jnp.zeros((LSTM_PACK_ROWS, GT), f32)
    for l in range(NL):
        hd = LAYER_H[l]
        go = GATE_OFF[l]
        so = STATE_OFF[l]
        # recurrent block: h_l -> gates_l
        lstm_pack = lstm_pack.at[so:so + hd, go:go + 4 * hd].set(layers[l]["w_hh"].T)
        if l > 0:
            # inter-layer block: h_{l-1} -> gates_l (input projection of layer l)
            sp = STATE_OFF[l - 1]
            hp = LAYER_H[l - 1]
            lstm_pack = lstm_pack.at[sp:sp + hp, go:go + 4 * hd].set(layers[l]["w_ih"].T)
            lstm_pack = lstm_pack.at[B123_ROW, go:go + 4 * hd].set(
                layers[l]["b_ih"] + layers[l]["b_hh"])
    # layer-0 x projection (hoisted out of the recurrence) and its bias
    lstm_pack = lstm_pack.at[XW_ROW:XW_ROW + INPUT_SIZE, 0:GATE_W[0]].set(
        layers[0]["w_ih"].T)
    lstm_pack = lstm_pack.at[B0_ROW, 0:GATE_W[0]].set(
        layers[0]["b_ih"] + layers[0]["b_hh"])
    # per-lane activation constants: act = s*tanh(s*x) + c
    #   sigmoid lanes (i,f,o): s=0.5, c=0.5 ; tanh lanes (g): s=1.0, c=0.0
    s_row = jnp.zeros((GT,), f32)
    c_row = jnp.zeros((GT,), f32)
    for l in range(NL):
        hd = LAYER_H[l]
        go = GATE_OFF[l]
        s_l = jnp.concatenate([jnp.full((hd,), 0.5, f32), jnp.full((hd,), 0.5, f32),
                               jnp.full((hd,), 1.0, f32), jnp.full((hd,), 0.5, f32)])
        c_l = jnp.concatenate([jnp.full((hd,), 0.5, f32), jnp.full((hd,), 0.5, f32),
                               jnp.full((hd,), 0.0, f32), jnp.full((hd,), 0.5, f32)])
        s_row = s_row.at[go:go + 4 * hd].set(s_l)
        c_row = c_row.at[go:go + 4 * hd].set(c_l)
    lstm_pack = lstm_pack.at[S_ROW].set(s_row)
    lstm_pack = lstm_pack.at[C_ROW].set(c_row)

    # ---- attention pack: Wq|Wk|Wv|Wo (transposed to (in,out)) + bias rows ----
    a = p["attn"]
    attn_pack = jnp.zeros(ATTN_PACK_SHAPE, f32)
    attn_pack = attn_pack.at[_ATTN_OFFS[0]:_ATTN_OFFS[0] + E, 0:E].set(a["in_proj_w"][:E].T)
    attn_pack = attn_pack.at[_ATTN_OFFS[1]:_ATTN_OFFS[1] + E, 0:E].set(
        a["in_proj_w"][E:2 * E].T)
    attn_pack = attn_pack.at[_ATTN_OFFS[2]:_ATTN_OFFS[2] + E, 0:E].set(
        a["in_proj_w"][2 * E:].T)
    attn_pack = attn_pack.at[_ATTN_OFFS[3]:_ATTN_OFFS[3] + E, 0:E].set(a["out_w"].T)
    attn_pack = attn_pack.at[_ATTN_OFFS[4], 0:E].set(a["in_proj_b"][:E])
    attn_pack = attn_pack.at[_ATTN_OFFS[5], 0:E].set(a["in_proj_b"][E:2 * E])
    attn_pack = attn_pack.at[_ATTN_OFFS[6], 0:E].set(a["in_proj_b"][2 * E:])
    attn_pack = attn_pack.at[_ATTN_OFFS[7], 0:E].set(a["out_b"])

    # ---- fused price/trend heads (block-diagonal, lane-padded to HP=128) ----
    E2 = E // 2
    head_pack = jnp.zeros(HEAD_PACK_SHAPE, f32)
    w1o, w2o, w3o = _HEAD_OFFS[0], _HEAD_OFFS[1], _HEAD_OFFS[2]
    b1o, b2o, b3o = _HEAD_OFFS[3], _HEAD_OFFS[4], _HEAD_OFFS[5]
    head_pack = head_pack.at[w1o:w1o + E, 0:E].set(p["price"][0]["w"].T)
    head_pack = head_pack.at[w1o:w1o + E, E:2 * E].set(p["trend"][0]["w"].T)
    head_pack = head_pack.at[w2o:w2o + E, 0:E2].set(p["price"][1]["w"].T)
    head_pack = head_pack.at[w2o + E:w2o + 2 * E, E2:2 * E2].set(p["trend"][1]["w"].T)
    head_pack = head_pack.at[w3o:w3o + E2, 0:PRICE_OUT].set(p["price"][2]["w"].T)
    head_pack = head_pack.at[w3o + E2:w3o + 2 * E2,
                             PRICE_OUT:PRICE_OUT + TREND_OUT].set(p["trend"][2]["w"].T)
    head_pack = head_pack.at[b1o, 0:E].set(p["price"][0]["b"])
    head_pack = head_pack.at[b1o, E:2 * E].set(p["trend"][0]["b"])
    head_pack = head_pack.at[b2o, 0:E2].set(p["price"][1]["b"])
    head_pack = head_pack.at[b2o, E2:2 * E2].set(p["trend"][1]["b"])
    head_pack = head_pack.at[b3o, 0:PRICE_OUT].set(p["price"][2]["b"])
    head_pack = head_pack.at[b3o, PRICE_OUT:PRICE_OUT + TREND_OUT].set(p["trend"][2]["b"])

    return lstm_pack, attn_pack, head_pack


# ----------------------------------- wrapper ------------------------------------
def stock_lstm_forward(x, packed):
    """x: [B, S, F] float32 -> (price [B, PRICE_OUT], trend [B, TREND_OUT])."""
    lstm_pack, attn_pack, head_pack = packed
    B, S, F = x.shape
    assert B <= BP
    # pad the batch to one f32 sublane tile: unmasked per-step tiles in the kernel
    x_pad = jnp.zeros((BP, S, F), x.dtype).at[:B].set(x)
    # seq-major flattening used throughout the kernel: row index = t * BP + b
    x_flat = jnp.transpose(x_pad, (1, 0, 2)).reshape(S * BP, F)

    vmem = pl.BlockSpec(memory_space=pltpu.MemorySpace.VMEM)
    anyspace = pl.BlockSpec(memory_space=pl.ANY)   # DMA'd manually inside the kernel
    kernel = functools.partial(stock_lstm_kernel, batch=BP, seq=S)
    out = pl.pallas_call(
        kernel,
        out_shape=jax.ShapeDtypeStruct((BP, OUT_LANES), jnp.float32),
        in_specs=[vmem, vmem, anyspace, anyspace],
        out_specs=vmem,
        scratch_shapes=[
            pltpu.VMEM((S * BP, GATE_W[0]), jnp.float32),  # hoisted layer-0 x projection
            pltpu.VMEM(ATTN_PACK_SHAPE, jnp.float32),      # attention weights (DMA dst)
            pltpu.VMEM(HEAD_PACK_SHAPE, jnp.float32),      # head weights (DMA dst)
            pltpu.SemaphoreType.DMA((2,)),
        ],
    )(x_flat, lstm_pack, attn_pack, head_pack)
    # lane-dense output: price in lanes [0, PRICE_OUT), trend right after.
    return out[:B, 0:PRICE_OUT], out[:B, PRICE_OUT:PRICE_OUT + TREND_OUT]


# ----------------------------- pure-JAX reference -------------------------------
def reference_forward(x, p):
    """Direct re-implementation of StockLSTM.forward (eval mode) in plain JAX."""
    def run_lstm(x_seq, layers, h_dim):
        B_, S_, _ = x_seq.shape
        out = x_seq
        for lp in layers:
            h = jnp.zeros((B_, h_dim), jnp.float32)
            c = jnp.zeros((B_, h_dim), jnp.float32)
            ys = []
            for t in range(S_):
                g = (out[:, t, :] @ lp["w_ih"].T + h @ lp["w_hh"].T
                     + lp["b_ih"] + lp["b_hh"])
                i = jax.nn.sigmoid(g[:, 0:h_dim])
                f = jax.nn.sigmoid(g[:, h_dim:2 * h_dim])
                gg = jnp.tanh(g[:, 2 * h_dim:3 * h_dim])
                o = jax.nn.sigmoid(g[:, 3 * h_dim:4 * h_dim])
                c = f * c + i * gg
                h = o * jnp.tanh(c)
                ys.append(h)
            out = jnp.stack(ys, axis=1)
        return out

    y1 = run_lstm(x, p["lstm1"], H1)
    y2 = run_lstm(y1, p["lstm2"], H2)

    a = p["attn"]
    Wq, Wk, Wv = a["in_proj_w"][:E], a["in_proj_w"][E:2 * E], a["in_proj_w"][2 * E:]
    bq, bk, bv = a["in_proj_b"][:E], a["in_proj_b"][E:2 * E], a["in_proj_b"][2 * E:]
    B_, S_, _ = y2.shape
    q = y2[:, -1, :] @ Wq.T + bq                       # last query position
    K = y2 @ Wk.T + bk
    V = y2 @ Wv.T + bv
    qh = q.reshape(B_, NUM_HEADS, HD)
    kh = K.reshape(B_, S_, NUM_HEADS, HD)
    vh = V.reshape(B_, S_, NUM_HEADS, HD)
    sc = jnp.einsum("bhd,bshd->bhs", qh, kh) / math.sqrt(HD)
    pr = jax.nn.softmax(sc, axis=-1)
    oh = jnp.einsum("bhs,bshd->bhd", pr, vh).reshape(B_, E)
    last_out = oh @ a["out_w"].T + a["out_b"]

    def run_head(feat, layers, final_act):
        hcur = feat
        for li, lp in enumerate(layers):
            hcur = hcur @ lp["w"].T + lp["b"]
            hcur = jax.nn.relu(hcur) if li < 2 else final_act(hcur)
        return hcur

    price = run_head(last_out, p["price"], jax.nn.relu)
    trend = run_head(last_out, p["trend"], jax.nn.sigmoid)
    return price, trend


# ------------------------------------- main --------------------------------------
if __name__ == "__main__":
    key = jax.random.PRNGKey(0)
    kx, kp = jax.random.split(key)
    x = jax.random.normal(kx, (BATCH, SEQ, INPUT_SIZE), dtype=jnp.float32)
    raw = init_params(kp)
    packed = pack_params(raw)

    price, trend = stock_lstm_forward(x, packed)
    jax.block_until_ready((price, trend))

    assert price.shape == (BATCH, PRICE_OUT)
    assert trend.shape == (BATCH, TREND_OUT)
    assert bool(jnp.all(jnp.isfinite(price)))
    assert bool(jnp.all(jnp.isfinite(trend)))
    # trend head ends in Sigmoid -> values in (0, 1)
    assert bool(jnp.all((trend > 0.0) & (trend < 1.0)))

    # semantic check vs. a pure-JAX reference (tolerance covers MXU vs XLA matmul
    # precision differences only; the gate sigmoid is now the exact tanh form).
    p_ref, t_ref = jax.jit(reference_forward)(x, raw)
    jax.block_until_ready((p_ref, t_ref))
    assert bool(jnp.allclose(price, p_ref, rtol=2e-2, atol=2e-2))
    assert bool(jnp.allclose(trend, t_ref, rtol=2e-2, atol=2e-2))

    print("KERNEL_OK")
</pallas_src>

<mosaic_0001>
module attributes {stable_mosaic.version = 11 : i64} {
  func.func @stock_lstm_kernel(%arg0: memref<64x8xf32, #tpu.memory_space<vmem>>, %arg1: memref<204x768xf32, #tpu.memory_space<vmem>>, %arg2: memref<136x128xf32, #tpu.memory_space<any>>, %arg3: memref<296x128xf32, #tpu.memory_space<any>>, %arg4: memref<8x128xf32, #tpu.memory_space<vmem>>, %arg5: memref<64x256xf32, #tpu.memory_space<vmem>>, %arg6: memref<136x128xf32, #tpu.memory_space<vmem>>, %arg7: memref<296x128xf32, #tpu.memory_space<vmem>>, %arg8: memref<2x!tpu.dma_semaphore, #tpu.memory_space<semaphore_mem>>) attributes {dimension_semantics = [], scalar_prefetch = 0 : i64, scratch_operands = 4 : i64, tpu.core_type = #tpu.core_type<tc>} {
    %c0_i32 = arith.constant 0 : i32
    %0 = tpu.memref_slice %arg8[%c0_i32] : memref<2x!tpu.dma_semaphore, #tpu.memory_space<semaphore_mem>> -> memref<1x!tpu.dma_semaphore, #tpu.memory_space<semaphore_mem>>
    %1 = tpu.memref_squeeze %0 : memref<1x!tpu.dma_semaphore, #tpu.memory_space<semaphore_mem>> -> memref<!tpu.dma_semaphore, #tpu.memory_space<semaphore_mem>>
    tpu.enqueue_dma source(%arg2 : memref<136x128xf32, #tpu.memory_space<any>>) target(%arg6 : memref<136x128xf32, #tpu.memory_space<vmem>>) target_semaphore(%1 : memref<!tpu.dma_semaphore, #tpu.memory_space<semaphore_mem>>)
    %c1_i32 = arith.constant 1 : i32
    %2 = tpu.memref_slice %arg8[%c1_i32] : memref<2x!tpu.dma_semaphore, #tpu.memory_space<semaphore_mem>> -> memref<1x!tpu.dma_semaphore, #tpu.memory_space<semaphore_mem>>
    %3 = tpu.memref_squeeze %2 : memref<1x!tpu.dma_semaphore, #tpu.memory_space<semaphore_mem>> -> memref<!tpu.dma_semaphore, #tpu.memory_space<semaphore_mem>>
    tpu.enqueue_dma source(%arg3 : memref<296x128xf32, #tpu.memory_space<any>>) target(%arg7 : memref<296x128xf32, #tpu.memory_space<vmem>>) target_semaphore(%3 : memref<!tpu.dma_semaphore, #tpu.memory_space<semaphore_mem>>)
    %c192 = arith.constant 192 : index
    %c0 = arith.constant 0 : index
    %4 = vector.load %arg1[%c192, %c0] : memref<204x768xf32, #tpu.memory_space<vmem>>, vector<8x256xf32>
    %c200 = arith.constant 200 : index
    %c0_0 = arith.constant 0 : index
    %5 = vector.load %arg1[%c200, %c0_0] : memref<204x768xf32, #tpu.memory_space<vmem>>, vector<1x256xf32>
    %c0_1 = arith.constant 0 : index
    %c0_2 = arith.constant 0 : index
    %6 = vector.load %arg0[%c0_1, %c0_2] : memref<64x8xf32, #tpu.memory_space<vmem>>, vector<64x8xf32>
    %cst = arith.constant dense<0.000000e+00> : vector<64x256xf32>
    %7 = tpu.matmul %6, %4, %cst {dimension_numbers = #tpu.dot_dimension_numbers<[1], [0], [0], [1], [0, 0, 1, 1], [], []>} : vector<64x8xf32>, vector<8x256xf32>, vector<64x256xf32> -> vector<64x256xf32>
    %8 = vector.broadcast %5 : vector<1x256xf32> to vector<64x256xf32>
    %9 = arith.addf %7, %8 : vector<64x256xf32>
    %c0_3 = arith.constant 0 : index
    %c0_4 = arith.constant 0 : index
    %10 = vector.load %arg5[%c0_3, %c0_4] : memref<64x256xf32, #tpu.memory_space<vmem>>, vector<64x256xf32>
    tpu.vector_store %arg5[%c0_3, %c0_4], %9 {strides = array<i32>} : memref<64x256xf32, #tpu.memory_space<vmem>>, vector<64x256xf32>,
    %c202 = arith.constant 202 : index
    %c0_5 = arith.constant 0 : index
    %11 = vector.load %arg1[%c202, %c0_5] : memref<204x768xf32, #tpu.memory_space<vmem>>, vector<1x256xf32>
    %c203 = arith.constant 203 : index
    %c0_6 = arith.constant 0 : index
    %12 = vector.load %arg1[%c203, %c0_6] : memref<204x768xf32, #tpu.memory_space<vmem>>, vector<1x256xf32>
    %c202_7 = arith.constant 202 : index
    %c256 = arith.constant 256 : index
    %13 = vector.load %arg1[%c202_7, %c256] : memref<204x768xf32, #tpu.memory_space<vmem>>, vector<1x256xf32>
    %c203_8 = arith.constant 203 : index
    %c256_9 = arith.constant 256 : index
    %14 = vector.load %arg1[%c203_8, %c256_9] : memref<204x768xf32, #tpu.memory_space<vmem>>, vector<1x256xf32>
    %c201 = arith.constant 201 : index
    %c256_10 = arith.constant 256 : index
    %15 = vector.load %arg1[%c201, %c256_10] : memref<204x768xf32, #tpu.memory_space<vmem>>, vector<1x256xf32>
    %c202_11 = arith.constant 202 : index
    %c512 = arith.constant 512 : index
    %16 = vector.load %arg1[%c202_11, %c512] : memref<204x768xf32, #tpu.memory_space<vmem>>, vector<1x128xf32>
    %c203_12 = arith.constant 203 : index
    %c512_13 = arith.constant 512 : index
    %17 = vector.load %arg1[%c203_12, %c512_13] : memref<204x768xf32, #tpu.memory_space<vmem>>, vector<1x128xf32>
    %c201_14 = arith.constant 201 : index
    %c512_15 = arith.constant 512 : index
    %18 = vector.load %arg1[%c201_14, %c512_15] : memref<204x768xf32, #tpu.memory_space<vmem>>, vector<1x128xf32>
    %c202_16 = arith.constant 202 : index
    %c640 = arith.constant 640 : index
    %19 = vector.load %arg1[%c202_16, %c640] : memref<204x768xf32, #tpu.memory_space<vmem>>, vector<1x128xf32>
    %c203_17 = arith.constant 203 : index
    %c640_18 = arith.constant 640 : index
    %20 = vector.load %arg1[%c203_17, %c640_18] : memref<204x768xf32, #tpu.memory_space<vmem>>, vector<1x128xf32>
    %c201_19 = arith.constant 201 : index
    %c640_20 = arith.constant 640 : index
    %21 = vector.load %arg1[%c201_19, %c640_20] : memref<204x768xf32, #tpu.memory_space<vmem>>, vector<1x128xf32>
    %cst_21 = arith.constant 0.000000e+00 : f32
    %22 = vector.broadcast %cst_21 : f32 to vector<8x64xf32>
    %cst_22 = arith.constant 0.000000e+00 : f32
    %23 = vector.broadcast %cst_22 : f32 to vector<8x64xf32>
    %cst_23 = arith.constant 0.000000e+00 : f32
    %24 = vector.broadcast %cst_23 : f32 to vector<8x32xf32>
    %cst_24 = arith.constant 0.000000e+00 : f32
    %25 = vector.broadcast %cst_24 : f32 to vector<8x32xf32>
    %cst_25 = arith.constant 0.000000e+00 : f32
    %26 = vector.broadcast %cst_25 : f32 to vector<8x64xf32>
    %cst_26 = arith.constant 0.000000e+00 : f32
    %27 = vector.broadcast %cst_26 : f32 to vector<8x64xf32>
    %cst_27 = arith.constant 0.000000e+00 : f32
    %28 = vector.broadcast %cst_27 : f32 to vector<8x32xf32>
    %cst_28 = arith.constant 0.000000e+00 : f32
    %29 = vector.broadcast %cst_28 : f32 to vector<8x32xf32>
    %30 = tpu.concatenate %22, %23, %24, %25 in 1 : vector<8x64xf32>, vector<8x64xf32>, vector<8x32xf32>, vector<8x32xf32> -> vector<8x192xf32>
    %c0_29 = arith.constant 0 : index
    %c0_30 = arith.constant 0 : index
    %31 = vector.load %arg1[%c0_29, %c0_30] : memref<204x768xf32, #tpu.memory_space<vmem>>, vector<192x768xf32>
    %cst_31 = arith.constant dense<0.000000e+00> : vector<8x768xf32>
    %32 = tpu.matmul %30, %31, %cst_31 {dimension_numbers = #tpu.dot_dimension_numbers<[1], [0], [0], [1], [0, 0, 1, 1], [], []>} : vector<8x192xf32>, vector<192x768xf32>, vector<8x768xf32> -> vector<8x768xf32>
    %33 = vector.extract_strided_slice %32 {offsets = [0, 0], sizes = [8, 256], strides = [1, 1]} : vector<8x768xf32> to vector<8x256xf32>
    %c0_32 = arith.constant 0 : index
    %c0_33 = arith.constant 0 : index
    %34 = vector.load %arg5[%c0_32, %c0_33] : memref<64x256xf32, #tpu.memory_space<vmem>>, vector<8x256xf32>
    %35 = arith.addf %33, %34 : vector<8x256xf32>
    %36 = vector.broadcast %11 : vector<1x256xf32> to vector<8x256xf32>
    %37 = arith.mulf %35, %36 : vector<8x256xf32>
    %38 = math.tanh %37 : vector<8x256xf32>
    %39 = vector.broadcast %11 : vector<1x256xf32> to vector<8x256xf32>
    %40 = arith.mulf %38, %39 : vector<8x256xf32>
    %41 = vector.broadcast %12 : vector<1x256xf32> to vector<8x256xf32>
    %42 = arith.addf %40, %41 : vector<8x256xf32>
    %43 = vector.extract_strided_slice %42 {offsets = [0, 0], sizes = [8, 64], strides = [1, 1]} : vector<8x256xf32> to vector<8x64xf32>
    %44 = vector.extract_strided_slice %42 {offsets = [0, 64], sizes = [8, 64], strides = [1, 1]} : vector<8x256xf32> to vector<8x64xf32>
    %45 = vector.extract_strided_slice %42 {offsets = [0, 128], sizes = [8, 64], strides = [1, 1]} : vector<8x256xf32> to vector<8x64xf32>
    %46 = vector.extract_strided_slice %42 {offsets = [0, 192], sizes = [8, 64], strides = [1, 1]} : vector<8x256xf32> to vector<8x64xf32>
    %47 = arith.mulf %44, %26 : vector<8x64xf32>
    %48 = arith.mulf %43, %45 : vector<8x64xf32>
    %49 = arith.addf %47, %48 : vector<8x64xf32>
    %50 = math.tanh %49 : vector<8x64xf32>
    %51 = arith.mulf %46, %50 : vector<8x64xf32>
    %52 = tpu.concatenate %51, %23, %24, %25 in 1 : vector<8x64xf32>, vector<8x64xf32>, vector<8x32xf32>, vector<8x32xf32> -> vector<8x192xf32>
    %c0_34 = arith.constant 0 : index
    %c0_35 = arith.constant 0 : index
    %53 = vector.load %arg1[%c0_34, %c0_35] : memref<204x768xf32, #tpu.memory_space<vmem>>, vector<192x768xf32>
    %cst_36 = arith.constant dense<0.000000e+00> : vector<8x768xf32>
    %54 = tpu.matmul %52, %53, %cst_36 {dimension_numbers = #tpu.dot_dimension_numbers<[1], [0], [0], [1], [0, 0, 1, 1], [], []>} : vector<8x192xf32>, vector<192x768xf32>, vector<8x768xf32> -> vector<8x768xf32>
    %55 = vector.extract_strided_slice %54 {offsets = [0, 0], sizes = [8, 256], strides = [1, 1]} : vector<8x768xf32> to vector<8x256xf32>
    %c8 = arith.constant 8 : index
    %c0_37 = arith.constant 0 : index
    %56 = vector.load %arg5[%c8, %c0_37] : memref<64x256xf32, #tpu.memory_space<vmem>>, vector<8x256xf32>
    %57 = arith.addf %55, %56 : vector<8x256xf32>
    %58 = vector.broadcast %11 : vector<1x256xf32> to vector<8x256xf32>
    %59 = arith.mulf %57, %58 : vector<8x256xf32>
    %60 = math.tanh %59 : vector<8x256xf32>
    %61 = vector.broadcast %11 : vector<1x256xf32> to vector<8x256xf32>
    %62 = arith.mulf %60, %61 : vector<8x256xf32>
    %63 = vector.broadcast %12 : vector<1x256xf32> to vector<8x256xf32>
    %64 = arith.addf %62, %63 : vector<8x256xf32>
    %65 = vector.extract_strided_slice %64 {offsets = [0, 0], sizes = [8, 64], strides = [1, 1]} : vector<8x256xf32> to vector<8x64xf32>
    %66 = vector.extract_strided_slice %64 {offsets = [0, 64], sizes = [8, 64], strides = [1, 1]} : vector<8x256xf32> to vector<8x64xf32>
    %67 = vector.extract_strided_slice %64 {offsets = [0, 128], sizes = [8, 64], strides = [1, 1]} : vector<8x256xf32> to vector<8x64xf32>
    %68 = vector.extract_strided_slice %64 {offsets = [0, 192], sizes = [8, 64], strides = [1, 1]} : vector<8x256xf32> to vector<8x64xf32>
    %69 = arith.mulf %66, %49 : vector<8x64xf32>
    %70 = arith.mulf %65, %67 : vector<8x64xf32>
    %71 = arith.addf %69, %70 : vector<8x64xf32>
    %72 = math.tanh %71 : vector<8x64xf32>
    %73 = arith.mulf %68, %72 : vector<8x64xf32>
    %74 = vector.extract_strided_slice %54 {offsets = [0, 256], sizes = [8, 256], strides = [1, 1]} : vector<8x768xf32> to vector<8x256xf32>
    %75 = vector.broadcast %15 : vector<1x256xf32> to vector<8x256xf32>
    %76 = arith.addf %74, %75 : vector<8x256xf32>
    %77 = vector.broadcast %13 : vector<1x256xf32> to vector<8x256xf32>
    %78 = arith.mulf %76, %77 : vector<8x256xf32>
    %79 = math.tanh %78 : vector<8x256xf32>
    %80 = vector.broadcast %13 : vector<1x256xf32> to vector<8x256xf32>
    %81 = arith.mulf %79, %80 : vector<8x256xf32>
    %82 = vector.broadcast %14 : vector<1x256xf32> to vector<8x256xf32>
    %83 = arith.addf %81, %82 : vector<8x256xf32>
    %84 = vector.extract_strided_slice %83 {offsets = [0, 0], sizes = [8, 64], strides = [1, 1]} : vector<8x256xf32> to vector<8x64xf32>
    %85 = vector.extract_strided_slice %83 {offsets = [0, 64], sizes = [8, 64], strides = [1, 1]} : vector<8x256xf32> to vector<8x64xf32>
    %86 = vector.extract_strided_slice %83 {offsets = [0, 128], sizes = [8, 64], strides = [1, 1]} : vector<8x256xf32> to vector<8x64xf32>
    %87 = vector.extract_strided_slice %83 {offsets = [0, 192], sizes = [8, 64], strides = [1, 1]} : vector<8x256xf32> to vector<8x64xf32>
    %88 = arith.mulf %85, %27 : vector<8x64xf32>
    %89 = arith.mulf %84, %86 : vector<8x64xf32>
    %90 = arith.addf %88, %89 : vector<8x64xf32>
    %91 = math.tanh %90 : vector<8x64xf32>
    %92 = arith.mulf %87, %91 : vector<8x64xf32>
    %93 = tpu.concatenate %73, %92, %24, %25 in 1 : vector<8x64xf32>, vector<8x64xf32>, vector<8x32xf32>, vector<8x32xf32> -> vector<8x192xf32>
    %c0_38 = arith.constant 0 : index
    %c0_39 = arith.constant 0 : index
    %94 = vector.load %arg1[%c0_38, %c0_39] : memref<204x768xf32, #tpu.memory_space<vmem>>, vector<192x768xf32>
    %cst_40 = arith.constant dense<0.000000e+00> : vector<8x768xf32>
    %95 = tpu.matmul %93, %94, %cst_40 {dimension_numbers = #tpu.dot_dimension_numbers<[1], [0], [0], [1], [0, 0, 1, 1], [], []>} : vector<8x192xf32>, vector<192x768xf32>, vector<8x768xf32> -> vector<8x768xf32>
    %96 = vector.extract_strided_slice %95 {offsets = [0, 0], sizes = [8, 256], strides = [1, 1]} : vector<8x768xf32> to vector<8x256xf32>
    %c16 = arith.constant 16 : index
    %c0_41 = arith.constant 0 : index
    %97 = vector.load %arg5[%c16, %c0_41] : memref<64x256xf32, #tpu.memory_space<vmem>>, vector<8x256xf32>
    %98 = arith.addf %96, %97 : vector<8x256xf32>
    %99 = vector.broadcast %11 : vector<1x256xf32> to vector<8x256xf32>
    %100 = arith.mulf %98, %99 : vector<8x256xf32>
    %101 = math.tanh %100 : vector<8x256xf32>
    %102 = vector.broadcast %11 : vector<1x256xf32> to vector<8x256xf32>
    %103 = arith.mulf %101, %102 : vector<8x256xf32>
    %104 = vector.broadcast %12 : vector<1x256xf32> to vector<8x256xf32>
    %105 = arith.addf %103, %104 : vector<8x256xf32>
    %106 = vector.extract_strided_slice %105 {offsets = [0, 0], sizes = [8, 64], strides = [1, 1]} : vector<8x256xf32> to vector<8x64xf32>
    %107 = vector.extract_strided_slice %105 {offsets = [0, 64], sizes = [8, 64], strides = [1, 1]} : vector<8x256xf32> to vector<8x64xf32>
    %108 = vector.extract_strided_slice %105 {offsets = [0, 128], sizes = [8, 64], strides = [1, 1]} : vector<8x256xf32> to vector<8x64xf32>
    %109 = vector.extract_strided_slice %105 {offsets = [0, 192], sizes = [8, 64], strides = [1, 1]} : vector<8x256xf32> to vector<8x64xf32>
    %110 = arith.mulf %107, %71 : vector<8x64xf32>
    %111 = arith.mulf %106, %108 : vector<8x64xf32>
    %112 = arith.addf %110, %111 : vector<8x64xf32>
    %113 = math.tanh %112 : vector<8x64xf32>
    %114 = arith.mulf %109, %113 : vector<8x64xf32>
    %115 = vector.extract_strided_slice %95 {offsets = [0, 256], sizes = [8, 256], strides = [1, 1]} : vector<8x768xf32> to vector<8x256xf32>
    %116 = vector.broadcast %15 : vector<1x256xf32> to vector<8x256xf32>
    %117 = arith.addf %115, %116 : vector<8x256xf32>
    %118 = vector.broadcast %13 : vector<1x256xf32> to vector<8x256xf32>
    %119 = arith.mulf %117, %118 : vector<8x256xf32>
    %120 = math.tanh %119 : vector<8x256xf32>
    %121 = vector.broadcast %13 : vector<1x256xf32> to vector<8x256xf32>
    %122 = arith.mulf %120, %121 : vector<8x256xf32>
    %123 = vector.broadcast %14 : vector<1x256xf32> to vector<8x256xf32>
    %124 = arith.addf %122, %123 : vector<8x256xf32>
    %125 = vector.extract_strided_slice %124 {offsets = [0, 0], sizes = [8, 64], strides = [1, 1]} : vector<8x256xf32> to vector<8x64xf32>
    %126 = vector.extract_strided_slice %124 {offsets = [0, 64], sizes = [8, 64], strides = [1, 1]} : vector<8x256xf32> to vector<8x64xf32>
    %127 = vector.extract_strided_slice %124 {offsets = [0, 128], sizes = [8, 64], strides = [1, 1]} : vector<8x256xf32> to vector<8x64xf32>
    %128 = vector.extract_strided_slice %124 {offsets = [0, 192], sizes = [8, 64], strides = [1, 1]} : vector<8x256xf32> to vector<8x64xf32>
    %129 = arith.mulf %126, %90 : vector<8x64xf32>
    %130 = arith.mulf %125, %127 : vector<8x64xf32>
    %131 = arith.addf %129, %130 : vector<8x64xf32>
    %132 = math.tanh %131 : vector<8x64xf32>
    %133 = arith.mulf %128, %132 : vector<8x64xf32>
    %134 = vector.extract_strided_slice %95 {offsets = [0, 512], sizes = [8, 128], strides = [1, 1]} : vector<8x768xf32> to vector<8x128xf32>
    %135 = vector.broadcast %18 : vector<1x128xf32> to vector<8x128xf32>
    %136 = arith.addf %134, %135 : vector<8x128xf32>
    %137 = vector.broadcast %16 : vector<1x128xf32> to vector<8x128xf32>
    %138 = arith.mulf %136, %137 : vector<8x128xf32>
    %139 = math.tanh %138 : vector<8x128xf32>
    %140 = vector.broadcast %16 : vector<1x128xf32> to vector<8x128xf32>
    %141 = arith.mulf %139, %140 : vector<8x128xf32>
    %142 = vector.broadcast %17 : vector<1x128xf32> to vector<8x128xf32>
    %143 = arith.addf %141, %142 : vector<8x128xf32>
    %144 = vector.extract_strided_slice %143 {offsets = [0, 0], sizes = [8, 32], strides = [1, 1]} : vector<8x128xf32> to vector<8x32xf32>
    %145 = vector.extract_strided_slice %143 {offsets = [0, 32], sizes = [8, 32], strides = [1, 1]} : vector<8x128xf32> to vector<8x32xf32>
    %146 = vector.extract_strided_slice %143 {offsets = [0, 64], sizes = [8, 32], strides = [1, 1]} : vector<8x128xf32> to vector<8x32xf32>
    %147 = vector.extract_strided_slice %143 {offsets = [0, 96], sizes = [8, 32], strides = [1, 1]} : vector<8x128xf32> to vector<8x32xf32>
    %148 = arith.mulf %145, %28 : vector<8x32xf32>
    %149 = arith.mulf %144, %146 : vector<8x32xf32>
    %150 = arith.addf %148, %149 : vector<8x32xf32>
    %151 = math.tanh %150 : vector<8x32xf32>
    %152 = arith.mulf %147, %151 : vector<8x32xf32>
    %153 = tpu.concatenate %114, %133, %152, %25 in 1 : vector<8x64xf32>, vector<8x64xf32>, vector<8x32xf32>, vector<8x32xf32> -> vector<8x192xf32>
    %c0_42 = arith.constant 0 : index
    %c0_43 = arith.constant 0 : index
    %154 = vector.load %arg1[%c0_42, %c0_43] : memref<204x768xf32, #tpu.memory_space<vmem>>, vector<192x768xf32>
    %cst_44 = arith.constant dense<0.000000e+00> : vector<8x768xf32>
    %155 = tpu.matmul %153, %154, %cst_44 {dimension_numbers = #tpu.dot_dimension_numbers<[1], [0], [0], [1], [0, 0, 1, 1], [], []>} : vector<8x192xf32>, vector<192x768xf32>, vector<8x768xf32> -> vector<8x768xf32>
    %156 = vector.extract_strided_slice %155 {offsets = [0, 0], sizes = [8, 256], strides = [1, 1]} : vector<8x768xf32> to vector<8x256xf32>
    %c24 = arith.constant 24 : index
    %c0_45 = arith.constant 0 : index
    %157 = vector.load %arg5[%c24, %c0_45] : memref<64x256xf32, #tpu.memory_space<vmem>>, vector<8x256xf32>
    %158 = arith.addf %156, %157 : vector<8x256xf32>
    %159 = vector.broadcast %11 : vector<1x256xf32> to vector<8x256xf32>
    %160 = arith.mulf %158, %159 : vector<8x256xf32>
    %161 = math.tanh %160 : vector<8x256xf32>
    %162 = vector.broadcast %11 : vector<1x256xf32> to vector<8x256xf32>
    %163 = arith.mulf %161, %162 : vector<8x256xf32>
    %164 = vector.broadcast %12 : vector<1x256xf32> to vector<8x256xf32>
    %165 = arith.addf %163, %164 : vector<8x256xf32>
    %166 = vector.extract_strided_slice %165 {offsets = [0, 0], sizes = [8, 64], strides = [1, 1]} : vector<8x256xf32> to vector<8x64xf32>
    %167 = vector.extract_strided_slice %165 {offsets = [0, 64], sizes = [8, 64], strides = [1, 1]} : vector<8x256xf32> to vector<8x64xf32>
    %168 = vector.extract_strided_slice %165 {offsets = [0, 128], sizes = [8, 64], strides = [1, 1]} : vector<8x256xf32> to vector<8x64xf32>
    %169 = vector.extract_strided_slice %165 {offsets = [0, 192], sizes = [8, 64], strides = [1, 1]} : vector<8x256xf32> to vector<8x64xf32>
    %170 = arith.mulf %167, %112 : vector<8x64xf32>
    %171 = arith.mulf %166, %168 : vector<8x64xf32>
    %172 = arith.addf %170, %171 : vector<8x64xf32>
    %173 = math.tanh %172 : vector<8x64xf32>
    %174 = arith.mulf %169, %173 : vector<8x64xf32>
    %175 = vector.extract_strided_slice %155 {offsets = [0, 256], sizes = [8, 256], strides = [1, 1]} : vector<8x768xf32> to vector<8x256xf32>
    %176 = vector.broadcast %15 : vector<1x256xf32> to vector<8x256xf32>
    %177 = arith.addf %175, %176 : vector<8x256xf32>
    %178 = vector.broadcast %13 : vector<1x256xf32> to vector<8x256xf32>
    %179 = arith.mulf %177, %178 : vector<8x256xf32>
    %180 = math.tanh %179 : vector<8x256xf32>
    %181 = vector.broadcast %13 : vector<1x256xf32> to vector<8x256xf32>
    %182 = arith.mulf %180, %181 : vector<8x256xf32>
    %183 = vector.broadcast %14 : vector<1x256xf32> to vector<8x256xf32>
    %184 = arith.addf %182, %183 : vector<8x256xf32>
    %185 = vector.extract_strided_slice %184 {offsets = [0, 0], sizes = [8, 64], strides = [1, 1]} : vector<8x256xf32> to vector<8x64xf32>
    %186 = vector.extract_strided_slice %184 {offsets = [0, 64], sizes = [8, 64], strides = [1, 1]} : vector<8x256xf32> to vector<8x64xf32>
    %187 = vector.extract_strided_slice %184 {offsets = [0, 128], sizes = [8, 64], strides = [1, 1]} : vector<8x256xf32> to vector<8x64xf32>
    %188 = vector.extract_strided_slice %184 {offsets = [0, 192], sizes = [8, 64], strides = [1, 1]} : vector<8x256xf32> to vector<8x64xf32>
    %189 = arith.mulf %186, %131 : vector<8x64xf32>
    %190 = arith.mulf %185, %187 : vector<8x64xf32>
    %191 = arith.addf %189, %190 : vector<8x64xf32>
    %192 = math.tanh %191 : vector<8x64xf32>
    %193 = arith.mulf %188, %192 : vector<8x64xf32>
    %194 = vector.extract_strided_slice %155 {offsets = [0, 512], sizes = [8, 128], strides = [1, 1]} : vector<8x768xf32> to vector<8x128xf32>
    %195 = vector.broadcast %18 : vector<1x128xf32> to vector<8x128xf32>
    %196 = arith.addf %194, %195 : vector<8x128xf32>
    %197 = vector.broadcast %16 : vector<1x128xf32> to vector<8x128xf32>
    %198 = arith.mulf %196, %197 : vector<8x128xf32>
    %199 = math.tanh %198 : vector<8x128xf32>
    %200 = vector.broadcast %16 : vector<1x128xf32> to vector<8x128xf32>
    %201 = arith.mulf %199, %200 : vector<8x128xf32>
    %202 = vector.broadcast %17 : vector<1x128xf32> to vector<8x128xf32>
    %203 = arith.addf %201, %202 : vector<8x128xf32>
    %204 = vector.extract_strided_slice %203 {offsets = [0, 0], sizes = [8, 32], strides = [1, 1]} : vector<8x128xf32> to vector<8x32xf32>
    %205 = vector.extract_strided_slice %203 {offsets = [0, 32], sizes = [8, 32], strides = [1, 1]} : vector<8x128xf32> to vector<8x32xf32>
    %206 = vector.extract_strided_slice %203 {offsets = [0, 64], sizes = [8, 32], strides = [1, 1]} : vector<8x128xf32> to vector<8x32xf32>
    %207 = vector.extract_strided_slice %203 {offsets = [0, 96], sizes = [8, 32], strides = [1, 1]} : vector<8x128xf32> to vector<8x32xf32>
    %208 = arith.mulf %205, %150 : vector<8x32xf32>
    %209 = arith.mulf %204, %206 : vector<8x32xf32>
    %210 = arith.addf %208, %209 : vector<8x32xf32>
    %211 = math.tanh %210 : vector<8x32xf32>
    %212 = arith.mulf %207, %211 : vector<8x32xf32>
    %213 = vector.extract_strided_slice %155 {offsets = [0, 640], sizes = [8, 128], strides = [1, 1]} : vector<8x768xf32> to vector<8x128xf32>
    %214 = vector.broadcast %21 : vector<1x128xf32> to vector<8x128xf32>
    %215 = arith.addf %213, %214 : vector<8x128xf32>
    %216 = vector.broadcast %19 : vector<1x128xf32> to vector<8x128xf32>
    %217 = arith.mulf %215, %216 : vector<8x128xf32>
    %218 = math.tanh %217 : vector<8x128xf32>
    %219 = vector.broadcast %19 : vector<1x128xf32> to vector<8x128xf32>
    %220 = arith.mulf %218, %219 : vector<8x128xf32>
    %221 = vector.broadcast %20 : vector<1x128xf32> to vector<8x128xf32>
    %222 = arith.addf %220, %221 : vector<8x128xf32>
    %223 = vector.extract_strided_slice %222 {offsets = [0, 0], sizes = [8, 32], strides = [1, 1]} : vector<8x128xf32> to vector<8x32xf32>
    %224 = vector.extract_strided_slice %222 {offsets = [0, 32], sizes = [8, 32], strides = [1, 1]} : vector<8x128xf32> to vector<8x32xf32>
    %225 = vector.extract_strided_slice %222 {offsets = [0, 64], sizes = [8, 32], strides = [1, 1]} : vector<8x128xf32> to vector<8x32xf32>
    %226 = vector.extract_strided_slice %222 {offsets = [0, 96], sizes = [8, 32], strides = [1, 1]} : vector<8x128xf32> to vector<8x32xf32>
    %227 = arith.mulf %224, %29 : vector<8x32xf32>
    %228 = arith.mulf %223, %225 : vector<8x32xf32>
    %229 = arith.addf %227, %228 : vector<8x32xf32>
    %230 = math.tanh %229 : vector<8x32xf32>
    %231 = arith.mulf %226, %230 : vector<8x32xf32>
    %232 = tpu.concatenate %174, %193, %212, %231 in 1 : vector<8x64xf32>, vector<8x64xf32>, vector<8x32xf32>, vector<8x32xf32> -> vector<8x192xf32>
    %c0_46 = arith.constant 0 : index
    %c0_47 = arith.constant 0 : index
    %233 = vector.load %arg1[%c0_46, %c0_47] : memref<204x768xf32, #tpu.memory_space<vmem>>, vector<192x768xf32>
    %cst_48 = arith.constant dense<0.000000e+00> : vector<8x768xf32>
    %234 = tpu.matmul %232, %233, %cst_48 {dimension_numbers = #tpu.dot_dimension_numbers<[1], [0], [0], [1], [0, 0, 1, 1], [], []>} : vector<8x192xf32>, vector<192x768xf32>, vector<8x768xf32> -> vector<8x768xf32>
    %235 = vector.extract_strided_slice %234 {offsets = [0, 0], sizes = [8, 256], strides = [1, 1]} : vector<8x768xf32> to vector<8x256xf32>
    %c32 = arith.constant 32 : index
    %c0_49 = arith.constant 0 : index
    %236 = vector.load %arg5[%c32, %c0_49] : memref<64x256xf32, #tpu.memory_space<vmem>>, vector<8x256xf32>
    %237 = arith.addf %235, %236 : vector<8x256xf32>
    %238 = vector.broadcast %11 : vector<1x256xf32> to vector<8x256xf32>
    %239 = arith.mulf %237, %238 : vector<8x256xf32>
    %240 = math.tanh %239 : vector<8x256xf32>
    %241 = vector.broadcast %11 : vector<1x256xf32> to vector<8x256xf32>
    %242 = arith.mulf %240, %241 : vector<8x256xf32>
    %243 = vector.broadcast %12 : vector<1x256xf32> to vector<8x256xf32>
    %244 = arith.addf %242, %243 : vector<8x256xf32>
    %245 = vector.extract_strided_slice %244 {offsets = [0, 0], sizes = [8, 64], strides = [1, 1]} : vector<8x256xf32> to vector<8x64xf32>
    %246 = vector.extract_strided_slice %244 {offsets = [0, 64], sizes = [8, 64], strides = [1, 1]} : vector<8x256xf32> to vector<8x64xf32>
    %247 = vector.extract_strided_slice %244 {offsets = [0, 128], sizes = [8, 64], strides = [1, 1]} : vector<8x256xf32> to vector<8x64xf32>
    %248 = vector.extract_strided_slice %244 {offsets = [0, 192], sizes = [8, 64], strides = [1, 1]} : vector<8x256xf32> to vector<8x64xf32>
    %249 = arith.mulf %246, %172 : vector<8x64xf32>
    %250 = arith.mulf %245, %247 : vector<8x64xf32>
    %251 = arith.addf %249, %250 : vector<8x64xf32>
    %252 = math.tanh %251 : vector<8x64xf32>
    %253 = arith.mulf %248, %252 : vector<8x64xf32>
    %254 = vector.extract_strided_slice %234 {offsets = [0, 256], sizes = [8, 256], strides = [1, 1]} : vector<8x768xf32> to vector<8x256xf32>
    %255 = vector.broadcast %15 : vector<1x256xf32> to vector<8x256xf32>
    %256 = arith.addf %254, %255 : vector<8x256xf32>
    %257 = vector.broadcast %13 : vector<1x256xf32> to vector<8x256xf32>
    %258 = arith.mulf %256, %257 : vector<8x256xf32>
    %259 = math.tanh %258 : vector<8x256xf32>
    %260 = vector.broadcast %13 : vector<1x256xf32> to vector<8x256xf32>
    %261 = arith.mulf %259, %260 : vector<8x256xf32>
    %262 = vector.broadcast %14 : vector<1x256xf32> to vector<8x256xf32>
    %263 = arith.addf %261, %262 : vector<8x256xf32>
    %264 = vector.extract_strided_slice %263 {offsets = [0, 0], sizes = [8, 64], strides = [1, 1]} : vector<8x256xf32> to vector<8x64xf32>
    %265 = vector.extract_strided_slice %263 {offsets = [0, 64], sizes = [8, 64], strides = [1, 1]} : vector<8x256xf32> to vector<8x64xf32>
    %266 = vector.extract_strided_slice %263 {offsets = [0, 128], sizes = [8, 64], strides = [1, 1]} : vector<8x256xf32> to vector<8x64xf32>
    %267 = vector.extract_strided_slice %263 {offsets = [0, 192], sizes = [8, 64], strides = [1, 1]} : vector<8x256xf32> to vector<8x64xf32>
    %268 = arith.mulf %265, %191 : vector<8x64xf32>
    %269 = arith.mulf %264, %266 : vector<8x64xf32>
    %270 = arith.addf %268, %269 : vector<8x64xf32>
    %271 = math.tanh %270 : vector<8x64xf32>
    %272 = arith.mulf %267, %271 : vector<8x64xf32>
    %273 = vector.extract_strided_slice %234 {offsets = [0, 512], sizes = [8, 128], strides = [1, 1]} : vector<8x768xf32> to vector<8x128xf32>
    %274 = vector.broadcast %18 : vector<1x128xf32> to vector<8x128xf32>
    %275 = arith.addf %273, %274 : vector<8x128xf32>
    %276 = vector.broadcast %16 : vector<1x128xf32> to vector<8x128xf32>
    %277 = arith.mulf %275, %276 : vector<8x128xf32>
    %278 = math.tanh %277 : vector<8x128xf32>
    %279 = vector.broadcast %16 : vector<1x128xf32> to vector<8x128xf32>
    %280 = arith.mulf %278, %279 : vector<8x128xf32>
    %281 = vector.broadcast %17 : vector<1x128xf32> to vector<8x128xf32>
    %282 = arith.addf %280, %281 : vector<8x128xf32>
    %283 = vector.extract_strided_slice %282 {offsets = [0, 0], sizes = [8, 32], strides = [1, 1]} : vector<8x128xf32> to vector<8x32xf32>
    %284 = vector.extract_strided_slice %282 {offsets = [0, 32], sizes = [8, 32], strides = [1, 1]} : vector<8x128xf32> to vector<8x32xf32>
    %285 = vector.extract_strided_slice %282 {offsets = [0, 64], sizes = [8, 32], strides = [1, 1]} : vector<8x128xf32> to vector<8x32xf32>
    %286 = vector.extract_strided_slice %282 {offsets = [0, 96], sizes = [8, 32], strides = [1, 1]} : vector<8x128xf32> to vector<8x32xf32>
    %287 = arith.mulf %284, %210 : vector<8x32xf32>
    %288 = arith.mulf %283, %285 : vector<8x32xf32>
    %289 = arith.addf %287, %288 : vector<8x32xf32>
    %290 = math.tanh %289 : vector<8x32xf32>
    %291 = arith.mulf %286, %290 : vector<8x32xf32>
    %292 = vector.extract_strided_slice %234 {offsets = [0, 640], sizes = [8, 128], strides = [1, 1]} : vector<8x768xf32> to vector<8x128xf32>
    %293 = vector.broadcast %21 : vector<1x128xf32> to vector<8x128xf32>
    %294 = arith.addf %292, %293 : vector<8x128xf32>
    %295 = vector.broadcast %19 : vector<1x128xf32> to vector<8x128xf32>
    %296 = arith.mulf %294, %295 : vector<8x128xf32>
    %297 = math.tanh %296 : vector<8x128xf32>
    %298 = vector.broadcast %19 : vector<1x128xf32> to vector<8x128xf32>
    %299 = arith.mulf %297, %298 : vector<8x128xf32>
    %300 = vector.broadcast %20 : vector<1x128xf32> to vector<8x128xf32>
    %301 = arith.addf %299, %300 : vector<8x128xf32>
    %302 = vector.extract_strided_slice %301 {offsets = [0, 0], sizes = [8, 32], strides = [1, 1]} : vector<8x128xf32> to vector<8x32xf32>
    %303 = vector.extract_strided_slice %301 {offsets = [0, 32], sizes = [8, 32], strides = [1, 1]} : vector<8x128xf32> to vector<8x32xf32>
    %304 = vector.extract_strided_slice %301 {offsets = [0, 64], sizes = [8, 32], strides = [1, 1]} : vector<8x128xf32> to vector<8x32xf32>
    %305 = vector.extract_strided_slice %301 {offsets = [0, 96], sizes = [8, 32], strides = [1, 1]} : vector<8x128xf32> to vector<8x32xf32>
    %306 = arith.mulf %303, %229 : vector<8x32xf32>
    %307 = arith.mulf %302, %304 : vector<8x32xf32>
    %308 = arith.addf %306, %307 : vector<8x32xf32>
    %309 = math.tanh %308 : vector<8x32xf32>
    %310 = arith.mulf %305, %309 : vector<8x32xf32>
    %311 = tpu.concatenate %253, %272, %291, %310 in 1 : vector<8x64xf32>, vector<8x64xf32>, vector<8x32xf32>, vector<8x32xf32> -> vector<8x192xf32>
    %c0_50 = arith.constant 0 : index
    %c0_51 = arith.constant 0 : index
    %312 = vector.load %arg1[%c0_50, %c0_51] : memref<204x768xf32, #tpu.memory_space<vmem>>, vector<192x768xf32>
    %cst_52 = arith.constant dense<0.000000e+00> : vector<8x768xf32>
    %313 = tpu.matmul %311, %312, %cst_52 {dimension_numbers = #tpu.dot_dimension_numbers<[1], [0], [0], [1], [0, 0, 1, 1], [], []>} : vector<8x192xf32>, vector<192x768xf32>, vector<8x768xf32> -> vector<8x768xf32>
    %314 = vector.extract_strided_slice %313 {offsets = [0, 0], sizes = [8, 256], strides = [1, 1]} : vector<8x768xf32> to vector<8x256xf32>
    %c40 = arith.constant 40 : index
    %c0_53 = arith.constant 0 : index
    %315 = vector.load %arg5[%c40, %c0_53] : memref<64x256xf32, #tpu.memory_space<vmem>>, vector<8x256xf32>
    %316 = arith.addf %314, %315 : vector<8x256xf32>
    %317 = vector.broadcast %11 : vector<1x256xf32> to vector<8x256xf32>
    %318 = arith.mulf %316, %317 : vector<8x256xf32>
    %319 = math.tanh %318 : vector<8x256xf32>
    %320 = vector.broadcast %11 : vector<1x256xf32> to vector<8x256xf32>
    %321 = arith.mulf %319, %320 : vector<8x256xf32>
    %322 = vector.broadcast %12 : vector<1x256xf32> to vector<8x256xf32>
    %323 = arith.addf %321, %322 : vector<8x256xf32>
    %324 = vector.extract_strided_slice %323 {offsets = [0, 0], sizes = [8, 64], strides = [1, 1]} : vector<8x256xf32> to vector<8x64xf32>
    %325 = vector.extract_strided_slice %323 {offsets = [0, 64], sizes = [8, 64], strides = [1, 1]} : vector<8x256xf32> to vector<8x64xf32>
    %326 = vector.extract_strided_slice %323 {offsets = [0, 128], sizes = [8, 64], strides = [1, 1]} : vector<8x256xf32> to vector<8x64xf32>
    %327 = vector.extract_strided_slice %323 {offsets = [0, 192], sizes = [8, 64], strides = [1, 1]} : vector<8x256xf32> to vector<8x64xf32>
    %328 = arith.mulf %325, %251 : vector<8x64xf32>
    %329 = arith.mulf %324, %326 : vector<8x64xf32>
    %330 = arith.addf %328, %329 : vector<8x64xf32>
    %331 = math.tanh %330 : vector<8x64xf32>
    %332 = arith.mulf %327, %331 : vector<8x64xf32>
    %333 = vector.extract_strided_slice %313 {offsets = [0, 256], sizes = [8, 256], strides = [1, 1]} : vector<8x768xf32> to vector<8x256xf32>
    %334 = vector.broadcast %15 : vector<1x256xf32> to vector<8x256xf32>
    %335 = arith.addf %333, %334 : vector<8x256xf32>
    %336 = vector.broadcast %13 : vector<1x256xf32> to vector<8x256xf32>
    %337 = arith.mulf %335, %336 : vector<8x256xf32>
    %338 = math.tanh %337 : vector<8x256xf32>
    %339 = vector.broadcast %13 : vector<1x256xf32> to vector<8x256xf32>
    %340 = arith.mulf %338, %339 : vector<8x256xf32>
    %341 = vector.broadcast %14 : vector<1x256xf32> to vector<8x256xf32>
    %342 = arith.addf %340, %341 : vector<8x256xf32>
    %343 = vector.extract_strided_slice %342 {offsets = [0, 0], sizes = [8, 64], strides = [1, 1]} : vector<8x256xf32> to vector<8x64xf32>
    %344 = vector.extract_strided_slice %342 {offsets = [0, 64], sizes = [8, 64], strides = [1, 1]} : vector<8x256xf32> to vector<8x64xf32>
    %345 = vector.extract_strided_slice %342 {offsets = [0, 128], sizes = [8, 64], strides = [1, 1]} : vector<8x256xf32> to vector<8x64xf32>
    %346 = vector.extract_strided_slice %342 {offsets = [0, 192], sizes = [8, 64], strides = [1, 1]} : vector<8x256xf32> to vector<8x64xf32>
    %347 = arith.mulf %344, %270 : vector<8x64xf32>
    %348 = arith.mulf %343, %345 : vector<8x64xf32>
    %349 = arith.addf %347, %348 : vector<8x64xf32>
    %350 = math.tanh %349 : vector<8x64xf32>
    %351 = arith.mulf %346, %350 : vector<8x64xf32>
    %352 = vector.extract_strided_slice %313 {offsets = [0, 512], sizes = [8, 128], strides = [1, 1]} : vector<8x768xf32> to vector<8x128xf32>
    %353 = vector.broadcast %18 : vector<1x128xf32> to vector<8x128xf32>
    %354 = arith.addf %352, %353 : vector<8x128xf32>
    %355 = vector.broadcast %16 : vector<1x128xf32> to vector<8x128xf32>
    %356 = arith.mulf %354, %355 : vector<8x128xf32>
    %357 = math.tanh %356 : vector<8x128xf32>
    %358 = vector.broadcast %16 : vector<1x128xf32> to vector<8x128xf32>
    %359 = arith.mulf %357, %358 : vector<8x128xf32>
    %360 = vector.broadcast %17 : vector<1x128xf32> to vector<8x128xf32>
    %361 = arith.addf %359, %360 : vector<8x128xf32>
    %362 = vector.extract_strided_slice %361 {offsets = [0, 0], sizes = [8, 32], strides = [1, 1]} : vector<8x128xf32> to vector<8x32xf32>
    %363 = vector.extract_strided_slice %361 {offsets = [0, 32], sizes = [8, 32], strides = [1, 1]} : vector<8x128xf32> to vector<8x32xf32>
    %364 = vector.extract_strided_slice %361 {offsets = [0, 64], sizes = [8, 32], strides = [1, 1]} : vector<8x128xf32> to vector<8x32xf32>
    %365 = vector.extract_strided_slice %361 {offsets = [0, 96], sizes = [8, 32], strides = [1, 1]} : vector<8x128xf32> to vector<8x32xf32>
    %366 = arith.mulf %363, %289 : vector<8x32xf32>
    %367 = arith.mulf %362, %364 : vector<8x32xf32>
    %368 = arith.addf %366, %367 : vector<8x32xf32>
    %369 = math.tanh %368 : vector<8x32xf32>
    %370 = arith.mulf %365, %369 : vector<8x32xf32>
    %371 = vector.extract_strided_slice %313 {offsets = [0, 640], sizes = [8, 128], strides = [1, 1]} : vector<8x768xf32> to vector<8x128xf32>
    %372 = vector.broadcast %21 : vector<1x128xf32> to vector<8x128xf32>
    %373 = arith.addf %371, %372 : vector<8x128xf32>
    %374 = vector.broadcast %19 : vector<1x128xf32> to vector<8x128xf32>
    %375 = arith.mulf %373, %374 : vector<8x128xf32>
    %376 = math.tanh %375 : vector<8x128xf32>
    %377 = vector.broadcast %19 : vector<1x128xf32> to vector<8x128xf32>
    %378 = arith.mulf %376, %377 : vector<8x128xf32>
    %379 = vector.broadcast %20 : vector<1x128xf32> to vector<8x128xf32>
    %380 = arith.addf %378, %379 : vector<8x128xf32>
    %381 = vector.extract_strided_slice %380 {offsets = [0, 0], sizes = [8, 32], strides = [1, 1]} : vector<8x128xf32> to vector<8x32xf32>
    %382 = vector.extract_strided_slice %380 {offsets = [0, 32], sizes = [8, 32], strides = [1, 1]} : vector<8x128xf32> to vector<8x32xf32>
    %383 = vector.extract_strided_slice %380 {offsets = [0, 64], sizes = [8, 32], strides = [1, 1]} : vector<8x128xf32> to vector<8x32xf32>
    %384 = vector.extract_strided_slice %380 {offsets = [0, 96], sizes = [8, 32], strides = [1, 1]} : vector<8x128xf32> to vector<8x32xf32>
    %385 = arith.mulf %382, %308 : vector<8x32xf32>
    %386 = arith.mulf %381, %383 : vector<8x32xf32>
    %387 = arith.addf %385, %386 : vector<8x32xf32>
    %388 = math.tanh %387 : vector<8x32xf32>
    %389 = arith.mulf %384, %388 : vector<8x32xf32>
    %390 = tpu.concatenate %332, %351, %370, %389 in 1 : vector<8x64xf32>, vector<8x64xf32>, vector<8x32xf32>, vector<8x32xf32> -> vector<8x192xf32>
    %c0_54 = arith.constant 0 : index
    %c0_55 = arith.constant 0 : index
    %391 = vector.load %arg1[%c0_54, %c0_55] : memref<204x768xf32, #tpu.memory_space<vmem>>, vector<192x768xf32>
    %cst_56 = arith.constant dense<0.000000e+00> : vector<8x768xf32>
    %392 = tpu.matmul %390, %391, %cst_56 {dimension_numbers = #tpu.dot_dimension_numbers<[1], [0], [0], [1], [0, 0, 1, 1], [], []>} : vector<8x192xf32>, vector<192x768xf32>, vector<8x768xf32> -> vector<8x768xf32>
    %393 = vector.extract_strided_slice %392 {offsets = [0, 0], sizes = [8, 256], strides = [1, 1]} : vector<8x768xf32> to vector<8x256xf32>
    %c48 = arith.constant 48 : index
    %c0_57 = arith.constant 0 : index
    %394 = vector.load %arg5[%c48, %c0_57] : memref<64x256xf32, #tpu.memory_space<vmem>>, vector<8x256xf32>
    %395 = arith.addf %393, %394 : vector<8x256xf32>
    %396 = vector.broadcast %11 : vector<1x256xf32> to vector<8x256xf32>
    %397 = arith.mulf %395, %396 : vector<8x256xf32>
    %398 = math.tanh %397 : vector<8x256xf32>
    %399 = vector.broadcast %11 : vector<1x256xf32> to vector<8x256xf32>
    %400 = arith.mulf %398, %399 : vector<8x256xf32>
    %401 = vector.broadcast %12 : vector<1x256xf32> to vector<8x256xf32>
    %402 = arith.addf %400, %401 : vector<8x256xf32>
    %403 = vector.extract_strided_slice %402 {offsets = [0, 0], sizes = [8, 64], strides = [1, 1]} : vector<8x256xf32> to vector<8x64xf32>
    %404 = vector.extract_strided_slice %402 {offsets = [0, 64], sizes = [8, 64], strides = [1, 1]} : vector<8x256xf32> to vector<8x64xf32>
    %405 = vector.extract_strided_slice %402 {offsets = [0, 128], sizes = [8, 64], strides = [1, 1]} : vector<8x256xf32> to vector<8x64xf32>
    %406 = vector.extract_strided_slice %402 {offsets = [0, 192], sizes = [8, 64], strides = [1, 1]} : vector<8x256xf32> to vector<8x64xf32>
    %407 = arith.mulf %404, %330 : vector<8x64xf32>
    %408 = arith.mulf %403, %405 : vector<8x64xf32>
    %409 = arith.addf %407, %408 : vector<8x64xf32>
    %410 = math.tanh %409 : vector<8x64xf32>
    %411 = arith.mulf %406, %410 : vector<8x64xf32>
    %412 = vector.extract_strided_slice %392 {offsets = [0, 256], sizes = [8, 256], strides = [1, 1]} : vector<8x768xf32> to vector<8x256xf32>
    %413 = vector.broadcast %15 : vector<1x256xf32> to vector<8x256xf32>
    %414 = arith.addf %412, %413 : vector<8x256xf32>
    %415 = vector.broadcast %13 : vector<1x256xf32> to vector<8x256xf32>
    %416 = arith.mulf %414, %415 : vector<8x256xf32>
    %417 = math.tanh %416 : vector<8x256xf32>
    %418 = vector.broadcast %13 : vector<1x256xf32> to vector<8x256xf32>
    %419 = arith.mulf %417, %418 : vector<8x256xf32>
    %420 = vector.broadcast %14 : vector<1x256xf32> to vector<8x256xf32>
    %421 = arith.addf %419, %420 : vector<8x256xf32>
    %422 = vector.extract_strided_slice %421 {offsets = [0, 0], sizes = [8, 64], strides = [1, 1]} : vector<8x256xf32> to vector<8x64xf32>
    %423 = vector.extract_strided_slice %421 {offsets = [0, 64], sizes = [8, 64], strides = [1, 1]} : vector<8x256xf32> to vector<8x64xf32>
    %424 = vector.extract_strided_slice %421 {offsets = [0, 128], sizes = [8, 64], strides = [1, 1]} : vector<8x256xf32> to vector<8x64xf32>
    %425 = vector.extract_strided_slice %421 {offsets = [0, 192], sizes = [8, 64], strides = [1, 1]} : vector<8x256xf32> to vector<8x64xf32>
    %426 = arith.mulf %423, %349 : vector<8x64xf32>
    %427 = arith.mulf %422, %424 : vector<8x64xf32>
    %428 = arith.addf %426, %427 : vector<8x64xf32>
    %429 = math.tanh %428 : vector<8x64xf32>
    %430 = arith.mulf %425, %429 : vector<8x64xf32>
    %431 = vector.extract_strided_slice %392 {offsets = [0, 512], sizes = [8, 128], strides = [1, 1]} : vector<8x768xf32> to vector<8x128xf32>
    %432 = vector.broadcast %18 : vector<1x128xf32> to vector<8x128xf32>
    %433 = arith.addf %431, %432 : vector<8x128xf32>
    %434 = vector.broadcast %16 : vector<1x128xf32> to vector<8x128xf32>
    %435 = arith.mulf %433, %434 : vector<8x128xf32>
    %436 = math.tanh %435 : vector<8x128xf32>
    %437 = vector.broadcast %16 : vector<1x128xf32> to vector<8x128xf32>
    %438 = arith.mulf %436, %437 : vector<8x128xf32>
    %439 = vector.broadcast %17 : vector<1x128xf32> to vector<8x128xf32>
    %440 = arith.addf %438, %439 : vector<8x128xf32>
    %441 = vector.extract_strided_slice %440 {offsets = [0, 0], sizes = [8, 32], strides = [1, 1]} : vector<8x128xf32> to vector<8x32xf32>
    %442 = vector.extract_strided_slice %440 {offsets = [0, 32], sizes = [8, 32], strides = [1, 1]} : vector<8x128xf32> to vector<8x32xf32>
    %443 = vector.extract_strided_slice %440 {offsets = [0, 64], sizes = [8, 32], strides = [1, 1]} : vector<8x128xf32> to vector<8x32xf32>
    %444 = vector.extract_strided_slice %440 {offsets = [0, 96], sizes = [8, 32], strides = [1, 1]} : vector<8x128xf32> to vector<8x32xf32>
    %445 = arith.mulf %442, %368 : vector<8x32xf32>
    %446 = arith.mulf %441, %443 : vector<8x32xf32>
    %447 = arith.addf %445, %446 : vector<8x32xf32>
    %448 = math.tanh %447 : vector<8x32xf32>
    %449 = arith.mulf %444, %448 : vector<8x32xf32>
    %450 = vector.extract_strided_slice %392 {offsets = [0, 640], sizes = [8, 128], strides = [1, 1]} : vector<8x768xf32> to vector<8x128xf32>
    %451 = vector.broadcast %21 : vector<1x128xf32> to vector<8x128xf32>
    %452 = arith.addf %450, %451 : vector<8x128xf32>
    %453 = vector.broadcast %19 : vector<1x128xf32> to vector<8x128xf32>
    %454 = arith.mulf %452, %453 : vector<8x128xf32>
    %455 = math.tanh %454 : vector<8x128xf32>
    %456 = vector.broadcast %19 : vector<1x128xf32> to vector<8x128xf32>
    %457 = arith.mulf %455, %456 : vector<8x128xf32>
    %458 = vector.broadcast %20 : vector<1x128xf32> to vector<8x128xf32>
    %459 = arith.addf %457, %458 : vector<8x128xf32>
    %460 = vector.extract_strided_slice %459 {offsets = [0, 0], sizes = [8, 32], strides = [1, 1]} : vector<8x128xf32> to vector<8x32xf32>
    %461 = vector.extract_strided_slice %459 {offsets = [0, 32], sizes = [8, 32], strides = [1, 1]} : vector<8x128xf32> to vector<8x32xf32>
    %462 = vector.extract_strided_slice %459 {offsets = [0, 64], sizes = [8, 32], strides = [1, 1]} : vector<8x128xf32> to vector<8x32xf32>
    %463 = vector.extract_strided_slice %459 {offsets = [0, 96], sizes = [8, 32], strides = [1, 1]} : vector<8x128xf32> to vector<8x32xf32>
    %464 = arith.mulf %461, %387 : vector<8x32xf32>
    %465 = arith.mulf %460, %462 : vector<8x32xf32>
    %466 = arith.addf %464, %465 : vector<8x32xf32>
    %467 = math.tanh %466 : vector<8x32xf32>
    %468 = arith.mulf %463, %467 : vector<8x32xf32>
    %469 = tpu.concatenate %411, %430, %449, %468 in 1 : vector<8x64xf32>, vector<8x64xf32>, vector<8x32xf32>, vector<8x32xf32> -> vector<8x192xf32>
    %c0_58 = arith.constant 0 : index
    %c0_59 = arith.constant 0 : index
    %470 = vector.load %arg1[%c0_58, %c0_59] : memref<204x768xf32, #tpu.memory_space<vmem>>, vector<192x768xf32>
    %cst_60 = arith.constant dense<0.000000e+00> : vector<8x768xf32>
    %471 = tpu.matmul %469, %470, %cst_60 {dimension_numbers = #tpu.dot_dimension_numbers<[1], [0], [0], [1], [0, 0, 1, 1], [], []>} : vector<8x192xf32>, vector<192x768xf32>, vector<8x768xf32> -> vector<8x768xf32>
    %472 = vector.extract_strided_slice %471 {offsets = [0, 0], sizes = [8, 256], strides = [1, 1]} : vector<8x768xf32> to vector<8x256xf32>
    %c56 = arith.constant 56 : index
    %c0_61 = arith.constant 0 : index
    %473 = vector.load %arg5[%c56, %c0_61] : memref<64x256xf32, #tpu.memory_space<vmem>>, vector<8x256xf32>
    %474 = arith.addf %472, %473 : vector<8x256xf32>
    %475 = vector.broadcast %11 : vector<1x256xf32> to vector<8x256xf32>
    %476 = arith.mulf %474, %475 : vector<8x256xf32>
    %477 = math.tanh %476 : vector<8x256xf32>
    %478 = vector.broadcast %11 : vector<1x256xf32> to vector<8x256xf32>
    %479 = arith.mulf %477, %478 : vector<8x256xf32>
    %480 = vector.broadcast %12 : vector<1x256xf32> to vector<8x256xf32>
    %481 = arith.addf %479, %480 : vector<8x256xf32>
    %482 = vector.extract_strided_slice %481 {offsets = [0, 0], sizes = [8, 64], strides = [1, 1]} : vector<8x256xf32> to vector<8x64xf32>
    %483 = vector.extract_strided_slice %481 {offsets = [0, 64], sizes = [8, 64], strides = [1, 1]} : vector<8x256xf32> to vector<8x64xf32>
    %484 = vector.extract_strided_slice %481 {offsets = [0, 128], sizes = [8, 64], strides = [1, 1]} : vector<8x256xf32> to vector<8x64xf32>
    %485 = vector.extract_strided_slice %481 {offsets = [0, 192], sizes = [8, 64], strides = [1, 1]} : vector<8x256xf32> to vector<8x64xf32>
    %486 = arith.mulf %483, %409 : vector<8x64xf32>
    %487 = arith.mulf %482, %484 : vector<8x64xf32>
    %488 = arith.addf %486, %487 : vector<8x64xf32>
    %489 = math.tanh %488 : vector<8x64xf32>
    %490 = arith.mulf %485, %489 : vector<8x64xf32>
    %491 = vector.extract_strided_slice %471 {offsets = [0, 256], sizes = [8, 256], strides = [1, 1]} : vector<8x768xf32> to vector<8x256xf32>
    %492 = vector.broadcast %15 : vector<1x256xf32> to vector<8x256xf32>
    %493 = arith.addf %491, %492 : vector<8x256xf32>
    %494 = vector.broadcast %13 : vector<1x256xf32> to vector<8x256xf32>
    %495 = arith.mulf %493, %494 : vector<8x256xf32>
    %496 = math.tanh %495 : vector<8x256xf32>
    %497 = vector.broadcast %13 : vector<1x256xf32> to vector<8x256xf32>
    %498 = arith.mulf %496, %497 : vector<8x256xf32>
    %499 = vector.broadcast %14 : vector<1x256xf32> to vector<8x256xf32>
    %500 = arith.addf %498, %499 : vector<8x256xf32>
    %501 = vector.extract_strided_slice %500 {offsets = [0, 0], sizes = [8, 64], strides = [1, 1]} : vector<8x256xf32> to vector<8x64xf32>
    %502 = vector.extract_strided_slice %500 {offsets = [0, 64], sizes = [8, 64], strides = [1, 1]} : vector<8x256xf32> to vector<8x64xf32>
    %503 = vector.extract_strided_slice %500 {offsets = [0, 128], sizes = [8, 64], strides = [1, 1]} : vector<8x256xf32> to vector<8x64xf32>
    %504 = vector.extract_strided_slice %500 {offsets = [0, 192], sizes = [8, 64], strides = [1, 1]} : vector<8x256xf32> to vector<8x64xf32>
    %505 = arith.mulf %502, %428 : vector<8x64xf32>
    %506 = arith.mulf %501, %503 : vector<8x64xf32>
    %507 = arith.addf %505, %506 : vector<8x64xf32>
    %508 = math.tanh %507 : vector<8x64xf32>
    %509 = arith.mulf %504, %508 : vector<8x64xf32>
    %510 = vector.extract_strided_slice %471 {offsets = [0, 512], sizes = [8, 128], strides = [1, 1]} : vector<8x768xf32> to vector<8x128xf32>
    %511 = vector.broadcast %18 : vector<1x128xf32> to vector<8x128xf32>
    %512 = arith.addf %510, %511 : vector<8x128xf32>
    %513 = vector.broadcast %16 : vector<1x128xf32> to vector<8x128xf32>
    %514 = arith.mulf %512, %513 : vector<8x128xf32>
    %515 = math.tanh %514 : vector<8x128xf32>
    %516 = vector.broadcast %16 : vector<1x128xf32> to vector<8x128xf32>
    %517 = arith.mulf %515, %516 : vector<8x128xf32>
    %518 = vector.broadcast %17 : vector<1x128xf32> to vector<8x128xf32>
    %519 = arith.addf %517, %518 : vector<8x128xf32>
    %520 = vector.extract_strided_slice %519 {offsets = [0, 0], sizes = [8, 32], strides = [1, 1]} : vector<8x128xf32> to vector<8x32xf32>
    %521 = vector.extract_strided_slice %519 {offsets = [0, 32], sizes = [8, 32], strides = [1, 1]} : vector<8x128xf32> to vector<8x32xf32>
    %522 = vector.extract_strided_slice %519 {offsets = [0, 64], sizes = [8, 32], strides = [1, 1]} : vector<8x128xf32> to vector<8x32xf32>
    %523 = vector.extract_strided_slice %519 {offsets = [0, 96], sizes = [8, 32], strides = [1, 1]} : vector<8x128xf32> to vector<8x32xf32>
    %524 = arith.mulf %521, %447 : vector<8x32xf32>
    %525 = arith.mulf %520, %522 : vector<8x32xf32>
    %526 = arith.addf %524, %525 : vector<8x32xf32>
    %527 = math.tanh %526 : vector<8x32xf32>
    %528 = arith.mulf %523, %527 : vector<8x32xf32>
    %529 = vector.extract_strided_slice %471 {offsets = [0, 640], sizes = [8, 128], strides = [1, 1]} : vector<8x768xf32> to vector<8x128xf32>
    %530 = vector.broadcast %21 : vector<1x128xf32> to vector<8x128xf32>
    %531 = arith.addf %529, %530 : vector<8x128xf32>
    %532 = vector.broadcast %19 : vector<1x128xf32> to vector<8x128xf32>
    %533 = arith.mulf %531, %532 : vector<8x128xf32>
    %534 = math.tanh %533 : vector<8x128xf32>
    %535 = vector.broadcast %19 : vector<1x128xf32> to vector<8x128xf32>
    %536 = arith.mulf %534, %535 : vector<8x128xf32>
    %537 = vector.broadcast %20 : vector<1x128xf32> to vector<8x128xf32>
    %538 = arith.addf %536, %537 : vector<8x128xf32>
    %539 = vector.extract_strided_slice %538 {offsets = [0, 0], sizes = [8, 32], strides = [1, 1]} : vector<8x128xf32> to vector<8x32xf32>
    %540 = vector.extract_strided_slice %538 {offsets = [0, 32], sizes = [8, 32], strides = [1, 1]} : vector<8x128xf32> to vector<8x32xf32>
    %541 = vector.extract_strided_slice %538 {offsets = [0, 64], sizes = [8, 32], strides = [1, 1]} : vector<8x128xf32> to vector<8x32xf32>
    %542 = vector.extract_strided_slice %538 {offsets = [0, 96], sizes = [8, 32], strides = [1, 1]} : vector<8x128xf32> to vector<8x32xf32>
    %543 = arith.mulf %540, %466 : vector<8x32xf32>
    %544 = arith.mulf %539, %541 : vector<8x32xf32>
    %545 = arith.addf %543, %544 : vector<8x32xf32>
    %546 = math.tanh %545 : vector<8x32xf32>
    %547 = arith.mulf %542, %546 : vector<8x32xf32>
    %548 = tpu.concatenate %490, %509, %528, %547 in 1 : vector<8x64xf32>, vector<8x64xf32>, vector<8x32xf32>, vector<8x32xf32> -> vector<8x192xf32>
    %c0_62 = arith.constant 0 : index
    %c0_63 = arith.constant 0 : index
    %549 = vector.load %arg1[%c0_62, %c0_63] : memref<204x768xf32, #tpu.memory_space<vmem>>, vector<192x768xf32>
    %cst_64 = arith.constant dense<0.000000e+00> : vector<8x768xf32>
    %550 = tpu.matmul %548, %549, %cst_64 {dimension_numbers = #tpu.dot_dimension_numbers<[1], [0], [0], [1], [0, 0, 1, 1], [], []>} : vector<8x192xf32>, vector<192x768xf32>, vector<8x768xf32> -> vector<8x768xf32>
    %551 = vector.extract_strided_slice %550 {offsets = [0, 256], sizes = [8, 256], strides = [1, 1]} : vector<8x768xf32> to vector<8x256xf32>
    %552 = vector.broadcast %15 : vector<1x256xf32> to vector<8x256xf32>
    %553 = arith.addf %551, %552 : vector<8x256xf32>
    %554 = vector.broadcast %13 : vector<1x256xf32> to vector<8x256xf32>
    %555 = arith.mulf %553, %554 : vector<8x256xf32>
    %556 = math.tanh %555 : vector<8x256xf32>
    %557 = vector.broadcast %13 : vector<1x256xf32> to vector<8x256xf32>
    %558 = arith.mulf %556, %557 : vector<8x256xf32>
    %559 = vector.broadcast %14 : vector<1x256xf32> to vector<8x256xf32>
    %560 = arith.addf %558, %559 : vector<8x256xf32>
    %561 = vector.extract_strided_slice %560 {offsets = [0, 0], sizes = [8, 64], strides = [1, 1]} : vector<8x256xf32> to vector<8x64xf32>
    %562 = vector.extract_strided_slice %560 {offsets = [0, 64], sizes = [8, 64], strides = [1, 1]} : vector<8x256xf32> to vector<8x64xf32>
    %563 = vector.extract_strided_slice %560 {offsets = [0, 128], sizes = [8, 64], strides = [1, 1]} : vector<8x256xf32> to vector<8x64xf32>
    %564 = vector.extract_strided_slice %560 {offsets = [0, 192], sizes = [8, 64], strides = [1, 1]} : vector<8x256xf32> to vector<8x64xf32>
    %565 = arith.mulf %562, %507 : vector<8x64xf32>
    %566 = arith.mulf %561, %563 : vector<8x64xf32>
    %567 = arith.addf %565, %566 : vector<8x64xf32>
    %568 = math.tanh %567 : vector<8x64xf32>
    %569 = arith.mulf %564, %568 : vector<8x64xf32>
    %570 = vector.extract_strided_slice %550 {offsets = [0, 512], sizes = [8, 128], strides = [1, 1]} : vector<8x768xf32> to vector<8x128xf32>
    %571 = vector.broadcast %18 : vector<1x128xf32> to vector<8x128xf32>
    %572 = arith.addf %570, %571 : vector<8x128xf32>
    %573 = vector.broadcast %16 : vector<1x128xf32> to vector<8x128xf32>
    %574 = arith.mulf %572, %573 : vector<8x128xf32>
    %575 = math.tanh %574 : vector<8x128xf32>
    %576 = vector.broadcast %16 : vector<1x128xf32> to vector<8x128xf32>
    %577 = arith.mulf %575, %576 : vector<8x128xf32>
    %578 = vector.broadcast %17 : vector<1x128xf32> to vector<8x128xf32>
    %579 = arith.addf %577, %578 : vector<8x128xf32>
    %580 = vector.extract_strided_slice %579 {offsets = [0, 0], sizes = [8, 32], strides = [1, 1]} : vector<8x128xf32> to vector<8x32xf32>
    %581 = vector.extract_strided_slice %579 {offsets = [0, 32], sizes = [8, 32], strides = [1, 1]} : vector<8x128xf32> to vector<8x32xf32>
    %582 = vector.extract_strided_slice %579 {offsets = [0, 64], sizes = [8, 32], strides = [1, 1]} : vector<8x128xf32> to vector<8x32xf32>
    %583 = vector.extract_strided_slice %579 {offsets = [0, 96], sizes = [8, 32], strides = [1, 1]} : vector<8x128xf32> to vector<8x32xf32>
    %584 = arith.mulf %581, %526 : vector<8x32xf32>
    %585 = arith.mulf %580, %582 : vector<8x32xf32>
    %586 = arith.addf %584, %585 : vector<8x32xf32>
    %587 = math.tanh %586 : vector<8x32xf32>
    %588 = arith.mulf %583, %587 : vector<8x32xf32>
    %589 = vector.extract_strided_slice %550 {offsets = [0, 640], sizes = [8, 128], strides = [1, 1]} : vector<8x768xf32> to vector<8x128xf32>
    %590 = vector.broadcast %21 : vector<1x128xf32> to vector<8x128xf32>
    %591 = arith.addf %589, %590 : vector<8x128xf32>
    %592 = vector.broadcast %19 : vector<1x128xf32> to vector<8x128xf32>
    %593 = arith.mulf %591, %592 : vector<8x128xf32>
    %594 = math.tanh %593 : vector<8x128xf32>
    %595 = vector.broadcast %19 : vector<1x128xf32> to vector<8x128xf32>
    %596 = arith.mulf %594, %595 : vector<8x128xf32>
    %597 = vector.broadcast %20 : vector<1x128xf32> to vector<8x128xf32>
    %598 = arith.addf %596, %597 : vector<8x128xf32>
    %599 = vector.extract_strided_slice %598 {offsets = [0, 0], sizes = [8, 32], strides = [1, 1]} : vector<8x128xf32> to vector<8x32xf32>
    %600 = vector.extract_strided_slice %598 {offsets = [0, 32], sizes = [8, 32], strides = [1, 1]} : vector<8x128xf32> to vector<8x32xf32>
    %601 = vector.extract_strided_slice %598 {offsets = [0, 64], sizes = [8, 32], strides = [1, 1]} : vector<8x128xf32> to vector<8x32xf32>
    %602 = vector.extract_strided_slice %598 {offsets = [0, 96], sizes = [8, 32], strides = [1, 1]} : vector<8x128xf32> to vector<8x32xf32>
    %603 = arith.mulf %600, %545 : vector<8x32xf32>
    %604 = arith.mulf %599, %601 : vector<8x32xf32>
    %605 = arith.addf %603, %604 : vector<8x32xf32>
    %606 = math.tanh %605 : vector<8x32xf32>
    %607 = arith.mulf %602, %606 : vector<8x32xf32>
    %608 = tpu.concatenate %490, %569, %588, %607 in 1 : vector<8x64xf32>, vector<8x64xf32>, vector<8x32xf32>, vector<8x32xf32> -> vector<8x192xf32>
    %c0_65 = arith.constant 0 : index
    %c0_66 = arith.constant 0 : index
    %609 = vector.load %arg1[%c0_65, %c0_66] : memref<204x768xf32, #tpu.memory_space<vmem>>, vector<192x768xf32>
    %cst_67 = arith.constant dense<0.000000e+00> : vector<8x768xf32>
    %610 = tpu.matmul %608, %609, %cst_67 {dimension_numbers = #tpu.dot_dimension_numbers<[1], [0], [0], [1], [0, 0, 1, 1], [], []>} : vector<8x192xf32>, vector<192x768xf32>, vector<8x768xf32> -> vector<8x768xf32>
    %611 = vector.extract_strided_slice %610 {offsets = [0, 512], sizes = [8, 128], strides = [1, 1]} : vector<8x768xf32> to vector<8x128xf32>
    %612 = vector.broadcast %18 : vector<1x128xf32> to vector<8x128xf32>
    %613 = arith.addf %611, %612 : vector<8x128xf32>
    %614 = vector.broadcast %16 : vector<1x128xf32> to vector<8x128xf32>
    %615 = arith.mulf %613, %614 : vector<8x128xf32>
    %616 = math.tanh %615 : vector<8x128xf32>
    %617 = vector.broadcast %16 : vector<1x128xf32> to vector<8x128xf32>
    %618 = arith.mulf %616, %617 : vector<8x128xf32>
    %619 = vector.broadcast %17 : vector<1x128xf32> to vector<8x128xf32>
    %620 = arith.addf %618, %619 : vector<8x128xf32>
    %621 = vector.extract_strided_slice %620 {offsets = [0, 0], sizes = [8, 32], strides = [1, 1]} : vector<8x128xf32> to vector<8x32xf32>
    %622 = vector.extract_strided_slice %620 {offsets = [0, 32], sizes = [8, 32], strides = [1, 1]} : vector<8x128xf32> to vector<8x32xf32>
    %623 = vector.extract_strided_slice %620 {offsets = [0, 64], sizes = [8, 32], strides = [1, 1]} : vector<8x128xf32> to vector<8x32xf32>
    %624 = vector.extract_strided_slice %620 {offsets = [0, 96], sizes = [8, 32], strides = [1, 1]} : vector<8x128xf32> to vector<8x32xf32>
    %625 = arith.mulf %622, %586 : vector<8x32xf32>
    %626 = arith.mulf %621, %623 : vector<8x32xf32>
    %627 = arith.addf %625, %626 : vector<8x32xf32>
    %628 = math.tanh %627 : vector<8x32xf32>
    %629 = arith.mulf %624, %628 : vector<8x32xf32>
    %630 = vector.extract_strided_slice %610 {offsets = [0, 640], sizes = [8, 128], strides = [1, 1]} : vector<8x768xf32> to vector<8x128xf32>
    %631 = vector.broadcast %21 : vector<1x128xf32> to vector<8x128xf32>
    %632 = arith.addf %630, %631 : vector<8x128xf32>
    %633 = vector.broadcast %19 : vector<1x128xf32> to vector<8x128xf32>
    %634 = arith.mulf %632, %633 : vector<8x128xf32>
    %635 = math.tanh %634 : vector<8x128xf32>
    %636 = vector.broadcast %19 : vector<1x128xf32> to vector<8x128xf32>
    %637 = arith.mulf %635, %636 : vector<8x128xf32>
    %638 = vector.broadcast %20 : vector<1x128xf32> to vector<8x128xf32>
    %639 = arith.addf %637, %638 : vector<8x128xf32>
    %640 = vector.extract_strided_slice %639 {offsets = [0, 0], sizes = [8, 32], strides = [1, 1]} : vector<8x128xf32> to vector<8x32xf32>
    %641 = vector.extract_strided_slice %639 {offsets = [0, 32], sizes = [8, 32], strides = [1, 1]} : vector<8x128xf32> to vector<8x32xf32>
    %642 = vector.extract_strided_slice %639 {offsets = [0, 64], sizes = [8, 32], strides = [1, 1]} : vector<8x128xf32> to vector<8x32xf32>
    %643 = vector.extract_strided_slice %639 {offsets = [0, 96], sizes = [8, 32], strides = [1, 1]} : vector<8x128xf32> to vector<8x32xf32>
    %644 = arith.mulf %641, %605 : vector<8x32xf32>
    %645 = arith.mulf %640, %642 : vector<8x32xf32>
    %646 = arith.addf %644, %645 : vector<8x32xf32>
    %647 = math.tanh %646 : vector<8x32xf32>
    %648 = arith.mulf %643, %647 : vector<8x32xf32>
    %649 = tpu.concatenate %490, %569, %629, %648 in 1 : vector<8x64xf32>, vector<8x64xf32>, vector<8x32xf32>, vector<8x32xf32> -> vector<8x192xf32>
    %c0_68 = arith.constant 0 : index
    %c0_69 = arith.constant 0 : index
    %650 = vector.load %arg1[%c0_68, %c0_69] : memref<204x768xf32, #tpu.memory_space<vmem>>, vector<192x768xf32>
    %cst_70 = arith.constant dense<0.000000e+00> : vector<8x768xf32>
    %651 = tpu.matmul %649, %650, %cst_70 {dimension_numbers = #tpu.dot_dimension_numbers<[1], [0], [0], [1], [0, 0, 1, 1], [], []>} : vector<8x192xf32>, vector<192x768xf32>, vector<8x768xf32> -> vector<8x768xf32>
    %652 = vector.extract_strided_slice %651 {offsets = [0, 640], sizes = [8, 128], strides = [1, 1]} : vector<8x768xf32> to vector<8x128xf32>
    %653 = vector.broadcast %21 : vector<1x128xf32> to vector<8x128xf32>
    %654 = arith.addf %652, %653 : vector<8x128xf32>
    %655 = vector.broadcast %19 : vector<1x128xf32> to vector<8x128xf32>
    %656 = arith.mulf %654, %655 : vector<8x128xf32>
    %657 = math.tanh %656 : vector<8x128xf32>
    %658 = vector.broadcast %19 : vector<1x128xf32> to vector<8x128xf32>
    %659 = arith.mulf %657, %658 : vector<8x128xf32>
    %660 = vector.broadcast %20 : vector<1x128xf32> to vector<8x128xf32>
    %661 = arith.addf %659, %660 : vector<8x128xf32>
    %662 = vector.extract_strided_slice %661 {offsets = [0, 0], sizes = [8, 32], strides = [1, 1]} : vector<8x128xf32> to vector<8x32xf32>
    %663 = vector.extract_strided_slice %661 {offsets = [0, 32], sizes = [8, 32], strides = [1, 1]} : vector<8x128xf32> to vector<8x32xf32>
    %664 = vector.extract_strided_slice %661 {offsets = [0, 64], sizes = [8, 32], strides = [1, 1]} : vector<8x128xf32> to vector<8x32xf32>
    %665 = vector.extract_strided_slice %661 {offsets = [0, 96], sizes = [8, 32], strides = [1, 1]} : vector<8x128xf32> to vector<8x32xf32>
    %666 = arith.mulf %663, %646 : vector<8x32xf32>
    %667 = arith.mulf %662, %664 : vector<8x32xf32>
    %668 = arith.addf %666, %667 : vector<8x32xf32>
    %669 = math.tanh %668 : vector<8x32xf32>
    %670 = arith.mulf %665, %669 : vector<8x32xf32>
    %671 = tpu.concatenate %231, %310, %389, %468, %547, %607, %648, %670 in 0 : vector<8x32xf32>, vector<8x32xf32>, vector<8x32xf32>, vector<8x32xf32>, vector<8x32xf32>, vector<8x32xf32>, vector<8x32xf32>, vector<8x32xf32> -> vector<64x32xf32>
    %c0_i32_71 = arith.constant 0 : i32
    %672 = tpu.memref_slice %arg8[%c0_i32_71] : memref<2x!tpu.dma_semaphore, #tpu.memory_space<semaphore_mem>> -> memref<1x!tpu.dma_semaphore, #tpu.memory_space<semaphore_mem>>
    %673 = tpu.memref_squeeze %672 : memref<1x!tpu.dma_semaphore, #tpu.memory_space<semaphore_mem>> -> memref<!tpu.dma_semaphore, #tpu.memory_space<semaphore_mem>>
    tpu.wait_dma2 semaphore(%673 : memref<!tpu.dma_semaphore, #tpu.memory_space<semaphore_mem>>) src(%arg2 : memref<136x128xf32, #tpu.memory_space<any>>) dst(%arg6 : memref<136x128xf32, #tpu.memory_space<vmem>>)
    %c1_i32_72 = arith.constant 1 : i32
    %674 = tpu.memref_slice %arg8[%c1_i32_72] : memref<2x!tpu.dma_semaphore, #tpu.memory_space<semaphore_mem>> -> memref<1x!tpu.dma_semaphore, #tpu.memory_space<semaphore_mem>>
    %675 = tpu.memref_squeeze %674 : memref<1x!tpu.dma_semaphore, #tpu.memory_space<semaphore_mem>> -> memref<!tpu.dma_semaphore, #tpu.memory_space<semaphore_mem>>
    tpu.wait_dma2 semaphore(%675 : memref<!tpu.dma_semaphore, #tpu.memory_space<semaphore_mem>>) src(%arg3 : memref<296x128xf32, #tpu.memory_space<any>>) dst(%arg7 : memref<296x128xf32, #tpu.memory_space<vmem>>)
    %c0_73 = arith.constant 0 : index
    %c0_74 = arith.constant 0 : index
    %676 = vector.load %arg6[%c0_73, %c0_74] : memref<136x128xf32, #tpu.memory_space<vmem>>, vector<32x32xf32>
    %c32_75 = arith.constant 32 : index
    %c0_76 = arith.constant 0 : index
    %677 = vector.load %arg6[%c32_75, %c0_76] : memref<136x128xf32, #tpu.memory_space<vmem>>, vector<32x32xf32>
    %c64 = arith.constant 64 : index
    %c0_77 = arith.constant 0 : index
    %678 = vector.load %arg6[%c64, %c0_77] : memref<136x128xf32, #tpu.memory_space<vmem>>, vector<32x32xf32>
    %c96 = arith.constant 96 : index
    %c0_78 = arith.constant 0 : index
    %679 = vector.load %arg6[%c96, %c0_78] : memref<136x128xf32, #tpu.memory_space<vmem>>, vector<32x32xf32>
    %c128 = arith.constant 128 : index
    %c0_79 = arith.constant 0 : index
    %680 = vector.load %arg6[%c128, %c0_79] : memref<136x128xf32, #tpu.memory_space<vmem>>, vector<1x32xf32>
    %c129 = arith.constant 129 : index
    %c0_80 = arith.constant 0 : index
    %681 = vector.load %arg6[%c129, %c0_80] : memref<136x128xf32, #tpu.memory_space<vmem>>, vector<1x32xf32>
    %c130 = arith.constant 130 : index
    %c0_81 = arith.constant 0 : index
    %682 = vector.load %arg6[%c130, %c0_81] : memref<136x128xf32, #tpu.memory_space<vmem>>, vector<1x32xf32>
    %c131 = arith.constant 131 : index
    %c0_82 = arith.constant 0 : index
    %683 = vector.load %arg6[%c131, %c0_82] : memref<136x128xf32, #tpu.memory_space<vmem>>, vector<1x32xf32>
    %684 = vector.extract_strided_slice %671 {offsets = [56, 0], sizes = [8, 32], strides = [1, 1]} : vector<64x32xf32> to vector<8x32xf32>
    %cst_83 = arith.constant dense<0.000000e+00> : vector<8x32xf32>
    %685 = tpu.matmul %684, %676, %cst_83 {dimension_numbers = #tpu.dot_dimension_numbers<[1], [0], [0], [1], [0, 0, 1, 1], [], []>} : vector<8x32xf32>, vector<32x32xf32>, vector<8x32xf32> -> vector<8x32xf32>
    %686 = vector.broadcast %680 : vector<1x32xf32> to vector<8x32xf32>
    %687 = arith.addf %685, %686 : vector<8x32xf32>
    %cst_84 = arith.constant dense<0.000000e+00> : vector<64x32xf32>
    %688 = tpu.matmul %671, %677, %cst_84 {dimension_numbers = #tpu.dot_dimension_numbers<[1], [0], [0], [1], [0, 0, 1, 1], [], []>} : vector<64x32xf32>, vector<32x32xf32>, vector<64x32xf32> -> vector<64x32xf32>
    %689 = vector.broadcast %681 : vector<1x32xf32> to vector<64x32xf32>
    %690 = arith.addf %688, %689 : vector<64x32xf32>
    %cst_85 = arith.constant dense<0.000000e+00> : vector<64x32xf32>
    %691 = tpu.matmul %671, %678, %cst_85 {dimension_numbers = #tpu.dot_dimension_numbers<[1], [0], [0], [1], [0, 0, 1, 1], [], []>} : vector<64x32xf32>, vector<32x32xf32>, vector<64x32xf32> -> vector<64x32xf32>
    %692 = vector.broadcast %682 : vector<1x32xf32> to vector<64x32xf32>
    %693 = arith.addf %691, %692 : vector<64x32xf32>
    %694 = tpu.iota {dimensions = array<i32: 0>} : vector<32x4xi32>
    %695 = tpu.iota {dimensions = array<i32: 1>} : vector<32x4xi32>
    %c8_i32 = arith.constant 8 : i32
    %696 = vector.broadcast %c8_i32 : i32 to vector<32x4xi32>
    %697 = arith.muli %695, %696 : vector<32x4xi32>
    %698 = arith.cmpi sge, %694, %697 : vector<32x4xi32>
    %c1_i32_86 = arith.constant 1 : i32
    %699 = vector.broadcast %c1_i32_86 : i32 to vector<32x4xi32>
    %700 = arith.addi %695, %699 : vector<32x4xi32>
    %c8_i32_87 = arith.constant 8 : i32
    %701 = vector.broadcast %c8_i32_87 : i32 to vector<32x4xi32>
    %702 = arith.muli %700, %701 : vector<32x4xi32>
    %703 = arith.cmpi slt, %694, %702 : vector<32x4xi32>
    %704 = arith.andi %698, %703 : vector<32x4xi1>
    %705 = arith.extui %704 : vector<32x4xi1> to vector<32x4xi32>
    %706 = arith.sitofp %705 : vector<32x4xi32> to vector<32x4xf32>
    %707 = tpu.iota {dimensions = array<i32: 0>} : vector<4x32xi32>
    %708 = tpu.iota {dimensions = array<i32: 1>} : vector<4x32xi32>
    %c8_i32_88 = arith.constant 8 : i32
    %709 = vector.broadcast %c8_i32_88 : i32 to vector<4x32xi32>
    %710 = arith.muli %707, %709 : vector<4x32xi32>
    %711 = arith.cmpi sge, %708, %710 : vector<4x32xi32>
    %c1_i32_89 = arith.constant 1 : i32
    %712 = vector.broadcast %c1_i32_89 : i32 to vector<4x32xi32>
    %713 = arith.addi %707, %712 : vector<4x32xi32>
    %c8_i32_90 = arith.constant 8 : i32
    %714 = vector.broadcast %c8_i32_90 : i32 to vector<4x32xi32>
    %715 = arith.muli %713, %714 : vector<4x32xi32>
    %716 = arith.cmpi slt, %708, %715 : vector<4x32xi32>
    %717 = arith.andi %711, %716 : vector<4x32xi1>
    %718 = arith.extui %717 : vector<4x32xi1> to vector<4x32xi32>
    %719 = arith.sitofp %718 : vector<4x32xi32> to vector<4x32xf32>
    %720 = tpu.iota {dimensions = array<i32: 0>} : vector<64x8xi32>
    %721 = tpu.iota {dimensions = array<i32: 1>} : vector<64x8xi32>
    %c7_i32 = arith.constant 7 : i32
    %722 = vector.broadcast %c7_i32 : i32 to vector<64x8xi32>
    %723 = arith.andi %720, %722 : vector<64x8xi32>
    %724 = arith.cmpi eq, %723, %721 : vector<64x8xi32>
    %725 = arith.extui %724 : vector<64x8xi1> to vector<64x8xi32>
    %726 = arith.sitofp %725 : vector<64x8xi32> to vector<64x8xf32>
    %727 = tpu.iota {dimensions = array<i32: 0>} : vector<8x64xi32>
    %728 = tpu.iota {dimensions = array<i32: 1>} : vector<8x64xi32>
    %c7_i32_91 = arith.constant 7 : i32
    %729 = vector.broadcast %c7_i32_91 : i32 to vector<8x64xi32>
    %730 = arith.andi %728, %729 : vector<8x64xi32>
    %731 = arith.cmpi eq, %730, %727 : vector<8x64xi32>
    %732 = arith.extui %731 : vector<8x64xi1> to vector<8x64xi32>
    %733 = arith.sitofp %732 : vector<8x64xi32> to vector<8x64xf32>
    %cst_92 = arith.constant dense<0.000000e+00> : vector<64x32xf32>
    %734 = tpu.matmul %726, %687, %cst_92 {dimension_numbers = #tpu.dot_dimension_numbers<[1], [0], [0], [1], [0, 0, 1, 1], [], []>} : vector<64x8xf32>, vector<8x32xf32>, vector<64x32xf32> -> vector<64x32xf32>
    %735 = arith.mulf %690, %734 : vector<64x32xf32>
    %cst_93 = arith.constant dense<0.000000e+00> : vector<64x4xf32>
    %736 = tpu.matmul %735, %706, %cst_93 {dimension_numbers = #tpu.dot_dimension_numbers<[1], [0], [0], [1], [0, 0, 1, 1], [], []>} : vector<64x32xf32>, vector<32x4xf32>, vector<64x4xf32> -> vector<64x4xf32>
    %cst_94 = arith.constant 0.353553385 : f32
    %737 = vector.broadcast %cst_94 : f32 to vector<64x4xf32>
    %738 = arith.mulf %736, %737 : vector<64x4xf32>
    %cst_95 = arith.constant dense<0xFF800000> : vector<64xf32>
    %739 = vector.multi_reduction <maximumf>, %738, %cst_95 [1] : vector<64x4xf32> to vector<64xf32>
    %740 = vector.shape_cast %739 : vector<64xf32> to vector<64x1xf32>
    %cst_96 = arith.constant dense<0xFF800000> : vector<1xf32>
    %741 = vector.multi_reduction <maximumf>, %740, %cst_96 [0] : vector<64x1xf32> to vector<1xf32>
    %742 = vector.shape_cast %741 : vector<1xf32> to vector<1x1xf32>
    %743 = vector.broadcast %742 : vector<1x1xf32> to vector<64x4xf32>
    %744 = arith.subf %738, %743 : vector<64x4xf32>
    %745 = math.exp %744 : vector<64x4xf32>
    %cst_97 = arith.constant dense<0.000000e+00> : vector<64x32xf32>
    %746 = tpu.matmul %745, %719, %cst_97 {dimension_numbers = #tpu.dot_dimension_numbers<[1], [0], [0], [1], [0, 0, 1, 1], [], []>} : vector<64x4xf32>, vector<4x32xf32>, vector<64x32xf32> -> vector<64x32xf32>
    %747 = arith.mulf %746, %693 : vector<64x32xf32>
    %cst_98 = arith.constant dense<0.000000e+00> : vector<8x32xf32>
    %748 = tpu.matmul %733, %747, %cst_98 {dimension_numbers = #tpu.dot_dimension_numbers<[1], [0], [0], [1], [0, 0, 1, 1], [], []>} : vector<8x64xf32>, vector<64x32xf32>, vector<8x32xf32> -> vector<8x32xf32>
    %cst_99 = arith.constant dense<0.000000e+00> : vector<8x4xf32>
    %749 = tpu.matmul %733, %745, %cst_99 {dimension_numbers = #tpu.dot_dimension_numbers<[1], [0], [0], [1], [0, 0, 1, 1], [], []>} : vector<8x64xf32>, vector<64x4xf32>, vector<8x4xf32> -> vector<8x4xf32>
    %cst_100 = arith.constant dense<0.000000e+00> : vector<8x32xf32>
    %750 = tpu.matmul %749, %719, %cst_100 {dimension_numbers = #tpu.dot_dimension_numbers<[1], [0], [0], [1], [0, 0, 1, 1], [], []>} : vector<8x4xf32>, vector<4x32xf32>, vector<8x32xf32> -> vector<8x32xf32>
    %751 = arith.divf %748, %750 : vector<8x32xf32>
    %cst_101 = arith.constant dense<0.000000e+00> : vector<8x32xf32>
    %752 = tpu.matmul %751, %679, %cst_101 {dimension_numbers = #tpu.dot_dimension_numbers<[1], [0], [0], [1], [0, 0, 1, 1], [], []>} : vector<8x32xf32>, vector<32x32xf32>, vector<8x32xf32> -> vector<8x32xf32>
    %753 = vector.broadcast %683 : vector<1x32xf32> to vector<8x32xf32>
    %754 = arith.addf %752, %753 : vector<8x32xf32>
    %c0_102 = arith.constant 0 : index
    %c0_103 = arith.constant 0 : index
    %755 = vector.load %arg7[%c0_102, %c0_103] : memref<296x128xf32, #tpu.memory_space<vmem>>, vector<32x128xf32>
    %c32_104 = arith.constant 32 : index
    %c0_105 = arith.constant 0 : index
    %756 = vector.load %arg7[%c32_104, %c0_105] : memref<296x128xf32, #tpu.memory_space<vmem>>, vector<128x128xf32>
    %c160 = arith.constant 160 : index
    %c0_106 = arith.constant 0 : index
    %757 = vector.load %arg7[%c160, %c0_106] : memref<296x128xf32, #tpu.memory_space<vmem>>, vector<128x128xf32>
    %c288 = arith.constant 288 : index
    %c0_107 = arith.constant 0 : index
    %758 = vector.load %arg7[%c288, %c0_107] : memref<296x128xf32, #tpu.memory_space<vmem>>, vector<1x128xf32>
    %c289 = arith.constant 289 : index
    %c0_108 = arith.constant 0 : index
    %759 = vector.load %arg7[%c289, %c0_108] : memref<296x128xf32, #tpu.memory_space<vmem>>, vector<1x128xf32>
    %c290 = arith.constant 290 : index
    %c0_109 = arith.constant 0 : index
    %760 = vector.load %arg7[%c290, %c0_109] : memref<296x128xf32, #tpu.memory_space<vmem>>, vector<1x128xf32>
    %cst_110 = arith.constant dense<0.000000e+00> : vector<8x128xf32>
    %761 = tpu.matmul %754, %755, %cst_110 {dimension_numbers = #tpu.dot_dimension_numbers<[1], [0], [0], [1], [0, 0, 1, 1], [], []>} : vector<8x32xf32>, vector<32x128xf32>, vector<8x128xf32> -> vector<8x128xf32>
    %762 = vector.broadcast %758 : vector<1x128xf32> to vector<8x128xf32>
    %763 = arith.addf %761, %762 : vector<8x128xf32>
    %cst_111 = arith.constant 0.000000e+00 : f32
    %764 = vector.broadcast %cst_111 : f32 to vector<8x128xf32>
    %765 = arith.maximumf %763, %764 : vector<8x128xf32>
    %cst_112 = arith.constant dense<0.000000e+00> : vector<8x128xf32>
    %766 = tpu.matmul %765, %756, %cst_112 {dimension_numbers = #tpu.dot_dimension_numbers<[1], [0], [0], [1], [0, 0, 1, 1], [], []>} : vector<8x128xf32>, vector<128x128xf32>, vector<8x128xf32> -> vector<8x128xf32>
    %767 = vector.broadcast %759 : vector<1x128xf32> to vector<8x128xf32>
    %768 = arith.addf %766, %767 : vector<8x128xf32>
    %cst_113 = arith.constant 0.000000e+00 : f32
    %769 = vector.broadcast %cst_113 : f32 to vector<8x128xf32>
    %770 = arith.maximumf %768, %769 : vector<8x128xf32>
    %cst_114 = arith.constant dense<0.000000e+00> : vector<8x128xf32>
    %771 = tpu.matmul %770, %757, %cst_114 {dimension_numbers = #tpu.dot_dimension_numbers<[1], [0], [0], [1], [0, 0, 1, 1], [], []>} : vector<8x128xf32>, vector<128x128xf32>, vector<8x128xf32> -> vector<8x128xf32>
    %772 = vector.broadcast %760 : vector<1x128xf32> to vector<8x128xf32>
    %773 = arith.addf %771, %772 : vector<8x128xf32>
    %774 = tpu.iota {dimensions = array<i32: 1>} : vector<8x128xi32>
    %c1_i32_115 = arith.constant 1 : i32
    %775 = vector.broadcast %c1_i32_115 : i32 to vector<8x128xi32>
    %776 = arith.cmpi slt, %774, %775 : vector<8x128xi32>
    %cst_116 = arith.constant 0.000000e+00 : f32
    %777 = vector.broadcast %cst_116 : f32 to vector<8x128xf32>
    %778 = arith.maximumf %773, %777 : vector<8x128xf32>
    %779 = arith.negf %773 : vector<8x128xf32>
    %780 = math.exp %779 : vector<8x128xf32>
    %cst_117 = arith.constant 1.000000e+00 : f32
    %781 = vector.broadcast %cst_117 : f32 to vector<8x128xf32>
    %782 = arith.addf %781, %780 : vector<8x128xf32>
    %783 = arith.divf %781, %782 : vector<8x128xf32>
    %784 = arith.select %776, %778, %783 : vector<8x128xi1>, vector<8x128xf32>
    %c0_118 = arith.constant 0 : index
    %c0_119 = arith.constant 0 : index
    %785 = vector.load %arg4[%c0_118, %c0_119] : memref<8x128xf32, #tpu.memory_space<vmem>>, vector<8x128xf32>
    tpu.vector_store %arg4[%c0_118, %c0_119], %784 {strides = array<i32>} : memref<8x128xf32, #tpu.memory_space<vmem>>, vector<8x128xf32>,
    return
  }
}

</mosaic_0001>

<bundles_post_ra>
// kernel: tpu_custom_call.1
= control target key start
LH: loop header
LB: loop body
LE: loop exit
PB: predicated region body
PF: predicated region fallthrough
CT: control target
= control target key end

     0   :  { %9 = vsyncpa [#allocation7], 0  ;;  %s8296_s0 = inlined_call_operand.vmem [shape: f32[64,8], index: 0, kind: input, shape index: {}]   ;;  %s8297_s1 = inlined_call_operand.hbm [shape: f32[204,768], index: 1, kind: input, shape index: {}]   ;;  %s8298_s2 = inlined_call_operand.hbm [shape: f32[136,128], index: 2, kind: input, shape index: {}]   ;;  %s8299_s3 = inlined_call_operand.hbm [shape: f32[296,128], index: 3, kind: input, shape index: {}]   ;;  %s8300_s4 = inlined_call_operand.hbm [shape: f32[8,128], index: 4, kind: output, shape index: {}]  }
   0x1   :  { %10 = vsyncpa [#allocation8], 0  ;;  %s6635_s15 = smov [#allocation6]   ;;  %s6539_s19 = scalar_lea.hbm %s8297_s1, 19968 }
   0x2   :  { %s18_s16 = sshll.u32 %s6635_s15, 4  ;;  %p6540_p0 = scmp.ne.s32.totalorder %s8297_s1, %s6539_s19  ;;  %s19_s16 = int_to_ptr.vmem [resolvable:$true] %s18_s16 }
   0x3   :  { %p6543_p1 = scmp.lt.u32.totalorder %s6539_s19, %s8297_s1 }
   0x5   :  { %p6545_p2 = pnand %p6543_p1, %p6540_p0 }
   0x7   :  { %6548 = shalt.err (!%p6545_p2)
}
   0x8   :  { %s6549_s24 = scalar_lea.vmem %s19_s16, 19968  ;;  %p6554_p4 = scmp.lt.s32.totalorder %s19_s16, %s19_s16 }
   0x9   :  { %p6550_p3 = scmp.ne.s32.totalorder %s19_s16, %s6549_s24  ;;  %p6555_p5 = scmp.lt.s32.totalorder %s6549_s24, %s6549_s24 }
   0xb   :  { %p6556_p6 = por %p6555_p5, %p6554_p4 }
   0xd   :  { %p6557_p7 = pnand %p6556_p6, %p6550_p3 }
   0xf   :  { %6560 = shalt.err (!%p6557_p7)
}
  0x10   :  { %s6636_s25 = smov 768   ;;  %s6637_s26 = smov 48  }
  0x11   :  { %24 = dma.hbm_to_vmem [thread:$0]  %s8297_s1, 19968, %s19_s16, [#allocation7], %s6636_s25, %s6636_s25, %s6637_s26  }
  0x12   :  { %6627 = dma.done.wait [#allocation7], 19968  }
  0x13   :  { %6628 = vsyncadd [#allocation7], 4294947328  ;;  %v8306_v0 = vmov 0.0   ;;  %v245_v1 = vld [vmem:[#allocation6 + $0x8] sm:$0xff]  ;;  %v251_v2 = vld [vmem:[#allocation6 + $0x38] sm:$0xff]  ;;  %vm74_vm0 = vcmask 64512  }
  0x14   :  { %163 = vmatprep.mubr.f32.mxu1 %v8306_v0  ;;  %456 = vmatprep.mubr.f32.mxu0 %v8306_v0  ;;  %v244_v3 = vld [vmem:[#allocation6] sm:$0xff]  ;;  %v6686_v4 = vpack.c.bf16 %v251_v2, %v245_v1  ;;  %v250_v5 = vld [vmem:[#allocation6 + $0x30] sm:$0xff]  ;;  %v257_v6 = vld [vmem:[#allocation6 + $0x68] sm:$0xff]  ;;  %s6639_s30 = smov 64   ;;  %vm388_vm1 = vcmask 523264   ;;  %vm1014_vm2 = vcmask 261120  }
  0x15   :  { %v263_v7 = vld [vmem:[#allocation6 + $0x98] sm:$0xff]  ;;  %v6688_v8 = vpack.c.bf16 %v250_v5, %v244_v3  ;;  %v256_v10 = vld [vmem:[#allocation6 + $0x60] sm:$0xff]  ;;  %v262_v11 = vld [vmem:[#allocation6 + $0x90] sm:$0xff]  ;;  %s6641_s19 = smov [#allocation3]   ;;  %s6642_s21 = smov [#allocation4]  }
  0x16   :  { %8524 = vst [vmem:[#allocation20_spill] sm:$0xff] %v6686_v4  ;;  %v6690_v9 = vpack.c.bf16 %v263_v7, %v257_v6  ;;  %v269_v12 = vld [vmem:[#allocation6 + $0xc8] sm:$0xff]  ;;  %4994 = vmatprep.subr.bf16.mxu0 %v6686_v4  ;;  %v275_v13 = vld [vmem:[#allocation6 + $0xf8] sm:$0xff]  ;;  %v6694_v14 = vpack.c.bf16 %v262_v11, %v256_v10  ;;  %v268_v16 = vld [vmem:[#allocation6 + $0xc0] sm:$0xff]  ;;  %s35_s20 = sshll.u32 %s6641_s19, 4  ;;  %s47_s22 = sshll.u32 %s6642_s21, 4  ;;  %s36_s20 = int_to_ptr.vmem [resolvable:$true] %s35_s20  ;;  %s48_s22 = int_to_ptr.vmem [resolvable:$true] %s47_s22 }
  0x17   :  { %8525 = vst [vmem:[#allocation21_spill] sm:$0xff] %v6688_v8  ;;  %4996 = vmatpush1.bf16.msra.mxu0 %v6688_v8  ;;  %v6697_v15 = vpack.c.bf16 %v275_v13, %v269_v12  ;;  %v274_v17 = vld [vmem:[#allocation6 + $0xf0] sm:$0xff]  ;;  %v281_v18 = vld [vmem:[#allocation6 + $0x128] sm:$0xff]  ;;  %v287_v19 = vld [vmem:[#allocation6 + $0x158] sm:$0xff]  ;;  %s6561_s25 = scalar_lea.hbm %s8298_s2, 2176 }
  0x18   :  { %8526 = vst [vmem:[#allocation22_spill] sm:$0xff] %v6690_v9  ;;  %8527 = vst [vmem:[#allocation23_spill] sm:$0xff] %v6694_v14  ;;  %4998 = vmatprep.subr.bf16.mxu0 %v6690_v9  ;;  %v6700_v20 = vpack.c.bf16 %v274_v17, %v268_v16  ;;  %v6703_v21 = vpack.c.bf16 %v287_v19, %v281_v18  ;;  %v280_v22 = vld [vmem:[#allocation6 + $0x120] sm:$0xff]  ;;  %v286_v23 = vld [vmem:[#allocation6 + $0x150] sm:$0xff]  ;;  %p6562_p8 = scmp.ne.s32.totalorder %s8298_s2, %s6561_s25  ;;  %p6565_p9 = scmp.lt.u32.totalorder %s6561_s25, %s8298_s2 }
  0x19   :  { %8528 = vst [vmem:[#allocation24_spill] sm:$0xff] %v6697_v15  ;;  %v293_v24 = vld [vmem:[#allocation6 + $0x188] sm:$0xff]  ;;  %v299_v25 = vld [vmem:[#allocation6 + $0x1b8] sm:$0xff]  ;;  %v6706_v26 = vpack.c.bf16 %v286_v23, %v280_v22  ;;  %v292_v28 = vld [vmem:[#allocation6 + $0x180] sm:$0xff]  ;;  %v8301_v22 = vlaneseq }
  0x1a   :  { %8529 = vst [vmem:[#allocation25_spill] sm:$0xff] %v6700_v20  ;;  %8530 = vst [vmem:[#allocation26_spill] sm:$0xff] %v6703_v21  ;;  %v6709_v27 = vpack.c.bf16 %v299_v25, %v293_v24  ;;  %v298_v29 = vld [vmem:[#allocation6 + $0x1b0] sm:$0xff]  ;;  %v305_v30 = vld [vmem:[#allocation6 + $0x1e8] sm:$0xff]  ;;  %p6567_p10 = pnand %p6565_p9, %p6562_p8 }
  0x1b   :  { %5000 = vmatpush1.bf16.msra.mxu0 %v6694_v14  ;;  %8531 = vst [vmem:[#allocation27_spill] sm:$0xff] %v6706_v26  ;;  %v311_v31 = vld [vmem:[#allocation6 + $0x218] sm:$0xff]  ;;  %v52_v32 = vld [vmem:[#allocation6 + $0x488] sm:$0xff]  ;;  %v51_v33 = vld [vmem:[#allocation6 + $0x480] sm:$0xff]  ;;  %v6712_v34 = vpack.c.bf16 %v298_v29, %v292_v28  ;;  %v6791_v23 = vshrl.u32 %v8301_v22, 7 }
  0x1c   :  { %5002 = vmatprep.subr.bf16.mxu0 %v6697_v15  ;;  %8532 = vst [vmem:[#allocation28_spill] sm:$0xff] %v6709_v27  ;;  %99 = vmatprep.subr.mxu1 %v52_v32  ;;  %v55_v35 = vld [vmem:[%s8296_s0] sm:$0xff]  ;;  %v6718_v36 = vpack.c.bf16 %v311_v31, %v305_v30  ;;  %v304_v37 = vld [vmem:[#allocation6 + $0x1e0] sm:$0xff]  ;;  %v317_v39 = vld [vmem:[#allocation6 + $0x248] sm:$0xff] }
  0x1d   :  { %8533 = vst [vmem:[#allocation29_spill] sm:$0xff] %v6712_v34  ;;  %100 = vmatpush1.msra.mxu1 %v51_v33  ;;  %v310_v38 = vld [vmem:[#allocation6 + $0x210] sm:$0xff]  ;;  %v323_v40 = vld [vmem:[#allocation6 + $0x278] sm:$0xff]  ;;  %v316_v43 = vld [vmem:[#allocation6 + $0x240] sm:$0xff]  ;;  %v6794_v24 = vsub.s32 0, %v6791_v23  ;;  %v6797_v28 = vsub.s32 1, %v6791_v23 }
  0x1e   :  { %8534 = vst [vmem:[#allocation30_spill] sm:$0xff] %v6718_v36  ;;  %4531 = vmatmul.mubr.msk.f32.vlgmr.msra.gmra.mrb[0].mxu1 %vm74_vm0, %v55_v35  ;;  %v6723_v41 = vpack.c.bf16 %v310_v38, %v304_v37  ;;  %v6726_v42 = vpack.c.bf16 %v323_v40, %v317_v39  ;;  %v322_v44 = vld [vmem:[#allocation6 + $0x270] sm:$0xff]  ;;  %v329_v45 = vld [vmem:[#allocation6 + $0x2a8] sm:$0xff]  ;;  %v335_v46 = vld [vmem:[#allocation6 + $0x2d8] sm:$0xff] }
  0x1f   :  { %5004 = vmatpush1.bf16.msra.mxu0 %v6700_v20  ;;  %169 = vmatprep.mubr.f32.mxu1 %v8306_v0  ;;  %v6729_v47 = vpack.c.bf16 %v322_v44, %v316_v43  ;;  %v6732_v48 = vpack.c.bf16 %v335_v46, %v329_v45  ;;  %v328_v49 = vld [vmem:[#allocation6 + $0x2a0] sm:$0xff]  ;;  %v334_v50 = vld [vmem:[#allocation6 + $0x2d0] sm:$0xff]  ;;  %v341_v51 = vld [vmem:[#allocation6 + $0x308] sm:$0xff]  ;;  %8548 = vst [vmem:[#allocation44_spill] sm:$0xff] %v6791_v23 }
  0x20   :  { %5006 = vmatprep.subr.bf16.mxu0 %v6703_v21  ;;  %8535 = vst [vmem:[#allocation31_spill] sm:$0xff] %v6723_v41  ;;  %8536 = vst [vmem:[#allocation32_spill] sm:$0xff] %v6726_v42  ;;  %v347_v52 = vld [vmem:[#allocation6 + $0x338] sm:$0xff]  ;;  %v6735_v53 = vpack.c.bf16 %v334_v50, %v328_v49  ;;  %v340_v55 = vld [vmem:[#allocation6 + $0x300] sm:$0xff] }
  0x21   :  { %8537 = vst [vmem:[#allocation33_spill] sm:$0xff] %v6729_v47  ;;  %8538 = vst [vmem:[#allocation34_spill] sm:$0xff] %v6732_v48  ;;  %v6738_v54 = vpack.c.bf16 %v347_v52, %v341_v51  ;;  %v346_v56 = vld [vmem:[#allocation6 + $0x330] sm:$0xff]  ;;  %v353_v57 = vld [vmem:[#allocation6 + $0x368] sm:$0xff] }
  0x22   :  { %8539 = vst [vmem:[#allocation35_spill] sm:$0xff] %v6735_v53  ;;  %v359_v58 = vld [vmem:[#allocation6 + $0x398] sm:$0xff]  ;;  %v6741_v59 = vpack.c.bf16 %v346_v56, %v340_v55  ;;  %v352_v61 = vld [vmem:[#allocation6 + $0x360] sm:$0xff]  ;;  %v358_v62 = vld [vmem:[#allocation6 + $0x390] sm:$0xff] }
  0x23   :  { %5008 = vmatpush1.bf16.msra.mxu0 %v6706_v26  ;;  %8540 = vst [vmem:[#allocation36_spill] sm:$0xff] %v6738_v54  ;;  %v6744_v60 = vpack.c.bf16 %v359_v58, %v353_v57  ;;  %v365_v63 = vld [vmem:[#allocation6 + $0x3c8] sm:$0xff]  ;;  %v371_v1 = vld [vmem:[#allocation6 + $0x3f8] sm:$0xff]  ;;  %v6747_v2 = vpack.c.bf16 %v358_v62, %v352_v61  ;;  %v364_v5 = vld [vmem:[#allocation6 + $0x3c0] sm:$0xff] }
  0x24   :  { %5010 = vmatprep.subr.bf16.mxu0 %v6709_v27  ;;  %8541 = vst [vmem:[#allocation37_spill] sm:$0xff] %v6741_v59  ;;  %v6750_v3 = vpack.c.bf16 %v371_v1, %v365_v63  ;;  %v370_v6 = vld [vmem:[#allocation6 + $0x3f0] sm:$0xff]  ;;  %v377_v7 = vld [vmem:[#allocation6 + $0x428] sm:$0xff]  ;;  %v383_v10 = vld [vmem:[#allocation6 + $0x458] sm:$0xff] }
  0x25   :  { %8542 = vst [vmem:[#allocation38_spill] sm:$0xff] %v6744_v60  ;;  %8543 = vst [vmem:[#allocation39_spill] sm:$0xff] %v6747_v2  ;;  %v6753_v11 = vpack.c.bf16 %v370_v6, %v364_v5  ;;  %v6756_v12 = vpack.c.bf16 %v383_v10, %v377_v7  ;;  %v376_v13 = vld [vmem:[#allocation6 + $0x420] sm:$0xff]  ;;  %v382_v16 = vld [vmem:[#allocation6 + $0x450] sm:$0xff] }
  0x26   :  { %8544 = vst [vmem:[#allocation40_spill] sm:$0xff] %v6750_v3  ;;  %v6759_v17 = vpack.c.bf16 %v382_v16, %v376_v13  ;;  %v54_v25 = vld [vmem:[#allocation6 + $0x4b0] ss:$8 sm:$0x3]  ;;  %v253_v63 = vld [vmem:[#allocation6 + $0x48] sm:$0xff]  ;;  %v252_v6 = vld [vmem:[#allocation6 + $0x40] sm:$0xff] }
  0x27   :  { %5012 = vmatpush1.bf16.msra.mxu0 %v6712_v34  ;;  %8545 = vst [vmem:[#allocation41_spill] sm:$0xff] %v6753_v11  ;;  %8546 = vst [vmem:[#allocation42_spill] sm:$0xff] %v6756_v12  ;;  %v6800_v29 = vrot.slane %v54_v25, %v6794_v24  ;;  %v6803_v30 = vrot.slane %v54_v25, %v6797_v28  ;;  %v229_v31 = vld [vmem:[#allocation6 + $0x4b2] ss:$8 sm:$0x3]  ;;  %v265_v10 = vld [vmem:[#allocation6 + $0xa8] sm:$0xff] }
  0x28   :  { %5014 = vmatprep.subr.bf16.mxu0 %v6718_v36  ;;  %8547 = vst [vmem:[#allocation43_spill] sm:$0xff] %v6759_v17  ;;  %v6808_v35 = vrot.slane %v229_v31, %v6794_v24  ;;  %v6811_v37 = vrot.slane %v229_v31, %v6797_v28  ;;  %v231_v46 = vld [vmem:[#allocation6 + $0x4b3] ss:$8 sm:$0x3]  ;;  %v277_v31 = vld [vmem:[#allocation6 + $0x108] sm:$0xff]  ;;  %v360_v22 = vld [vmem:[#allocation6 + $0x3a0] sm:$0xff] }
  0x29   :  { %8549 = vst [vmem:[#allocation45_spill] sm:$0xff] %v6800_v29  ;;  %8550 = vst [vmem:[#allocation46_spill] sm:$0xff] %v6803_v30  ;;  %v6816_v49 = vrot.slane %v231_v46, %v6794_v24  ;;  %v6819_v51 = vrot.slane %v231_v46, %v6797_v28  ;;  %v247_v62 = vld [vmem:[#allocation6 + $0x18] sm:$0xff]  ;;  %v246_v1 = vld [vmem:[#allocation6 + $0x10] sm:$0xff] }
  0x2a   :  { %8551 = vst [vmem:[#allocation47_spill] sm:$0xff] %v6808_v35  ;;  %8552 = vst [vmem:[#allocation48_spill] sm:$0xff] %v6811_v37  ;;  %v6832_v5 = vpack.c.bf16 %v253_v63, %v247_v62  ;;  %v259_v7 = vld [vmem:[#allocation6 + $0x78] sm:$0xff]  ;;  %v6834_v13 = vpack.c.bf16 %v252_v6, %v246_v1  ;;  %v57_v46 = vld [vmem:[%s8296_s0 + $0x10] sm:$0xff] }
  0x2b   :  { %5016 = vmatpush1.bf16.msra.mxu0 %v6723_v41  ;;  %8553 = vst [vmem:[#allocation49_spill] sm:$0xff] %v6816_v49  ;;  %8554 = vst [vmem:[#allocation50_spill] sm:$0xff] %v6819_v51  ;;  %v6836_v16 = vpack.c.bf16 %v265_v10, %v259_v7  ;;  %v271_v25 = vld [vmem:[#allocation6 + $0xd8] sm:$0xff]  ;;  %v58_v63 = vld [vmem:[%s8296_s0 + $0x18] sm:$0xff] }
  0x2c   :  { %5018 = vmatprep.subr.bf16.mxu0 %v6726_v42  ;;  %8555 = vst [vmem:[#allocation51_spill] sm:$0xff] %v6832_v5  ;;  %8556 = vst [vmem:[#allocation52_spill] sm:$0xff] %v6834_v13  ;;  %5090 = vmatprep.subr.bf16.mxu1 %v6832_v5  ;;  %v294_v6 = vld [vmem:[#allocation6 + $0x190] sm:$0xff]  ;;  %v300_v7 = vld [vmem:[#allocation6 + $0x1c0] sm:$0xff] }
  0x2d   :  { %8557 = vst [vmem:[#allocation53_spill] sm:$0xff] %v6836_v16  ;;  %5092 = vmatpush1.bf16.msra.mxu1 %v6834_v13  ;;  %v307_v10 = vld [vmem:[#allocation6 + $0x1f8] sm:$0xff] }
  0x2e   :  { %5094 = vmatprep.subr.bf16.mxu1 %v6836_v16 }
  0x2f   :  { %5020 = vmatpush1.bf16.msra.mxu0 %v6729_v47 }
  0x30   :  { %5022 = vmatprep.subr.bf16.mxu0 %v6732_v48 }
  0x33   :  { %5024 = vmatpush1.bf16.msra.mxu0 %v6735_v53 }
  0x34   :  { %5026 = vmatprep.subr.bf16.mxu0 %v6738_v54 }
  0x37   :  { %5028 = vmatpush1.bf16.msra.mxu0 %v6741_v59 }
  0x38   :  { %5030 = vmatprep.subr.bf16.mxu0 %v6744_v60 }
  0x3b   :  { %5032 = vmatpush1.bf16.msra.mxu0 %v6747_v2 }
  0x3c   :  { %5034 = vmatprep.subr.bf16.mxu0 %v6750_v3 }
  0x3f   :  { %5036 = vmatpush1.bf16.msra.mxu0 %v6753_v11 }
  0x40   :  { %5038 = vmatprep.subr.bf16.mxu0 %v6756_v12 }
  0x43   :  { %5040 = vmatpush1.bf16.msra.mxu0 %v6759_v17 }
  0x44   :  { %5042 = vmatprep.subr.bf16.mxu0 %v6686_v4 }
  0x46   :  { %457 = vmatmul.mubr.f32.vlgmr.msra.gmra.mrb[0].mxu0 %v8306_v0 }
  0x47   :  { %5044 = vmatpush1.bf16.msra.mxu0 %v6688_v8  ;;  %575 = vmatprep.mubr.f32.mxu0 %v8306_v0 }
  0x48   :  { %5046 = vmatprep.subr.bf16.mxu0 %v6690_v9 }
  0x4b   :  { %5048 = vmatpush1.bf16.msra.mxu0 %v6694_v14 }
  0x4c   :  { %5050 = vmatprep.subr.bf16.mxu0 %v6697_v15 }
  0x4f   :  { %5052 = vmatpush1.bf16.msra.mxu0 %v6700_v20 }
  0x50   :  { %5054 = vmatprep.subr.bf16.mxu0 %v6703_v21 }
  0x53   :  { %5056 = vmatpush1.bf16.msra.mxu0 %v6706_v26 }
  0x54   :  { %5058 = vmatprep.subr.bf16.mxu0 %v6709_v27 }
  0x57   :  { %5060 = vmatpush1.bf16.msra.mxu0 %v6712_v34 }
  0x58   :  { %5062 = vmatprep.subr.bf16.mxu0 %v6718_v36 }
  0x5b   :  { %5064 = vmatpush1.bf16.msra.mxu0 %v6723_v41 }
  0x5c   :  { %5066 = vmatprep.subr.bf16.mxu0 %v6726_v42 }
  0x5f   :  { %5068 = vmatpush1.bf16.msra.mxu0 %v6729_v47 }
  0x60   :  { %5070 = vmatprep.subr.bf16.mxu0 %v6732_v48 }
  0x63   :  { %5072 = vmatpush1.bf16.msra.mxu0 %v6735_v53 }
  0x64   :  { %5074 = vmatprep.subr.bf16.mxu0 %v6738_v54 }
  0x67   :  { %5076 = vmatpush1.bf16.msra.mxu0 %v6741_v59 }
  0x68   :  { %5078 = vmatprep.subr.bf16.mxu0 %v6744_v60 }
  0x6b   :  { %5080 = vmatpush1.bf16.msra.mxu0 %v6747_v2 }
  0x6c   :  { %5082 = vmatprep.subr.bf16.mxu0 %v6750_v3 }
  0x6f   :  { %5084 = vmatpush1.bf16.msra.mxu0 %v6753_v11 }
  0x70   :  { %5086 = vmatprep.subr.bf16.mxu0 %v6756_v12 }
  0x73   :  { %5088 = vmatpush1.bf16.msra.mxu0 %v6759_v17 }
  0x74   :  { %5138 = vmatprep.subr.bf16.mxu0 %v6686_v4 }
  0xf1   :  { %v165_v18 = vpop.f32.mrb[0].mxu1 }
  0xf2   :  { %v167_v19 = vpop.f32.mrb[1].mxu1  ;;  %v166_v32 = vadd.f32 %v165_v18, %v6800_v29  ;;  %v258_v18 = vld [vmem:[#allocation6 + $0x70] sm:$0xff] }
  0xf3   :  { %v168_v33 = vadd.f32 %v167_v19, %v6803_v30  ;;  %v264_v19 = vld [vmem:[#allocation6 + $0xa0] sm:$0xff] }
 0x119   :  { %v458_v38 = vpop.f32.mrb[0].mxu0 }
 0x11a   :  { %v465_v39 = vadd.f32 %v458_v38, %v166_v32  ;;  %v460_v40 = vpop.f32.mrb[1].mxu0  ;;  %v6840_v32 = vpack.c.bf16 %v264_v19, %v258_v18  ;;  %v270_v38 = vld [vmem:[#allocation6 + $0xd0] sm:$0xff]  ;;  %v313_v18 = vld [vmem:[#allocation6 + $0x228] sm:$0xff]  ;;  %v6872_v19 = vpack.c.bf16 %v300_v7, %v294_v6  ;;  %v61_v7 = vld [vmem:[%s8296_s0 + $0x30] sm:$0xff] }
 0x11b   :  { %v466_v43 = vadd.f32 %v460_v40, %v168_v33  ;;  %v6843_v33 = vpack.c.bf16 %v277_v31, %v271_v25  ;;  %v283_v40 = vld [vmem:[#allocation6 + $0x138] sm:$0xff]  ;;  %v59_v25 = vld [vmem:[%s8296_s0 + $0x20] sm:$0xff]  ;;  %v6879_v31 = vpack.c.bf16 %v313_v18, %v307_v10 }
 0x11c   :  { %v478_v44 = vmul.f32 %v6808_v35, %v465_v39  ;;  %8558 = vst [vmem:[#allocation54_spill] sm:$0xff] %v6840_v32  ;;  %v276_v39 = vld [vmem:[#allocation6 + $0x100] sm:$0xff]  ;;  %5096 = vmatpush1.bf16.msra.mxu1 %v6840_v32  ;;  %8564 = vst [vmem:[#allocation60_spill] sm:$0xff] %v6872_v19  ;;  %v330_v18 = vld [vmem:[#allocation6 + $0x2b0] sm:$0xff] }
 0x11d   :  { %v479_v45 = vmul.f32 %v6811_v37, %v466_v43  ;;  %8559 = vst [vmem:[#allocation55_spill] sm:$0xff] %v6843_v33  ;;  %v289_v43 = vld [vmem:[#allocation6 + $0x168] sm:$0xff]  ;;  %5098 = vmatprep.subr.bf16.mxu1 %v6843_v33  ;;  %8565 = vst [vmem:[#allocation61_spill] sm:$0xff] %v6879_v31 }
 0x11e   :  { %6351 = vtanh.f32 %v478_v44  ;;  %v56_v44 = vld [vmem:[%s8296_s0 + $0x8] sm:$0xff] }
 0x11f   :  { %6353 = vtanh.f32 %v479_v45  ;;  %4532 = vmatmul.mubr.msk.f32.gmra.mrb[2].mxu1 %vm74_vm0, %v56_v44  ;;  %v6850_v45 = vpack.c.bf16 %v276_v39, %v270_v38  ;;  %v306_v38 = vld [vmem:[#allocation6 + $0x1f0] sm:$0xff]  ;;  %v312_v39 = vld [vmem:[#allocation6 + $0x220] sm:$0xff] }
 0x120   :  { %175 = vmatprep.mubr.f32.mxu1 %v8306_v0  ;;  %v6883_v44 = vpack.c.bf16 %v312_v39, %v306_v38  ;;  %v343_v38 = vld [vmem:[#allocation6 + $0x318] sm:$0xff]  ;;  %v349_v39 = vld [vmem:[#allocation6 + $0x348] sm:$0xff] }
 0x121   :  { %8560 = vst [vmem:[#allocation56_spill] sm:$0xff] %v6850_v45  ;;  %5100 = vmatpush1.bf16.msra.mxu1 %v6850_v45 }
 0x122   :  { %8566 = vst [vmem:[#allocation62_spill] sm:$0xff] %v6883_v44 }
 0x123   :  { %4533 = vmatmul.mubr.msk.f32.gmra.mrb[4].mxu1 %vm74_vm0, %v57_v46  ;;  %v60_v46 = vld [vmem:[%s8296_s0 + $0x28] sm:$0xff] }
 0x124   :  { %181 = vmatprep.mubr.f32.mxu1 %v8306_v0 }
 0x127   :  { %4534 = vmatmul.mubr.msk.f32.gmra.mrb[6].mxu1 %vm74_vm0, %v58_v63  ;;  %v337_v63 = vld [vmem:[#allocation6 + $0x2e8] sm:$0xff] }
 0x128   :  { %v6352_v50 = vpop.eup %6351  ;;  %187 = vmatprep.mubr.f32.mxu1 %v8306_v0 }
 0x129   :  { %v6354_v52 = vpop.eup %6353  ;;  %v482_v55 = vmul.f32 %v6352_v50, %v6808_v35  ;;  %v6857_v50 = vpack.c.bf16 %v289_v43, %v283_v40  ;;  %v319_v40 = vld [vmem:[#allocation6 + $0x258] sm:$0xff]  ;;  %v325_v43 = vld [vmem:[#allocation6 + $0x288] sm:$0xff] }
 0x12a   :  { %v483_v56 = vmul.f32 %v6354_v52, %v6811_v37  ;;  %v282_v52 = vld [vmem:[#allocation6 + $0x130] sm:$0xff]  ;;  %v384_v37 = vld [vmem:[#allocation6 + $0x460] sm:$0xff] }
 0x12b   :  { %v6824_v57 = vadd.f32 %v6816_v49, %v482_v55  ;;  %8561 = vst [vmem:[#allocation57_spill] sm:$0xff] %v6857_v50  ;;  %v288_v55 = vld [vmem:[#allocation6 + $0x160] sm:$0xff]  ;;  %5102 = vmatprep.subr.bf16.mxu1 %v6857_v50  ;;  %4535 = vmatmul.mubr.msk.f32.gmra.mrb[8].mxu1 %vm74_vm0, %v59_v25  ;;  %v378_v49 = vld [vmem:[#allocation6 + $0x430] sm:$0xff] }
 0x12c   :  { %v6827_v58 = vadd.f32 %v6819_v51, %v483_v56  ;;  %v295_v56 = vld [vmem:[#allocation6 + $0x198] sm:$0xff]  ;;  %v6861_v62 = vpack.c.bf16 %v288_v55, %v282_v52  ;;  %193 = vmatprep.mubr.f32.mxu1 %v8306_v0  ;;  %v6890_v52 = vpack.c.bf16 %v325_v43, %v319_v40  ;;  %v318_v55 = vld [vmem:[#allocation6 + $0x250] sm:$0xff]  ;;  %v336_v25 = vld [vmem:[#allocation6 + $0x2e0] sm:$0xff] }
 0x12d   :  { %v6905_v40 = vpack.c.bf16 %v336_v25, %v330_v18  ;;  %v62_v43 = vld [vmem:[%s8296_s0 + $0x38] sm:$0xff]  ;;  %v354_v25 = vld [vmem:[#allocation6 + $0x370] sm:$0xff]  ;;  %v379_v51 = vld [vmem:[#allocation6 + $0x438] sm:$0xff]  ;;  %s6640_s0 = smov 32  }
 0x12e   :  { %v498_v61 = vmul.f32 %v6827_v58, %v6824_v57  ;;  %8562 = vst [vmem:[#allocation58_spill] sm:$0xff] %v6861_v62  ;;  %5104 = vmatpush1.bf16.msra.mxu1 %v6861_v62  ;;  %8567 = vst [vmem:[#allocation63_spill] sm:$0xff] %v6890_v52  ;;  %v6923_v23 = vpack.c.bf16 %v360_v22, %v354_v25  ;;  %v6935_v22 = vpack.c.bf16 %v384_v37, %v378_v49 }
 0x12f   :  { %4536 = vmatmul.mubr.msk.f32.gmra.mrb[10].mxu1 %vm74_vm0, %v60_v46  ;;  %8570 = vst [vmem:[#allocation66_spill] sm:$0xff] %v6905_v40  ;;  %v6912_v46 = vpack.c.bf16 %v349_v39, %v343_v38  ;;  %v367_v38 = vld [vmem:[#allocation6 + $0x3d8] sm:$0xff]  ;;  %v373_v39 = vld [vmem:[#allocation6 + $0x408] sm:$0xff]  ;;  %v497_v25 = vmul.f32 0.0, %v6824_v57 }
 0x130   :  { %500 = vrot.lane.b32.xlu0 %v498_v61, %s6639_s30  ;;  %v301_v61 = vld [vmem:[#allocation6 + $0x1c8] sm:$0xff]  ;;  %199 = vmatprep.mubr.f32.mxu1 %v8306_v0  ;;  %8574 = vst [vmem:[#allocation70_spill] sm:$0xff] %v6923_v23  ;;  %8578 = vst [vmem:[#allocation74_spill] sm:$0xff] %v6935_v22 }
 0x131   :  { %v6868_v1 = vpack.c.bf16 %v301_v61, %v295_v56  ;;  %v324_v56 = vld [vmem:[#allocation6 + $0x280] sm:$0xff]  ;;  %v331_v61 = vld [vmem:[#allocation6 + $0x2b8] sm:$0xff]  ;;  %8571 = vst [vmem:[#allocation67_spill] sm:$0xff] %v6912_v46 }
 0x132   :  { %v6894_v6 = vpack.c.bf16 %v324_v56, %v318_v55  ;;  %v6901_v10 = vpack.c.bf16 %v337_v63, %v331_v61  ;;  %v342_v55 = vld [vmem:[#allocation6 + $0x310] sm:$0xff]  ;;  %v348_v56 = vld [vmem:[#allocation6 + $0x340] sm:$0xff]  ;;  %v355_v61 = vld [vmem:[#allocation6 + $0x378] sm:$0xff] }
 0x133   :  { %8563 = vst [vmem:[#allocation59_spill] sm:$0xff] %v6868_v1  ;;  %5106 = vmatprep.subr.bf16.mxu1 %v6868_v1  ;;  %4537 = vmatmul.mubr.msk.f32.gmra.mrb[12].mxu1 %vm74_vm0, %v61_v7  ;;  %v361_v63 = vld [vmem:[#allocation6 + $0x3a8] sm:$0xff]  ;;  %v6916_v7 = vpack.c.bf16 %v348_v56, %v342_v55  ;;  %v366_v55 = vld [vmem:[#allocation6 + $0x3d0] sm:$0xff]  ;;  %v372_v56 = vld [vmem:[#allocation6 + $0x400] sm:$0xff] }
 0x134   :  { %5108 = vmatpush1.bf16.msra.mxu1 %v6872_v19  ;;  %8568 = vst [vmem:[#allocation64_spill] sm:$0xff] %v6894_v6  ;;  %8569 = vst [vmem:[#allocation65_spill] sm:$0xff] %v6901_v10  ;;  %205 = vmatprep.mubr.f32.mxu1 %v8306_v0  ;;  %v6920_v18 = vpack.c.bf16 %v361_v63, %v355_v61  ;;  %v6929_v61 = vpack.c.bf16 %v372_v56, %v366_v55 }
 0x135   :  { %5110 = vmatprep.subr.bf16.mxu1 %v6879_v31  ;;  %8572 = vst [vmem:[#allocation68_spill] sm:$0xff] %v6916_v7 }
 0x136   :  { %8573 = vst [vmem:[#allocation69_spill] sm:$0xff] %v6920_v18  ;;  %8576 = vst [vmem:[#allocation72_spill] sm:$0xff] %v6929_v61 }
 0x137   :  { %4538 = vmatmul.mubr.msk.f32.gmra.mrb[14].mxu1 %vm74_vm0, %v62_v43  ;;  %v6926_v43 = vpack.c.bf16 %v373_v39, %v367_v38 }
 0x138   :  { %5112 = vmatpush1.bf16.msra.mxu1 %v6883_v44  ;;  %646 = vmatprep.mubr.f32.mxu1 %v8306_v0  ;;  %v385_v0 = vld [vmem:[#allocation6 + $0x468] sm:$0xff] }
 0x139   :  { %5114 = vmatprep.subr.bf16.mxu1 %v6890_v52  ;;  %8575 = vst [vmem:[#allocation71_spill] sm:$0xff] %v6926_v43  ;;  %v6932_v63 = vpack.c.bf16 %v385_v0, %v379_v51 }
 0x13b   :  { %8577 = vst [vmem:[#allocation73_spill] sm:$0xff] %v6932_v63 }
 0x13c   :  { %5116 = vmatpush1.bf16.msra.mxu1 %v6894_v6 }
 0x13d   :  { %5118 = vmatprep.subr.bf16.mxu1 %v6901_v10 }
 0x140   :  { %5120 = vmatpush1.bf16.msra.mxu1 %v6905_v40 }
 0x141   :  { %5122 = vmatprep.subr.bf16.mxu1 %v6912_v46 }
 0x144   :  { %5124 = vmatpush1.bf16.msra.mxu1 %v6916_v7 }
 0x145   :  { %5126 = vmatprep.subr.bf16.mxu1 %v6920_v18 }
 0x148   :  { %5128 = vmatpush1.bf16.msra.mxu1 %v6923_v23 }
 0x149   :  { %5130 = vmatprep.subr.bf16.mxu1 %v6926_v43 }
 0x14c   :  { %5132 = vmatpush1.bf16.msra.mxu1 %v6929_v61 }
 0x14d   :  { %5134 = vmatprep.subr.bf16.mxu1 %v6932_v63 }
 0x150   :  { %5136 = vmatpush1.bf16.msra.mxu1 %v6935_v22 }
 0x151   :  { %5186 = vmatprep.subr.bf16.mxu1 %v6832_v5 }
 0x1a2   :  { %v501_v38 = vpop.permute.xlu0 %500 }
 0x1a3   :  { %v6941_v39 = vadd.f32 %v501_v38, %v497_v25 }
 0x1a5   :  { %8579 = vst [vmem:[#allocation75_spill] sm:$0xff] %v6941_v39  ;;  %6355 = vtanh.f32 %v6941_v39 }
 0x1af   :  { %v6356_v0 = vpop.eup %6355 }
 0x1b0   :  { %v505_v51 = vmul.f32 %v6356_v0, %v6827_v58 }
 0x1b2   :  { %507 = vrot.lane.b32.xlu0 %v505_v51, %s6639_s30 }
 0x1f2   :  { %v6946_v37 = vpop.f32.mrb[2].mxu1 }
 0x1f3   :  { %v6948_v49 = vpop.f32.mrb[3].mxu1 }
 0x1f6   :  { %v6950_v55 = vpop.f32.mrb[4].mxu1 }
 0x1f7   :  { %8580 = vst [vmem:[#allocation76_spill] sm:$0xff] %v6950_v55  ;;  %v6952_v56 = vpop.f32.mrb[5].mxu1 }
 0x1f8   :  { %8581 = vst [vmem:[#allocation77_spill] sm:$0xff] %v6952_v56 }
 0x1fa   :  { %v6954_v5 = vpop.f32.mrb[6].mxu1 }
 0x1fb   :  { %8582 = vst [vmem:[#allocation78_spill] sm:$0xff] %v6954_v5  ;;  %v6956_v57 = vpop.f32.mrb[7].mxu1 }
 0x1fc   :  { %8583 = vst [vmem:[#allocation79_spill] sm:$0xff] %v6956_v57 }
 0x1fe   :  { %v6958_v25 = vpop.f32.mrb[8].mxu1 }
 0x1ff   :  { %8584 = vst [vmem:[#allocation80_spill] sm:$0xff] %v6958_v25  ;;  %v6960_v38 = vpop.f32.mrb[9].mxu1 }
 0x200   :  { %8585 = vst [vmem:[#allocation81_spill] sm:$0xff] %v6960_v38 }
 0x202   :  { %v6962_v39 = vpop.f32.mrb[10].mxu1 }
 0x203   :  { %8586 = vst [vmem:[#allocation82_spill] sm:$0xff] %v6962_v39  ;;  %v6964_v58 = vpop.f32.mrb[11].mxu1 }
 0x204   :  { %8587 = vst [vmem:[#allocation83_spill] sm:$0xff] %v6964_v58  ;;  %v174_v58 = vadd.f32 %v6948_v49, %v6803_v30  ;;  %v8596_v49 = vld [vmem:[#allocation47_spill] sm:$0xff] }
 0x206   :  { %v6966_v0 = vpop.f32.mrb[12].mxu1 }
 0x207   :  { %8588 = vst [vmem:[#allocation84_spill] sm:$0xff] %v6966_v0  ;;  %v6968_v51 = vpop.f32.mrb[13].mxu1  ;;  %v8592_v0 = vmov 0.0  }
 0x208   :  { %8589 = vst [vmem:[#allocation85_spill] sm:$0xff] %v6968_v51 }
 0x20a   :  { %v6970_v35 = vpop.f32.mrb[14].mxu1 }
 0x20b   :  { %8590 = vst [vmem:[#allocation86_spill] sm:$0xff] %v6970_v35  ;;  %v6974_v57 = vpop.f32.mrb[15].mxu1  ;;  %v172_v35 = vadd.f32 %v6946_v37, %v6800_v29 }
 0x20c   :  { %8591 = vst [vmem:[#allocation87_spill] sm:$0xff] %v6974_v57  ;;  %v233_v57 = vld [vmem:[#allocation6 + $0x4c2] ss:$8 sm:$0x3] }
 0x20d   :  { %v7036_v38 = vrot.slane %v233_v57, %v6794_v24  ;;  %v7039_v25 = vrot.slane %v233_v57, %v6797_v28 }
 0x20f   :  { %8595 = vst [vmem:[#allocation90_spill] sm:$0xff] %v7039_v25 }
 0x224   :  { %v508_v55 = vpop.permute.xlu0 %507 }
 0x225   :  { %4539 = vmatmul.mubr.msk.f32.vlgmr.msra.gmra.mrb[2].mxu0 %vm388_vm1, %v508_v55  ;;  %4540 = vmatmul.mubr.msk.f32.vlgmr.msra.gmra.mrb[16].mxu1 %vm388_vm1, %v508_v55  ;;  %v237_v55 = vld [vmem:[#allocation6 + $0x4c1] ss:$8 sm:$0x3] }
 0x226   :  { %5188 = vmatpush1.bf16.msra.mxu1 %v6834_v13  ;;  %5140 = vmatpush1.bf16.msra.mxu0 %v6688_v8  ;;  %v7028_v51 = vrot.slane %v237_v55, %v6794_v24  ;;  %v7033_v39 = vrot.slane %v237_v55, %v6797_v28 }
 0x227   :  { %5190 = vmatprep.subr.bf16.mxu1 %v6836_v16  ;;  %5142 = vmatprep.subr.bf16.mxu0 %v6690_v9 }
 0x228   :  { %795 = vmatprep.mubr.f32.mxu0 %v8592_v0  ;;  %866 = vmatprep.mubr.f32.mxu1 %v8592_v0  ;;  %8593 = vst [vmem:[#allocation88_spill] sm:$0xff] %v7028_v51  ;;  %8594 = vst [vmem:[#allocation89_spill] sm:$0xff] %v7033_v39 }
 0x22a   :  { %5192 = vmatpush1.bf16.msra.mxu1 %v6840_v32  ;;  %5144 = vmatpush1.bf16.msra.mxu0 %v6694_v14 }
 0x22b   :  { %5194 = vmatprep.subr.bf16.mxu1 %v6843_v33  ;;  %5146 = vmatprep.subr.bf16.mxu0 %v6697_v15 }
 0x22e   :  { %5196 = vmatpush1.bf16.msra.mxu1 %v6850_v45  ;;  %5148 = vmatpush1.bf16.msra.mxu0 %v6700_v20 }
 0x22f   :  { %5198 = vmatprep.subr.bf16.mxu1 %v6857_v50  ;;  %5150 = vmatprep.subr.bf16.mxu0 %v6703_v21 }
 0x232   :  { %5200 = vmatpush1.bf16.msra.mxu1 %v6861_v62  ;;  %5152 = vmatpush1.bf16.msra.mxu0 %v6706_v26 }
 0x233   :  { %5202 = vmatprep.subr.bf16.mxu1 %v6868_v1  ;;  %5154 = vmatprep.subr.bf16.mxu0 %v6709_v27 }
 0x236   :  { %5204 = vmatpush1.bf16.msra.mxu1 %v6872_v19  ;;  %5156 = vmatpush1.bf16.msra.mxu0 %v6712_v34 }
 0x237   :  { %5206 = vmatprep.subr.bf16.mxu1 %v6879_v31  ;;  %5158 = vmatprep.subr.bf16.mxu0 %v6718_v36 }
 0x23a   :  { %5208 = vmatpush1.bf16.msra.mxu1 %v6883_v44  ;;  %5160 = vmatpush1.bf16.msra.mxu0 %v6723_v41 }
 0x23b   :  { %5210 = vmatprep.subr.bf16.mxu1 %v6890_v52  ;;  %5162 = vmatprep.subr.bf16.mxu0 %v6726_v42 }
 0x23e   :  { %5212 = vmatpush1.bf16.msra.mxu1 %v6894_v6  ;;  %5164 = vmatpush1.bf16.msra.mxu0 %v6729_v47 }
 0x23f   :  { %5214 = vmatprep.subr.bf16.mxu1 %v6901_v10  ;;  %5166 = vmatprep.subr.bf16.mxu0 %v6732_v48 }
 0x242   :  { %5216 = vmatpush1.bf16.msra.mxu1 %v6905_v40  ;;  %5168 = vmatpush1.bf16.msra.mxu0 %v6735_v53 }
 0x243   :  { %5218 = vmatprep.subr.bf16.mxu1 %v6912_v46  ;;  %5170 = vmatprep.subr.bf16.mxu0 %v6738_v54 }
 0x246   :  { %5220 = vmatpush1.bf16.msra.mxu1 %v6916_v7  ;;  %5172 = vmatpush1.bf16.msra.mxu0 %v6741_v59 }
 0x247   :  { %5222 = vmatprep.subr.bf16.mxu1 %v6920_v18  ;;  %5174 = vmatprep.subr.bf16.mxu0 %v6744_v60 }
 0x24a   :  { %5224 = vmatpush1.bf16.msra.mxu1 %v6923_v23  ;;  %5176 = vmatpush1.bf16.msra.mxu0 %v6747_v2  ;;  %v8597_v23 = vld [vmem:[#allocation48_spill] sm:$0xff] }
 0x24b   :  { %5226 = vmatprep.subr.bf16.mxu1 %v6926_v43  ;;  %5178 = vmatprep.subr.bf16.mxu0 %v6750_v3 }
 0x24e   :  { %5228 = vmatpush1.bf16.msra.mxu1 %v6929_v61  ;;  %5180 = vmatpush1.bf16.msra.mxu0 %v6753_v11 }
 0x24f   :  { %5230 = vmatprep.subr.bf16.mxu1 %v6932_v63  ;;  %5182 = vmatprep.subr.bf16.mxu0 %v6756_v12 }
 0x252   :  { %5232 = vmatpush1.bf16.msra.mxu1 %v6935_v22  ;;  %5184 = vmatpush1.bf16.msra.mxu0 %v6759_v17 }
 0x253   :  { %5282 = vmatprep.subr.bf16.mxu0 %v6686_v4 }
 0x2f8   :  { %v577_v5 = vpop.f32.mrb[2].mxu0  ;;  %v648_v56 = vpop.f32.mrb[16].mxu1 }
 0x2f9   :  { %v655_v22 = vadd.f32 %v577_v5, %v172_v35  ;;  %v685_v37 = vadd.f32 %v7028_v51, %v648_v56  ;;  %v579_v29 = vpop.f32.mrb[3].mxu0  ;;  %v650_v63 = vpop.f32.mrb[17].mxu1  ;;  %v235_v35 = vld [vmem:[#allocation6 + $0x4c3] ss:$8 sm:$0x3] }
 0x2fa   :  { %v656_v61 = vadd.f32 %v579_v29, %v174_v58  ;;  %v686_v43 = vadd.f32 %v7033_v39, %v650_v63  ;;  %v7049_v63 = vrot.slane %v235_v35, %v6794_v24 }
 0x2fb   :  { %v657_v30 = vmul.f32 %v655_v22, %v8596_v49  ;;  %v698_v55 = vmul.f32 %v7036_v38, %v685_v37  ;;  %v8599_v37 = vld [vmem:[#allocation49_spill] sm:$0xff] }
 0x2fc   :  { %v658_v18 = vmul.f32 %v656_v61, %v8597_v23  ;;  %v699_v7 = vmul.f32 %v7039_v25, %v686_v43  ;;  %8598 = vst [vmem:[#allocation91_spill] sm:$0xff] %v7049_v63 }
 0x2fd   :  { %6357 = vtanh.f32 %v657_v30  ;;  %v7055_v30 = vrot.slane %v235_v35, %v6797_v28  ;;  %v249_v28 = vld [vmem:[#allocation6 + $0x28] sm:$0xff]  ;;  %v255_v35 = vld [vmem:[#allocation6 + $0x58] sm:$0xff] }
 0x2fe   :  { %6359 = vtanh.f32 %v698_v55 }
 0x2ff   :  { %6361 = vtanh.f32 %v658_v18  ;;  %8600 = vst [vmem:[#allocation92_spill] sm:$0xff] %v7055_v30  ;;  %v8601_v18 = vld [vmem:[#allocation50_spill] sm:$0xff] }
 0x300   :  { %6363 = vtanh.f32 %v699_v7 }
 0x307   :  { %v6358_v5 = vpop.eup %6357 }
 0x308   :  { %v6360_v56 = vpop.eup %6359  ;;  %v661_v57 = vmul.f32 %v6358_v5, %v8596_v49 }
 0x309   :  { %v6362_v29 = vpop.eup %6361  ;;  %v702_v43 = vmul.f32 %v6360_v56, %v7036_v38 }
 0x30a   :  { %v6364_v22 = vpop.eup %6363  ;;  %v662_v58 = vmul.f32 %v6362_v29, %v8597_v23  ;;  %v663_v61 = vadd.f32 %v661_v57, %v8599_v37  ;;  %v8602_v57 = vld [vmem:[#allocation75_spill] sm:$0xff] }
 0x30b   :  { %v703_v7 = vmul.f32 %v6364_v22, %v7039_v25  ;;  %v715_v5 = vadd.f32 %v7049_v63, %v702_v43  ;;  %v7066_v22 = vpack.c.bf16 %v255_v35, %v249_v28  ;;  %v267_v28 = vld [vmem:[#allocation6 + $0xb8] sm:$0xff] }
 0x30c   :  { %v664_v55 = vadd.f32 %v662_v58, %v8601_v18  ;;  %v665_v29 = vmul.f32 %v663_v61, %v8602_v57  ;;  %v248_v57 = vld [vmem:[#allocation6 + $0x20] sm:$0xff] }
 0x30d   :  { %v716_v24 = vadd.f32 %v7055_v30, %v703_v7  ;;  %8604 = vst [vmem:[#allocation93_spill] sm:$0xff] %v7066_v22  ;;  %5234 = vmatprep.subr.bf16.mxu1 %v7066_v22  ;;  %v717_v7 = vmul.f32 0.0, %v715_v5 }
 0x30e   :  { %v666_v39 = vmul.f32 %v664_v55, %v663_v61 }
 0x30f   :  { %v718_v49 = vmul.f32 %v716_v24, %v715_v5  ;;  %v273_v5 = vld [vmem:[#allocation6 + $0xe8] sm:$0xff] }
 0x310   :  { %668 = vrot.lane.b32.xlu1 %v666_v39, %s6639_s30 }
 0x314   :  { %720 = vrot.lane.b32.xlu1 %v718_v49, %s6639_s30 }
 0x382   :  { %v669_v56 = vpop.permute.xlu1 %668 }
 0x383   :  { %v7064_v37 = vadd.f32 %v669_v56, %v665_v29  ;;  %v254_v29 = vld [vmem:[#allocation6 + $0x50] sm:$0xff]  ;;  %v261_v56 = vld [vmem:[#allocation6 + $0x88] sm:$0xff] }
 0x384   :  { %v7074_v30 = vpack.c.bf16 %v254_v29, %v248_v57  ;;  %v7076_v63 = vpack.c.bf16 %v267_v28, %v261_v56  ;;  %v278_v57 = vld [vmem:[#allocation6 + $0x110] sm:$0xff]  ;;  %v291_v29 = vld [vmem:[#allocation6 + $0x178] sm:$0xff] }
 0x385   :  { %8603 = vst [vmem:[#allocation75_spill] sm:$0xff] %v7064_v37  ;;  %6365 = vtanh.f32 %v7064_v37 }
 0x386   :  { %v721_v39 = vpop.permute.xlu1 %720 }
 0x387   :  { %v7071_v49 = vadd.f32 %v721_v39, %v717_v7  ;;  %v279_v39 = vld [vmem:[#allocation6 + $0x118] sm:$0xff] }
 0x389   :  { %6367 = vtanh.f32 %v7071_v49 }
 0x38f   :  { %v6366_v58 = vpop.eup %6365 }
 0x390   :  { %v673_v43 = vmul.f32 %v6366_v58, %v664_v55  ;;  %v260_v55 = vld [vmem:[#allocation6 + $0x80] sm:$0xff]  ;;  %v266_v58 = vld [vmem:[#allocation6 + $0xb0] sm:$0xff] }
 0x391   :  { %v7084_v7 = vpack.c.bf16 %v266_v58, %v260_v55  ;;  %v290_v55 = vld [vmem:[#allocation6 + $0x170] sm:$0xff]  ;;  %v297_v58 = vld [vmem:[#allocation6 + $0x1a8] sm:$0xff] }
 0x392   :  { %727 = vrot.lane.b32.xlu0 %v673_v43, %s6639_s30 }
 0x393   :  { %v6368_v61 = vpop.eup %6367 }
 0x394   :  { %v725_v35 = vmul.f32 %v6368_v61, %v716_v24  ;;  %v7088_v24 = vpack.c.bf16 %v279_v39, %v273_v5  ;;  %v272_v61 = vld [vmem:[#allocation6 + $0xe0] sm:$0xff]  ;;  %v303_v5 = vld [vmem:[#allocation6 + $0x1d8] sm:$0xff] }
 0x395   :  { %v7093_v56 = vpack.c.bf16 %v278_v57, %v272_v61  ;;  %v7104_v61 = vpack.c.bf16 %v303_v5, %v297_v58  ;;  %v296_v57 = vld [vmem:[#allocation6 + $0x1a0] sm:$0xff]  ;;  %v321_v58 = vld [vmem:[#allocation6 + $0x268] sm:$0xff]  ;;  %v327_v5 = vld [vmem:[#allocation6 + $0x298] sm:$0xff] }
 0x397   :  { %8606 = vst [vmem:[#allocation95_spill] sm:$0xff] %v7104_v61 }
 0x404   :  { %v728_v37 = vpop.permute.xlu0 %727 }
 0x405   :  { %v7079_v43 = vsel %vm388_vm1, %v728_v37, %v725_v35  ;;  %v285_v37 = vld [vmem:[#allocation6 + $0x148] sm:$0xff]  ;;  %v284_v35 = vld [vmem:[#allocation6 + $0x140] sm:$0xff] }
 0x406   :  { %796 = vmatmul.mubr.f32.vlgmr.msra.gmra.mrb[4].mxu0 %v7079_v43  ;;  %867 = vmatmul.mubr.f32.vlgmr.msra.gmra.mrb[18].mxu1 %v7079_v43  ;;  %v7096_v28 = vpack.c.bf16 %v291_v29, %v285_v37  ;;  %v7101_v39 = vpack.c.bf16 %v290_v55, %v284_v35  ;;  %v309_v37 = vld [vmem:[#allocation6 + $0x208] sm:$0xff]  ;;  %v315_v29 = vld [vmem:[#allocation6 + $0x238] sm:$0xff]  ;;  %v308_v55 = vld [vmem:[#allocation6 + $0x200] sm:$0xff] }
 0x407   :  { %5236 = vmatpush1.bf16.msra.mxu1 %v7074_v30  ;;  %937 = vmatprep.mubr.f32.mxu1 %v8592_v0  ;;  %v302_v0 = vld [vmem:[#allocation6 + $0x1d0] sm:$0xff]  ;;  %v7112_v35 = vpack.c.bf16 %v315_v29, %v309_v37  ;;  %v333_v37 = vld [vmem:[#allocation6 + $0x2c8] sm:$0xff]  ;;  %v339_v29 = vld [vmem:[#allocation6 + $0x2f8] sm:$0xff] }
 0x408   :  { %5238 = vmatprep.subr.bf16.mxu1 %v7076_v63  ;;  %5284 = vmatpush1.bf16.msra.mxu0 %v6688_v8  ;;  %8605 = vst [vmem:[#allocation94_spill] sm:$0xff] %v7096_v28 }
 0x409   :  { %5286 = vmatprep.subr.bf16.mxu0 %v6690_v9  ;;  %8607 = vst [vmem:[#allocation96_spill] sm:$0xff] %v7112_v35 }
 0x40b   :  { %5240 = vmatpush1.bf16.msra.mxu1 %v7084_v7 }
 0x40c   :  { %5242 = vmatprep.subr.bf16.mxu1 %v7088_v24  ;;  %5288 = vmatpush1.bf16.msra.mxu0 %v6694_v14  ;;  %v7109_v14 = vpack.c.bf16 %v302_v0, %v296_v57  ;;  %v7120_v0 = vpack.c.bf16 %v327_v5, %v321_v58  ;;  %v320_v57 = vld [vmem:[#allocation6 + $0x260] sm:$0xff]  ;;  %v345_v58 = vld [vmem:[#allocation6 + $0x328] sm:$0xff]  ;;  %v351_v5 = vld [vmem:[#allocation6 + $0x358] sm:$0xff] }
 0x40d   :  { %5290 = vmatprep.subr.bf16.mxu0 %v6697_v15 }
 0x40e   :  { %8608 = vst [vmem:[#allocation97_spill] sm:$0xff] %v7120_v0 }
 0x40f   :  { %5244 = vmatpush1.bf16.msra.mxu1 %v7093_v56 }
 0x410   :  { %5246 = vmatprep.subr.bf16.mxu1 %v7096_v28  ;;  %5292 = vmatpush1.bf16.msra.mxu0 %v6700_v20  ;;  %v314_v28 = vld [vmem:[#allocation6 + $0x230] sm:$0xff] }
 0x411   :  { %5294 = vmatprep.subr.bf16.mxu0 %v6703_v21  ;;  %v7117_v20 = vpack.c.bf16 %v314_v28, %v308_v55  ;;  %v7128_v28 = vpack.c.bf16 %v339_v29, %v333_v37  ;;  %v332_v55 = vld [vmem:[#allocation6 + $0x2c0] sm:$0xff]  ;;  %v357_v37 = vld [vmem:[#allocation6 + $0x388] sm:$0xff]  ;;  %v363_v29 = vld [vmem:[#allocation6 + $0x3b8] sm:$0xff] }
 0x413   :  { %5248 = vmatpush1.bf16.msra.mxu1 %v7101_v39  ;;  %8609 = vst [vmem:[#allocation98_spill] sm:$0xff] %v7128_v28 }
 0x414   :  { %5250 = vmatprep.subr.bf16.mxu1 %v7104_v61  ;;  %5296 = vmatpush1.bf16.msra.mxu0 %v6706_v26  ;;  %v326_v61 = vld [vmem:[#allocation6 + $0x290] sm:$0xff] }
 0x415   :  { %5298 = vmatprep.subr.bf16.mxu0 %v6709_v27  ;;  %v7125_v26 = vpack.c.bf16 %v326_v61, %v320_v57  ;;  %v7136_v61 = vpack.c.bf16 %v351_v5, %v345_v58  ;;  %v344_v57 = vld [vmem:[#allocation6 + $0x320] sm:$0xff]  ;;  %v369_v58 = vld [vmem:[#allocation6 + $0x3e8] sm:$0xff]  ;;  %v375_v5 = vld [vmem:[#allocation6 + $0x418] sm:$0xff] }
 0x417   :  { %5252 = vmatpush1.bf16.msra.mxu1 %v7109_v14  ;;  %8610 = vst [vmem:[#allocation99_spill] sm:$0xff] %v7136_v61 }
 0x418   :  { %5254 = vmatprep.subr.bf16.mxu1 %v7112_v35  ;;  %5300 = vmatpush1.bf16.msra.mxu0 %v6712_v34  ;;  %v338_v35 = vld [vmem:[#allocation6 + $0x2f0] sm:$0xff] }
 0x419   :  { %5302 = vmatprep.subr.bf16.mxu0 %v6718_v36  ;;  %v7133_v34 = vpack.c.bf16 %v338_v35, %v332_v55  ;;  %v7144_v35 = vpack.c.bf16 %v363_v29, %v357_v37  ;;  %v356_v55 = vld [vmem:[#allocation6 + $0x380] sm:$0xff]  ;;  %v381_v37 = vld [vmem:[#allocation6 + $0x448] sm:$0xff]  ;;  %v387_v29 = vld [vmem:[#allocation6 + $0x478] sm:$0xff] }
 0x41b   :  { %5256 = vmatpush1.bf16.msra.mxu1 %v7117_v20  ;;  %8612 = vst [vmem:[#allocation101_spill] sm:$0xff] %v7144_v35 }
 0x41c   :  { %5258 = vmatprep.subr.bf16.mxu1 %v7120_v0  ;;  %5304 = vmatpush1.bf16.msra.mxu0 %v6723_v41  ;;  %v350_v0 = vld [vmem:[#allocation6 + $0x350] sm:$0xff] }
 0x41d   :  { %5306 = vmatprep.subr.bf16.mxu0 %v6726_v42  ;;  %v7141_v41 = vpack.c.bf16 %v350_v0, %v344_v57  ;;  %v7152_v0 = vpack.c.bf16 %v375_v5, %v369_v58  ;;  %v368_v57 = vld [vmem:[#allocation6 + $0x3e0] sm:$0xff]  ;;  %v8621_v5 = vld [vmem:[#allocation70_spill] sm:$0xff] }
 0x41f   :  { %5260 = vmatpush1.bf16.msra.mxu1 %v7125_v26  ;;  %8611 = vst [vmem:[#allocation100_spill] sm:$0xff] %v7141_v41  ;;  %8614 = vst [vmem:[#allocation103_spill] sm:$0xff] %v7152_v0 }
 0x420   :  { %5262 = vmatprep.subr.bf16.mxu1 %v7128_v28  ;;  %5308 = vmatpush1.bf16.msra.mxu0 %v6729_v47  ;;  %v362_v28 = vld [vmem:[#allocation6 + $0x3b0] sm:$0xff] }
 0x421   :  { %5310 = vmatprep.subr.bf16.mxu0 %v6732_v48  ;;  %v7149_v47 = vpack.c.bf16 %v362_v28, %v356_v55  ;;  %v7160_v28 = vpack.c.bf16 %v387_v29, %v381_v37  ;;  %v380_v55 = vld [vmem:[#allocation6 + $0x440] sm:$0xff]  ;;  %v8623_v37 = vld [vmem:[#allocation72_spill] sm:$0xff]  ;;  %v8624_v29 = vld [vmem:[#allocation73_spill] sm:$0xff] }
 0x423   :  { %5264 = vmatpush1.bf16.msra.mxu1 %v7133_v34  ;;  %8613 = vst [vmem:[#allocation102_spill] sm:$0xff] %v7149_v47  ;;  %8616 = vst [vmem:[#allocation105_spill] sm:$0xff] %v7160_v28 }
 0x424   :  { %5266 = vmatprep.subr.bf16.mxu1 %v7136_v61  ;;  %5312 = vmatpush1.bf16.msra.mxu0 %v6735_v53  ;;  %v374_v61 = vld [vmem:[#allocation6 + $0x410] sm:$0xff] }
 0x425   :  { %5314 = vmatprep.subr.bf16.mxu0 %v6738_v54  ;;  %v7157_v53 = vpack.c.bf16 %v374_v61, %v368_v57  ;;  %v8618_v61 = vld [vmem:[#allocation51_spill] sm:$0xff] }
 0x426   :  { %v8622_v57 = vld [vmem:[#allocation71_spill] sm:$0xff] }
 0x427   :  { %5268 = vmatpush1.bf16.msra.mxu1 %v7141_v41  ;;  %8615 = vst [vmem:[#allocation104_spill] sm:$0xff] %v7157_v53 }
 0x428   :  { %5270 = vmatprep.subr.bf16.mxu1 %v7144_v35  ;;  %5316 = vmatpush1.bf16.msra.mxu0 %v6741_v59  ;;  %v386_v35 = vld [vmem:[#allocation6 + $0x470] sm:$0xff] }
 0x429   :  { %5318 = vmatprep.subr.bf16.mxu0 %v6744_v60  ;;  %v7165_v58 = vpack.c.bf16 %v386_v35, %v380_v55  ;;  %v8620_v35 = vld [vmem:[#allocation69_spill] sm:$0xff]  ;;  %v8625_v55 = vld [vmem:[#allocation74_spill] sm:$0xff] }
 0x42b   :  { %5272 = vmatpush1.bf16.msra.mxu1 %v7149_v47  ;;  %8617 = vst [vmem:[#allocation106_spill] sm:$0xff] %v7165_v58 }
 0x42c   :  { %5274 = vmatprep.subr.bf16.mxu1 %v7152_v0  ;;  %5320 = vmatpush1.bf16.msra.mxu0 %v6747_v2 }
 0x42d   :  { %5322 = vmatprep.subr.bf16.mxu0 %v6750_v3 }
 0x42f   :  { %5276 = vmatpush1.bf16.msra.mxu1 %v7157_v53 }
 0x430   :  { %5278 = vmatprep.subr.bf16.mxu1 %v7160_v28  ;;  %5324 = vmatpush1.bf16.msra.mxu0 %v6753_v11 }
 0x431   :  { %5326 = vmatprep.subr.bf16.mxu0 %v6756_v12 }
 0x433   :  { %5280 = vmatpush1.bf16.msra.mxu1 %v7165_v58 }
 0x434   :  { %5330 = vmatprep.subr.bf16.mxu1 %v8618_v61  ;;  %5328 = vmatpush1.bf16.msra.mxu0 %v6759_v17 }
 0x435   :  { %5426 = vmatprep.subr.bf16.mxu0 %v6686_v4  ;;  %v8626_v4 = vld [vmem:[#allocation45_spill] sm:$0xff] }
 0x436   :  { %938 = vmatmul.mubr.f32.vlgmr.msra.gmra.mrb[20].mxu1 %v7079_v43  ;;  %v8619_v43 = vld [vmem:[#allocation68_spill] sm:$0xff] }
 0x437   :  { %5332 = vmatpush1.bf16.msra.mxu1 %v6834_v13 }
 0x438   :  { %5334 = vmatprep.subr.bf16.mxu1 %v6836_v16 }
 0x43b   :  { %5336 = vmatpush1.bf16.msra.mxu1 %v6840_v32 }
 0x43c   :  { %5338 = vmatprep.subr.bf16.mxu1 %v6843_v33 }
 0x43f   :  { %5340 = vmatpush1.bf16.msra.mxu1 %v6850_v45 }
 0x440   :  { %5342 = vmatprep.subr.bf16.mxu1 %v6857_v50  ;;  %v7207_v50 = vld [vmem:[#allocation6 + $0x4d1] ss:$0 sm:$0xff] }
 0x443   :  { %5344 = vmatpush1.bf16.msra.mxu1 %v6861_v62 }
 0x444   :  { %5346 = vmatprep.subr.bf16.mxu1 %v6868_v1  ;;  %v8631_v1 = vld [vmem:[#allocation89_spill] sm:$0xff] }
 0x447   :  { %5348 = vmatpush1.bf16.msra.mxu1 %v6872_v19  ;;  %v8630_v19 = vld [vmem:[#allocation47_spill] sm:$0xff] }
 0x448   :  { %5350 = vmatprep.subr.bf16.mxu1 %v6879_v31 }
 0x44b   :  { %5352 = vmatpush1.bf16.msra.mxu1 %v6883_v44 }
 0x44c   :  { %5354 = vmatprep.subr.bf16.mxu1 %v6890_v52 }
 0x44f   :  { %5356 = vmatpush1.bf16.msra.mxu1 %v6894_v6  ;;  %v8629_v6 = vld [vmem:[#allocation77_spill] sm:$0xff] }
 0x450   :  { %5358 = vmatprep.subr.bf16.mxu1 %v6901_v10 }
 0x453   :  { %5360 = vmatpush1.bf16.msra.mxu1 %v6905_v40  ;;  %v8627_v40 = vld [vmem:[#allocation76_spill] sm:$0xff] }
 0x454   :  { %5362 = vmatprep.subr.bf16.mxu1 %v6912_v46  ;;  %v178_v10 = vadd.f32 %v8627_v40, %v8626_v4  ;;  %v8628_v46 = vld [vmem:[#allocation46_spill] sm:$0xff]  ;;  %8632 = vst [vmem:[#allocation76_spill] sm:$0xff] %v7207_v50 }
 0x457   :  { %5364 = vmatpush1.bf16.msra.mxu1 %v8619_v43  ;;  %v180_v43 = vadd.f32 %v8629_v6, %v8628_v46  ;;  %v7211_v46 = vld [vmem:[#allocation6 + $0x4d2] ss:$0 sm:$0xff] }
 0x458   :  { %5366 = vmatprep.subr.bf16.mxu1 %v8620_v35  ;;  %8633 = vst [vmem:[#allocation77_spill] sm:$0xff] %v7211_v46 }
 0x45b   :  { %5368 = vmatpush1.bf16.msra.mxu1 %v8621_v5 }
 0x45c   :  { %5370 = vmatprep.subr.bf16.mxu1 %v8622_v57 }
 0x45f   :  { %5372 = vmatpush1.bf16.msra.mxu1 %v8623_v37 }
 0x460   :  { %5374 = vmatprep.subr.bf16.mxu1 %v8624_v29 }
 0x463   :  { %5376 = vmatpush1.bf16.msra.mxu1 %v8625_v55 }
 0x464   :  { %5378 = vmatprep.subr.bf16.mxu1 %v7066_v22 }
 0x4d9   :  { %v797_v52 = vpop.f32.mrb[4].mxu0  ;;  %v868_v35 = vpop.f32.mrb[18].mxu1 }
 0x4da   :  { %v945_v44 = vadd.f32 %v797_v52, %v178_v10  ;;  %v799_v5 = vpop.f32.mrb[5].mxu0  ;;  %v870_v31 = vpop.f32.mrb[19].mxu1  ;;  %v964_v37 = vadd.f32 %v868_v35, %v7028_v51  ;;  %v8636_v51 = vld [vmem:[#allocation91_spill] sm:$0xff] }
 0x4db   :  { %v946_v57 = vadd.f32 %v799_v5, %v180_v43  ;;  %v965_v55 = vadd.f32 %v870_v31, %v8631_v1  ;;  %v7217_v1 = vld [vmem:[#allocation6 + $0x4d3] ss:$0 sm:$0xff] }
 0x4dc   :  { %v947_v29 = vmul.f32 %v945_v44, %v8630_v19  ;;  %v966_v40 = vmul.f32 %v964_v37, %v7036_v38  ;;  %8634 = vst [vmem:[#allocation107_spill] sm:$0xff] %v7217_v1 }
 0x4dd   :  { %v948_v62 = vmul.f32 %v946_v57, %v8597_v23  ;;  %v967_v6 = vmul.f32 %v965_v55, %v7039_v25 }
 0x4de   :  { %6369 = vtanh.f32 %v947_v29 }
 0x4df   :  { %6371 = vtanh.f32 %v948_v62 }
 0x4e0   :  { %6373 = vtanh.f32 %v966_v40 }
 0x4e1   :  { %6375 = vtanh.f32 %v967_v6 }
 0x4e8   :  { %v6370_v31 = vpop.eup %6369 }
 0x4e9   :  { %v6372_v35 = vpop.eup %6371  ;;  %v951_v37 = vmul.f32 %v6370_v31, %v8630_v19 }
 0x4ea   :  { %v6374_v5 = vpop.eup %6373  ;;  %v952_v29 = vmul.f32 %v6372_v35, %v8597_v23  ;;  %v8637_v23 = vld [vmem:[#allocation92_spill] sm:$0xff] }
 0x4eb   :  { %v6376_v57 = vpop.eup %6375 }
 0x509   :  { %v939_v52 = vpop.f32.mrb[20].mxu1 }
 0x50a   :  { %v983_v10 = vadd.f32 %v939_v52, %v7207_v50  ;;  %v941_v43 = vpop.f32.mrb[21].mxu1  ;;  %v970_v52 = vmul.f32 %v6374_v5, %v7036_v38 }
 0x50b   :  { %v954_v43 = vadd.f32 %v952_v29, %v8601_v18 }
 0x50c   :  { %v984_v44 = vmul.f32 %v983_v10, %v7211_v46  ;;  %v8635_v10 = vld [vmem:[#allocation49_spill] sm:$0xff]  ;;  %v972_v35 = vadd.f32 %v970_v52, %v8636_v51 }
 0x50d   :  { %v953_v6 = vadd.f32 %v951_v37, %v8635_v10  ;;  %v8638_v37 = vld [vmem:[#allocation75_spill] sm:$0xff] }
 0x50e   :  { %6377 = vtanh.f32 %v984_v44  ;;  %v971_v44 = vmul.f32 %v6376_v57, %v7039_v25 }
 0x50f   :  { %v956_v31 = vmul.f32 %v954_v43, %v953_v6  ;;  %v955_v29 = vmul.f32 %v953_v6, %v8638_v37  ;;  %v974_v37 = vmul.f32 %v972_v35, %v7071_v49  ;;  %v8640_v49 = vld [vmem:[#allocation94_spill] sm:$0xff] }
 0x510   :  { %v973_v19 = vadd.f32 %v971_v44, %v8637_v23 }
 0x518   :  { %v6378_v55 = vpop.eup %6377 }
 0x519   :  { %v986_v62 = vmul.f32 %v6378_v55, %v7211_v46  ;;  %v975_v55 = vmul.f32 %v973_v19, %v972_v35  ;;  %v8642_v35 = vld [vmem:[#allocation95_spill] sm:$0xff] }
 0x51b   :  { %v987_v40 = vadd.f32 %v986_v62, %v7217_v1 }
 0x51d   :  { %990 = vrot.lane.b32.xlu1 %v987_v40, %s6639_s30  ;;  %v988_v44 = vmul.f32 0.0, %v987_v40 }
 0x521   :  { %958 = vrot.lane.b32.xlu1 %v956_v31, %s6639_s30 }
 0x525   :  { %977 = vrot.lane.b32.xlu1 %v975_v55, %s6639_s30 }
 0x58f   :  { %v991_v5 = vpop.permute.xlu1 %990 }
 0x590   :  { %v993_v62 = vmul.f32 %v991_v5, %v987_v40 }
 0x592   :  { %995 = vrot.lane.b32.xlu0 %v993_v62, %s6640_s0 }
 0x593   :  { %v959_v57 = vpop.permute.xlu1 %958 }
 0x594   :  { %v7232_v25 = vadd.f32 %v959_v57, %v955_v29 }
 0x596   :  { %6379 = vtanh.f32 %v7232_v25 }
 0x597   :  { %v978_v62 = vpop.permute.xlu1 %977 }
 0x598   :  { %v7242_v29 = vadd.f32 %v978_v62, %v974_v37  ;;  %v8646_v62 = vld [vmem:[#allocation97_spill] sm:$0xff]  ;;  %v8647_v37 = vld [vmem:[#allocation31_spill] sm:$0xff] }
 0x5a0   :  { %v6380_v52 = vpop.eup %6379 }
 0x5a1   :  { %v963_v51 = vmul.f32 %v6380_v52, %v954_v43 }
 0x5a3   :  { %1006 = vrot.lane.b32.xlu1 %v963_v51, %s6639_s30 }
 0x604   :  { %v996_v31 = vpop.permute.xlu0 %995 }
 0x605   :  { %v7236_v23 = vadd.f32 %v996_v31, %v988_v44 }
 0x607   :  { %6381 = vtanh.f32 %v7236_v23 }
 0x608   :  { %6383 = vtanh.f32 %v7242_v29 }
 0x611   :  { %v6382_v55 = vpop.eup %6381 }
 0x612   :  { %1001 = vrot.lane.b32.xlu0 %v6382_v55, %s6639_s30  ;;  %v6384_v51 = vpop.eup %6383  ;;  %v8643_v55 = vld [vmem:[#allocation27_spill] sm:$0xff] }
 0x613   :  { %v982_v57 = vmul.f32 %v6384_v51, %v973_v19  ;;  %v8639_v19 = vld [vmem:[#allocation23_spill] sm:$0xff]  ;;  %v8648_v51 = vld [vmem:[#allocation98_spill] sm:$0xff] }
 0x615   :  { %v1007_v43 = vpop.permute.xlu1 %1006 }
 0x616   :  { %v1013_v31 = vsel %vm388_vm1, %v1007_v43, %v982_v57  ;;  %v8649_v43 = vld [vmem:[#allocation33_spill] sm:$0xff]  ;;  %v8650_v57 = vld [vmem:[#allocation99_spill] sm:$0xff] }
 0x684   :  { %v1002_v5 = vpop.permute.xlu0 %1001 }
 0x685   :  { %v1004_v6 = vmul.f32 %v1002_v5, %v987_v40  ;;  %v8641_v40 = vld [vmem:[#allocation25_spill] sm:$0xff]  ;;  %v8644_v5 = vld [vmem:[#allocation96_spill] sm:$0xff] }
 0x687   :  { %1010 = vrot.lane.b32.xlu0 %v1004_v6, %s6640_s0  ;;  %v8645_v6 = vld [vmem:[#allocation29_spill] sm:$0xff] }
 0x6f9   :  { %v1011_v52 = vpop.permute.xlu0 %1010 }
 0x6fa   :  { %v1015_v44 = vsel %vm1014_vm2, %v1011_v52, 0.0  ;;  %v8651_v52 = vld [vmem:[#allocation35_spill] sm:$0xff] }
 0x6fb   :  { %4541 = vmatprep.mubr.msk.f32.mxu0 %vm388_vm1, %v1015_v44  ;;  %4542 = vmatprep.mubr.msk.f32.mxu1 %vm388_vm1, %v1015_v44 }
 0x6fc   :  { %1084 = vmatmul.mubr.f32.vlgmr.msra.gmra.mrb[6].mxu0 %v1013_v31  ;;  %1155 = vmatmul.mubr.f32.vlgmr.msra.gmra.mrb[22].mxu1 %v1013_v31 }
 0x6fd   :  { %5380 = vmatpush1.bf16.msra.mxu1 %v7074_v30  ;;  %4543 = vmatprep.mubr.msk.f32.mxu1 %vm388_vm1, %v1015_v44  ;;  %v8652_v44 = vld [vmem:[#allocation101_spill] sm:$0xff] }
 0x6fe   :  { %5382 = vmatprep.subr.bf16.mxu1 %v7076_v63  ;;  %5428 = vmatpush1.bf16.msra.mxu0 %v6688_v8 }
 0x6ff   :  { %5430 = vmatprep.subr.bf16.mxu0 %v6690_v9 }
 0x701   :  { %5384 = vmatpush1.bf16.msra.mxu1 %v7084_v7 }
 0x702   :  { %5386 = vmatprep.subr.bf16.mxu1 %v7088_v24  ;;  %5432 = vmatpush1.bf16.msra.mxu0 %v8639_v19  ;;  %v8673_v19 = vld [vmem:[#allocation79_spill] sm:$0xff] }
 0x703   :  { %5434 = vmatprep.subr.bf16.mxu0 %v6697_v15  ;;  %v8672_v15 = vld [vmem:[#allocation46_spill] sm:$0xff] }
 0x704   :  { %v186_v9 = vadd.f32 %v8673_v19, %v8672_v15 }
 0x705   :  { %5388 = vmatpush1.bf16.msra.mxu1 %v7093_v56 }
 0x706   :  { %5390 = vmatprep.subr.bf16.mxu1 %v8640_v49  ;;  %5436 = vmatpush1.bf16.msra.mxu0 %v8641_v40 }
 0x707   :  { %5438 = vmatprep.subr.bf16.mxu0 %v6703_v21  ;;  %v8671_v21 = vld [vmem:[#allocation78_spill] sm:$0xff] }
 0x708   :  { %v184_v40 = vadd.f32 %v8671_v21, %v8626_v4 }
 0x709   :  { %5392 = vmatpush1.bf16.msra.mxu1 %v7101_v39 }
 0x70a   :  { %5394 = vmatprep.subr.bf16.mxu1 %v8642_v35  ;;  %5440 = vmatpush1.bf16.msra.mxu0 %v8643_v55  ;;  %v8670_v55 = vld [vmem:[#allocation74_spill] sm:$0xff] }
 0x70b   :  { %5442 = vmatprep.subr.bf16.mxu0 %v6709_v27  ;;  %v8669_v27 = vld [vmem:[#allocation73_spill] sm:$0xff] }
 0x70d   :  { %5396 = vmatpush1.bf16.msra.mxu1 %v7109_v14 }
 0x70e   :  { %5398 = vmatprep.subr.bf16.mxu1 %v8644_v5  ;;  %5444 = vmatpush1.bf16.msra.mxu0 %v8645_v6  ;;  %v8668_v6 = vld [vmem:[#allocation72_spill] sm:$0xff] }
 0x70f   :  { %5446 = vmatprep.subr.bf16.mxu0 %v6718_v36  ;;  %v8667_v36 = vld [vmem:[#allocation71_spill] sm:$0xff] }
 0x711   :  { %5400 = vmatpush1.bf16.msra.mxu1 %v7117_v20 }
 0x712   :  { %5402 = vmatprep.subr.bf16.mxu1 %v8646_v62  ;;  %5448 = vmatpush1.bf16.msra.mxu0 %v8647_v37  ;;  %v8666_v37 = vld [vmem:[#allocation70_spill] sm:$0xff] }
 0x713   :  { %5450 = vmatprep.subr.bf16.mxu0 %v6726_v42  ;;  %v8665_v42 = vld [vmem:[#allocation69_spill] sm:$0xff] }
 0x715   :  { %5404 = vmatpush1.bf16.msra.mxu1 %v7125_v26 }
 0x716   :  { %5406 = vmatprep.subr.bf16.mxu1 %v8648_v51  ;;  %5452 = vmatpush1.bf16.msra.mxu0 %v8649_v43  ;;  %v8664_v43 = vld [vmem:[#allocation68_spill] sm:$0xff] }
 0x717   :  { %5454 = vmatprep.subr.bf16.mxu0 %v6732_v48  ;;  %v8663_v48 = vld [vmem:[#allocation67_spill] sm:$0xff] }
 0x719   :  { %5408 = vmatpush1.bf16.msra.mxu1 %v7133_v34 }
 0x71a   :  { %5410 = vmatprep.subr.bf16.mxu1 %v8650_v57  ;;  %5456 = vmatpush1.bf16.msra.mxu0 %v8651_v52  ;;  %v8662_v52 = vld [vmem:[#allocation66_spill] sm:$0xff] }
 0x71b   :  { %5458 = vmatprep.subr.bf16.mxu0 %v6738_v54  ;;  %v8661_v54 = vld [vmem:[#allocation65_spill] sm:$0xff] }
 0x71d   :  { %5412 = vmatpush1.bf16.msra.mxu1 %v7141_v41 }
 0x71e   :  { %5414 = vmatprep.subr.bf16.mxu1 %v8652_v44  ;;  %5460 = vmatpush1.bf16.msra.mxu0 %v6741_v59  ;;  %v8660_v59 = vld [vmem:[#allocation64_spill] sm:$0xff] }
 0x71f   :  { %5462 = vmatprep.subr.bf16.mxu0 %v6744_v60  ;;  %v8659_v60 = vld [vmem:[#allocation63_spill] sm:$0xff] }
 0x721   :  { %5416 = vmatpush1.bf16.msra.mxu1 %v7149_v47 }
 0x722   :  { %5418 = vmatprep.subr.bf16.mxu1 %v7152_v0  ;;  %5464 = vmatpush1.bf16.msra.mxu0 %v6747_v2  ;;  %v8657_v2 = vld [vmem:[#allocation61_spill] sm:$0xff] }
 0x723   :  { %5466 = vmatprep.subr.bf16.mxu0 %v6750_v3  ;;  %v8655_v3 = vld [vmem:[#allocation59_spill] sm:$0xff] }
 0x725   :  { %5420 = vmatpush1.bf16.msra.mxu1 %v7157_v53 }
 0x726   :  { %5422 = vmatprep.subr.bf16.mxu1 %v7160_v28  ;;  %5468 = vmatpush1.bf16.msra.mxu0 %v6753_v11  ;;  %v8654_v11 = vld [vmem:[#allocation58_spill] sm:$0xff] }
 0x727   :  { %5470 = vmatprep.subr.bf16.mxu0 %v6756_v12  ;;  %v8653_v12 = vld [vmem:[#allocation57_spill] sm:$0xff] }
 0x729   :  { %5424 = vmatpush1.bf16.msra.mxu1 %v7165_v58 }
 0x72a   :  { %5474 = vmatprep.subr.bf16.mxu1 %v8618_v61  ;;  %5472 = vmatpush1.bf16.msra.mxu0 %v6759_v17  ;;  %v8656_v17 = vld [vmem:[#allocation60_spill] sm:$0xff] }
 0x72b   :  { %5522 = vmatprep.subr.bf16.mxu0 %v7066_v22 }
 0x72c   :  { %1226 = vmatmul.mubr.f32.vlgmr.msra.gmra.mrb[24].mxu1 %v1013_v31  ;;  %v8658_v31 = vld [vmem:[#allocation62_spill] sm:$0xff] }
 0x72d   :  { %5476 = vmatpush1.bf16.msra.mxu1 %v6834_v13 }
 0x72e   :  { %5478 = vmatprep.subr.bf16.mxu1 %v6836_v16 }
 0x731   :  { %5480 = vmatpush1.bf16.msra.mxu1 %v6840_v32 }
 0x732   :  { %5482 = vmatprep.subr.bf16.mxu1 %v6843_v33 }
 0x735   :  { %5484 = vmatpush1.bf16.msra.mxu1 %v6850_v45 }
 0x736   :  { %5486 = vmatprep.subr.bf16.mxu1 %v8653_v12 }
 0x739   :  { %5488 = vmatpush1.bf16.msra.mxu1 %v8654_v11 }
 0x73a   :  { %5490 = vmatprep.subr.bf16.mxu1 %v8655_v3 }
 0x73d   :  { %5492 = vmatpush1.bf16.msra.mxu1 %v8656_v17 }
 0x73e   :  { %5494 = vmatprep.subr.bf16.mxu1 %v8657_v2 }
 0x741   :  { %5496 = vmatpush1.bf16.msra.mxu1 %v8658_v31 }
 0x742   :  { %5498 = vmatprep.subr.bf16.mxu1 %v8659_v60 }
 0x745   :  { %5500 = vmatpush1.bf16.msra.mxu1 %v8660_v59 }
 0x746   :  { %5502 = vmatprep.subr.bf16.mxu1 %v8661_v54 }
 0x749   :  { %5504 = vmatpush1.bf16.msra.mxu1 %v8662_v52 }
 0x74a   :  { %5506 = vmatprep.subr.bf16.mxu1 %v8663_v48 }
 0x74d   :  { %5508 = vmatpush1.bf16.msra.mxu1 %v8664_v43 }
 0x74e   :  { %5510 = vmatprep.subr.bf16.mxu1 %v8665_v42 }
 0x751   :  { %5512 = vmatpush1.bf16.msra.mxu1 %v8666_v37  ;;  %v7326_v37 = vld [vmem:[#allocation6 + $0x4d9] ss:$0 sm:$0xff] }
 0x752   :  { %5514 = vmatprep.subr.bf16.mxu1 %v8667_v36  ;;  %8674 = vst [vmem:[#allocation49_spill] sm:$0xff] %v7326_v37 }
 0x755   :  { %5516 = vmatpush1.bf16.msra.mxu1 %v8668_v6 }
 0x756   :  { %5518 = vmatprep.subr.bf16.mxu1 %v8669_v27 }
 0x759   :  { %5520 = vmatpush1.bf16.msra.mxu1 %v8670_v55  ;;  %v7329_v55 = vld [vmem:[#allocation6 + $0x4da] ss:$0 sm:$0xff] }
 0x75a   :  { %5618 = vmatprep.subr.bf16.mxu1 %v8618_v61  ;;  %8675 = vst [vmem:[#allocation75_spill] sm:$0xff] %v7329_v55 }
 0x7cf   :  { %v1085_v8 = vpop.f32.mrb[6].mxu0  ;;  %v1156_v22 = vpop.f32.mrb[22].mxu1 }
 0x7d0   :  { %v1234_v58 = vadd.f32 %v1085_v8, %v184_v40  ;;  %v1087_v28 = vpop.f32.mrb[7].mxu0  ;;  %v1158_v53 = vpop.f32.mrb[23].mxu1 }
 0x7d1   :  { %v1235_v36 = vadd.f32 %v1087_v28, %v186_v9  ;;  %v7335_v28 = vld [vmem:[#allocation6 + $0x4db] ss:$0 sm:$0xff] }
 0x7d2   :  { %8676 = vst [vmem:[#allocation94_spill] sm:$0xff] %v7335_v28 }
 0x7ff   :  { %v1227_v6 = vpop.f32.mrb[24].mxu1 }
 0x800   :  { %v1272_v27 = vadd.f32 %v1227_v6, %v7207_v50  ;;  %v1229_v61 = vpop.f32.mrb[25].mxu1 }
 0x801   :  { %v1294_v0 = vadd.f32 %v1229_v61, %v7326_v37  ;;  %v8678_v61 = vld [vmem:[#allocation48_spill] sm:$0xff] }
 0x802   :  { %v1273_v21 = vmul.f32 %v1272_v27, %v7211_v46  ;;  %v8677_v27 = vld [vmem:[#allocation47_spill] sm:$0xff] }
 0x803   :  { %v1295_v19 = vmul.f32 %v1294_v0, %v7329_v55  ;;  %v1236_v0 = vmul.f32 %v1234_v58, %v8677_v27  ;;  %v8679_v58 = vld [vmem:[#allocation88_spill] sm:$0xff] }
 0x804   :  { %6385 = vtanh.f32 %v1273_v21  ;;  %v1237_v21 = vmul.f32 %v1235_v36, %v8678_v61 }
 0x805   :  { %6387 = vtanh.f32 %v1295_v19 }
 0x806   :  { %6389 = vtanh.f32 %v1236_v0  ;;  %v1253_v0 = vadd.f32 %v1156_v22, %v8679_v58 }
 0x807   :  { %6391 = vtanh.f32 %v1237_v21  ;;  %v8680_v21 = vld [vmem:[#allocation89_spill] sm:$0xff] }
 0x80e   :  { %v6386_v8 = vpop.eup %6385 }
 0x80f   :  { %v6388_v40 = vpop.eup %6387  ;;  %v1275_v9 = vmul.f32 %v6386_v8, %v7211_v46 }
 0x810   :  { %v1297_v15 = vmul.f32 %v6388_v40, %v7329_v55  ;;  %v6390_v19 = vpop.eup %6389 }
 0x811   :  { %v1276_v6 = vadd.f32 %v1275_v9, %v7217_v1  ;;  %v6392_v8 = vpop.eup %6391  ;;  %v1240_v46 = vmul.f32 %v6390_v19, %v8677_v27  ;;  %v1254_v19 = vadd.f32 %v1158_v53, %v8680_v21 }
 0x812   :  { %v1298_v50 = vadd.f32 %v1297_v15, %v7335_v28  ;;  %v1241_v40 = vmul.f32 %v6392_v8, %v8678_v61  ;;  %v1255_v8 = vmul.f32 %v1253_v0, %v7036_v38 }
 0x813   :  { %1279 = vrot.lane.b32.xlu0 %v1276_v6, %s6639_s30  ;;  %v1242_v15 = vadd.f32 %v1240_v46, %v8635_v10  ;;  %v1277_v46 = vmul.f32 %v1276_v6, %v7236_v23  ;;  %v8684_v23 = vld [vmem:[#allocation92_spill] sm:$0xff] }
 0x814   :  { %1301 = vrot.lane.b32.xlu1 %v1298_v50, %s6639_s30  ;;  %v1243_v28 = vadd.f32 %v1241_v40, %v8601_v18  ;;  %6393 = vtanh.f32 %v1255_v8  ;;  %v1299_v40 = vmul.f32 0.0, %v1298_v50 }
 0x816   :  { %v1245_v36 = vmul.f32 %v1243_v28, %v1242_v15 }
 0x81e   :  { %v6394_v22 = vpop.eup %6393 }
 0x885   :  { %v1280_v55 = vpop.permute.xlu0 %1279 }
 0x886   :  { %v1282_v9 = vmul.f32 %v1280_v55, %v1276_v6  ;;  %v1302_v1 = vpop.permute.xlu1 %1301  ;;  %v8681_v55 = vld [vmem:[#allocation90_spill] sm:$0xff] }
 0x887   :  { %v1304_v37 = vmul.f32 %v1302_v1, %v1298_v50  ;;  %v1256_v61 = vmul.f32 %v1254_v19, %v8681_v55 }
 0x888   :  { %1284 = vrot.lane.b32.xlu0 %v1282_v9, %s6640_s0 }
 0x889   :  { %1306 = vrot.lane.b32.xlu1 %v1304_v37, %s6640_s0  ;;  %6395 = vtanh.f32 %v1256_v61  ;;  %v8683_v61 = vld [vmem:[#allocation91_spill] sm:$0xff] }
 0x88c   :  { %1247 = vrot.lane.b32.xlu0 %v1245_v36, %s6639_s30  ;;  %v1259_v36 = vmul.f32 %v6394_v22, %v7036_v38 }
 0x88e   :  { %v1261_v19 = vadd.f32 %v1259_v36, %v8683_v61 }
 0x893   :  { %v6396_v53 = vpop.eup %6395 }
 0x894   :  { %v1260_v0 = vmul.f32 %v6396_v53, %v8681_v55 }
 0x896   :  { %v1262_v8 = vadd.f32 %v1260_v0, %v8684_v23 }
 0x8fa   :  { %v1285_v1 = vpop.permute.xlu0 %1284 }
 0x8fb   :  { %v7356_v9 = vadd.f32 %v1285_v1, %v1277_v46  ;;  %v1307_v37 = vpop.permute.xlu1 %1306  ;;  %v1264_v1 = vmul.f32 %v1262_v8, %v1261_v19 }
 0x8fc   :  { %v7358_v18 = vadd.f32 %v1307_v37, %v1299_v40  ;;  %v1244_v37 = vmul.f32 %v1242_v15, %v7232_v25  ;;  %v1263_v25 = vmul.f32 %v1261_v19, %v7242_v29  ;;  %v8686_v29 = vld [vmem:[#allocation103_spill] sm:$0xff]  ;;  %v8687_v19 = vld [vmem:[#allocation70_spill] sm:$0xff] }
 0x8fd   :  { %6397 = vtanh.f32 %v7356_v9 }
 0x8fe   :  { %8682 = vst [vmem:[#allocation95_spill] sm:$0xff] %v7358_v18  ;;  %6399 = vtanh.f32 %v7358_v18  ;;  %v1248_v40 = vpop.permute.xlu0 %1247 }
 0x8ff   :  { %v7370_v18 = vadd.f32 %v1248_v40, %v1244_v37 }
 0x901   :  { %6401 = vtanh.f32 %v7370_v18 }
 0x907   :  { %v6398_v21 = vpop.eup %6397 }
 0x908   :  { %v6400_v46 = vpop.eup %6399  ;;  %1290 = vrot.lane.b32.xlu1 %v6398_v21, %s6639_s30 }
 0x909   :  { %1312 = vrot.lane.b32.xlu0 %v6400_v46, %s6639_s30 }
 0x90b   :  { %v6402_v0 = vpop.eup %6401 }
 0x90c   :  { %1266 = vrot.lane.b32.xlu1 %v1264_v1, %s6639_s30  ;;  %v1252_v21 = vmul.f32 %v6402_v0, %v1243_v28  ;;  %v8691_v0 = vld [vmem:[#allocation72_spill] sm:$0xff] }
 0x97a   :  { %v1291_v22 = vpop.permute.xlu1 %1290 }
 0x97b   :  { %v1293_v53 = vmul.f32 %v1291_v22, %v1276_v6  ;;  %v1313_v36 = vpop.permute.xlu0 %1312 }
 0x97c   :  { %v7373_v23 = vmul.f32 %v1313_v36, %v1298_v50  ;;  %v8690_v36 = vld [vmem:[#allocation105_spill] sm:$0xff] }
 0x97d   :  { %1321 = vrot.lane.b32.xlu0 %v1293_v53, %s6640_s0  ;;  %v8689_v53 = vld [vmem:[#allocation104_spill] sm:$0xff] }
 0x97e   :  { %8685 = vst [vmem:[#allocation96_spill] sm:$0xff] %v7373_v23  ;;  %1325 = vrot.lane.b32.xlu1 %v7373_v23, %s6639_s30  ;;  %v1267_v46 = vpop.permute.xlu1 %1266  ;;  %v8701_v23 = vld [vmem:[#allocation25_spill] sm:$0xff] }
 0x97f   :  { %v7380_v15 = vadd.f32 %v1267_v46, %v1263_v25  ;;  %v8693_v46 = vld [vmem:[#allocation106_spill] sm:$0xff]  ;;  %v8694_v25 = vld [vmem:[#allocation20_spill] sm:$0xff] }
 0x981   :  { %1317 = vrot.lane.b32.xlu0 %v1252_v21, %s6639_s30  ;;  %6403 = vtanh.f32 %v7380_v15  ;;  %v8692_v21 = vld [vmem:[#allocation73_spill] sm:$0xff] }
 0x98b   :  { %v6404_v6 = vpop.eup %6403 }
 0x98c   :  { %v1271_v37 = vmul.f32 %v6404_v6, %v1262_v8  ;;  %v8688_v8 = vld [vmem:[#allocation71_spill] sm:$0xff]  ;;  %v8695_v6 = vld [vmem:[#allocation74_spill] sm:$0xff] }
 0x9ef   :  { %v1322_v1 = vpop.permute.xlu0 %1321 }
 0x9f0   :  { %v1326_v40 = vpop.permute.xlu1 %1325 }
 0x9f1   :  { %v1329_v50 = vsel %vm1014_vm2, %v1322_v1, %v1326_v40  ;;  %v8696_v1 = vld [vmem:[#allocation93_spill] sm:$0xff] }
 0x9f2   :  { %4544 = vmatprep.mubr.msk.f32.mxu0 %vm388_vm1, %v1329_v50  ;;  %4545 = vmatprep.mubr.msk.f32.mxu1 %vm388_vm1, %v1329_v50  ;;  %v8697_v40 = vld [vmem:[#allocation21_spill] sm:$0xff] }
 0x9f3   :  { %v1318_v28 = vpop.permute.xlu0 %1317 }
 0x9f4   :  { %v1328_v22 = vsel %vm388_vm1, %v1318_v28, %v1271_v37  ;;  %v8699_v37 = vld [vmem:[#allocation23_spill] sm:$0xff]  ;;  %v8700_v28 = vld [vmem:[#allocation24_spill] sm:$0xff] }
 0x9f5   :  { %1398 = vmatmul.mubr.f32.vlgmr.msra.gmra.mrb[8].mxu0 %v1328_v22  ;;  %1469 = vmatmul.mubr.f32.vlgmr.msra.gmra.mrb[26].mxu1 %v1328_v22 }
 0x9f6   :  { %5524 = vmatpush1.bf16.msra.mxu0 %v7074_v30  ;;  %4546 = vmatprep.mubr.msk.f32.mxu0 %vm388_vm1, %v1329_v50  ;;  %v8698_v50 = vld [vmem:[#allocation22_spill] sm:$0xff] }
 0x9f7   :  { %5526 = vmatprep.subr.bf16.mxu0 %v7076_v63  ;;  %5620 = vmatpush1.bf16.msra.mxu1 %v6834_v13 }
 0x9f8   :  { %5622 = vmatprep.subr.bf16.mxu1 %v6836_v16 }
 0x9fa   :  { %5528 = vmatpush1.bf16.msra.mxu0 %v7084_v7 }
 0x9fb   :  { %5530 = vmatprep.subr.bf16.mxu0 %v7088_v24  ;;  %5624 = vmatpush1.bf16.msra.mxu1 %v6840_v32  ;;  %v8722_v32 = vld [vmem:[#allocation81_spill] sm:$0xff] }
 0x9fc   :  { %5626 = vmatprep.subr.bf16.mxu1 %v6843_v33  ;;  %v8721_v33 = vld [vmem:[#allocation46_spill] sm:$0xff] }
 0x9fd   :  { %v192_v16 = vadd.f32 %v8722_v32, %v8721_v33 }
 0x9fe   :  { %5532 = vmatpush1.bf16.msra.mxu0 %v7093_v56 }
 0x9ff   :  { %5534 = vmatprep.subr.bf16.mxu0 %v8640_v49  ;;  %5628 = vmatpush1.bf16.msra.mxu1 %v6850_v45 }
 0xa00   :  { %5630 = vmatprep.subr.bf16.mxu1 %v8653_v12  ;;  %v8720_v12 = vld [vmem:[#allocation80_spill] sm:$0xff] }
 0xa01   :  { %v190_v45 = vadd.f32 %v8720_v12, %v8626_v4 }
 0xa02   :  { %5536 = vmatpush1.bf16.msra.mxu0 %v7101_v39 }
 0xa03   :  { %5538 = vmatprep.subr.bf16.mxu0 %v8642_v35  ;;  %5632 = vmatpush1.bf16.msra.mxu1 %v8654_v11  ;;  %v8719_v11 = vld [vmem:[#allocation43_spill] sm:$0xff] }
 0xa04   :  { %5634 = vmatprep.subr.bf16.mxu1 %v8655_v3  ;;  %v8718_v3 = vld [vmem:[#allocation42_spill] sm:$0xff] }
 0xa06   :  { %5540 = vmatpush1.bf16.msra.mxu0 %v7109_v14 }
 0xa07   :  { %5542 = vmatprep.subr.bf16.mxu0 %v8644_v5  ;;  %5636 = vmatpush1.bf16.msra.mxu1 %v8656_v17  ;;  %v8717_v17 = vld [vmem:[#allocation41_spill] sm:$0xff] }
 0xa08   :  { %5638 = vmatprep.subr.bf16.mxu1 %v8657_v2  ;;  %v8716_v2 = vld [vmem:[#allocation40_spill] sm:$0xff] }
 0xa0a   :  { %5544 = vmatpush1.bf16.msra.mxu0 %v7117_v20 }
 0xa0b   :  { %5546 = vmatprep.subr.bf16.mxu0 %v8646_v62  ;;  %5640 = vmatpush1.bf16.msra.mxu1 %v8658_v31  ;;  %v8715_v31 = vld [vmem:[#allocation39_spill] sm:$0xff] }
 0xa0c   :  { %5642 = vmatprep.subr.bf16.mxu1 %v8659_v60  ;;  %v8714_v60 = vld [vmem:[#allocation38_spill] sm:$0xff] }
 0xa0e   :  { %5548 = vmatpush1.bf16.msra.mxu0 %v7125_v26 }
 0xa0f   :  { %5550 = vmatprep.subr.bf16.mxu0 %v8648_v51  ;;  %5644 = vmatpush1.bf16.msra.mxu1 %v8660_v59  ;;  %v8713_v59 = vld [vmem:[#allocation37_spill] sm:$0xff] }
 0xa10   :  { %5646 = vmatprep.subr.bf16.mxu1 %v8661_v54  ;;  %v8712_v54 = vld [vmem:[#allocation36_spill] sm:$0xff] }
 0xa12   :  { %5552 = vmatpush1.bf16.msra.mxu0 %v7133_v34 }
 0xa13   :  { %5554 = vmatprep.subr.bf16.mxu0 %v8650_v57  ;;  %5648 = vmatpush1.bf16.msra.mxu1 %v8662_v52  ;;  %v8711_v52 = vld [vmem:[#allocation35_spill] sm:$0xff] }
 0xa14   :  { %5650 = vmatprep.subr.bf16.mxu1 %v8663_v48  ;;  %v8710_v48 = vld [vmem:[#allocation34_spill] sm:$0xff] }
 0xa16   :  { %5556 = vmatpush1.bf16.msra.mxu0 %v7141_v41 }
 0xa17   :  { %5558 = vmatprep.subr.bf16.mxu0 %v8652_v44  ;;  %5652 = vmatpush1.bf16.msra.mxu1 %v8664_v43  ;;  %v8709_v43 = vld [vmem:[#allocation33_spill] sm:$0xff] }
 0xa18   :  { %5654 = vmatprep.subr.bf16.mxu1 %v8665_v42  ;;  %v8708_v42 = vld [vmem:[#allocation32_spill] sm:$0xff] }
 0xa1a   :  { %5560 = vmatpush1.bf16.msra.mxu0 %v7149_v47  ;;  %v8724_v47 = vld [vmem:[#allocation49_spill] sm:$0xff] }
 0xa1b   :  { %5562 = vmatprep.subr.bf16.mxu0 %v8686_v29  ;;  %5656 = vmatpush1.bf16.msra.mxu1 %v8687_v19  ;;  %v8706_v19 = vld [vmem:[#allocation30_spill] sm:$0xff] }
 0xa1c   :  { %5658 = vmatprep.subr.bf16.mxu1 %v8688_v8  ;;  %v8704_v8 = vld [vmem:[#allocation28_spill] sm:$0xff] }
 0xa1e   :  { %5564 = vmatpush1.bf16.msra.mxu0 %v8689_v53 }
 0xa1f   :  { %5566 = vmatprep.subr.bf16.mxu0 %v8690_v36  ;;  %5660 = vmatpush1.bf16.msra.mxu1 %v8691_v0  ;;  %v8703_v0 = vld [vmem:[#allocation27_spill] sm:$0xff] }
 0xa20   :  { %5662 = vmatprep.subr.bf16.mxu1 %v8692_v21  ;;  %v8702_v21 = vld [vmem:[#allocation26_spill] sm:$0xff] }
 0xa22   :  { %5568 = vmatpush1.bf16.msra.mxu0 %v8693_v46 }
 0xa23   :  { %5570 = vmatprep.subr.bf16.mxu0 %v8694_v25  ;;  %5664 = vmatpush1.bf16.msra.mxu1 %v8695_v6  ;;  %v8705_v6 = vld [vmem:[#allocation29_spill] sm:$0xff] }
 0xa24   :  { %5666 = vmatprep.subr.bf16.mxu1 %v8696_v1 }
 0xa25   :  { %1540 = vmatmul.mubr.f32.vlgmr.msra.gmra.mrb[10].mxu0 %v1328_v22  ;;  %v8707_v22 = vld [vmem:[#allocation31_spill] sm:$0xff] }
 0xa26   :  { %5572 = vmatpush1.bf16.msra.mxu0 %v8697_v40 }
 0xa27   :  { %5574 = vmatprep.subr.bf16.mxu0 %v8698_v50 }
 0xa2a   :  { %5576 = vmatpush1.bf16.msra.mxu0 %v8699_v37 }
 0xa2b   :  { %5578 = vmatprep.subr.bf16.mxu0 %v8700_v28 }
 0xa2e   :  { %5580 = vmatpush1.bf16.msra.mxu0 %v8701_v23 }
 0xa2f   :  { %5582 = vmatprep.subr.bf16.mxu0 %v8702_v21 }
 0xa32   :  { %5584 = vmatpush1.bf16.msra.mxu0 %v8703_v0 }
 0xa33   :  { %5586 = vmatprep.subr.bf16.mxu0 %v8704_v8 }
 0xa36   :  { %5588 = vmatpush1.bf16.msra.mxu0 %v8705_v6 }
 0xa37   :  { %5590 = vmatprep.subr.bf16.mxu0 %v8706_v19 }
 0xa3a   :  { %5592 = vmatpush1.bf16.msra.mxu0 %v8707_v22 }
 0xa3b   :  { %5594 = vmatprep.subr.bf16.mxu0 %v8708_v42 }
 0xa3e   :  { %5596 = vmatpush1.bf16.msra.mxu0 %v8709_v43 }
 0xa3f   :  { %5598 = vmatprep.subr.bf16.mxu0 %v8710_v48 }
 0xa42   :  { %5600 = vmatpush1.bf16.msra.mxu0 %v8711_v52 }
 0xa43   :  { %5602 = vmatprep.subr.bf16.mxu0 %v8712_v54 }
 0xa46   :  { %5604 = vmatpush1.bf16.msra.mxu0 %v8713_v59  ;;  %v8726_v59 = vld [vmem:[#allocation75_spill] sm:$0xff] }
 0xa47   :  { %5606 = vmatprep.subr.bf16.mxu0 %v8714_v60  ;;  %v8725_v60 = vld [vmem:[#allocation77_spill] sm:$0xff] }
 0xa4a   :  { %5608 = vmatpush1.bf16.msra.mxu0 %v8715_v31 }
 0xa4b   :  { %5610 = vmatprep.subr.bf16.mxu0 %v8716_v2 }
 0xa4e   :  { %5612 = vmatpush1.bf16.msra.mxu0 %v8717_v17  ;;  %v8723_v17 = vld [vmem:[#allocation76_spill] sm:$0xff] }
 0xa4f   :  { %5614 = vmatprep.subr.bf16.mxu0 %v8718_v3 }
 0xa52   :  { %5616 = vmatpush1.bf16.msra.mxu0 %v8719_v11 }
 0xa53   :  { %5714 = vmatprep.subr.bf16.mxu0 %v8694_v25 }
 0xac8   :  { %v1399_v13 = vpop.f32.mrb[8].mxu0  ;;  %v1470_v1 = vpop.f32.mrb[26].mxu1 }
 0xac9   :  { %v1548_v46 = vadd.f32 %v1399_v13, %v190_v45  ;;  %v1401_v36 = vpop.f32.mrb[9].mxu0  ;;  %v1472_v53 = vpop.f32.mrb[27].mxu1  ;;  %v8727_v45 = vld [vmem:[#allocation107_spill] sm:$0xff] }
 0xaca   :  { %v1549_v2 = vadd.f32 %v1401_v36, %v192_v16  ;;  %v8728_v36 = vld [vmem:[#allocation94_spill] sm:$0xff] }
 0xaf8   :  { %v1541_v31 = vpop.f32.mrb[10].mxu0 }
 0xaf9   :  { %v1586_v29 = vadd.f32 %v1541_v31, %v8723_v17  ;;  %v1543_v3 = vpop.f32.mrb[11].mxu0  ;;  %v8729_v31 = vld [vmem:[#allocation48_spill] sm:$0xff] }
 0xafa   :  { %v1608_v11 = vadd.f32 %v1543_v3, %v8724_v47  ;;  %v1550_v3 = vmul.f32 %v1548_v46, %v8677_v27  ;;  %v1567_v46 = vadd.f32 %v1470_v1, %v8679_v58 }
 0xafb   :  { %v1587_v25 = vmul.f32 %v1586_v29, %v8725_v60 }
 0xafc   :  { %v1609_v44 = vmul.f32 %v1608_v11, %v8726_v59  ;;  %v1551_v11 = vmul.f32 %v1549_v2, %v8729_v31 }
 0xafd   :  { %6405 = vtanh.f32 %v1587_v25 }
 0xafe   :  { %6407 = vtanh.f32 %v1609_v44 }
 0xaff   :  { %6409 = vtanh.f32 %v1550_v3  ;;  %v8731_v3 = vld [vmem:[#allocation89_spill] sm:$0xff] }
 0xb00   :  { %6411 = vtanh.f32 %v1551_v11  ;;  %v1568_v11 = vadd.f32 %v1472_v53, %v8731_v3 }
 0xb07   :  { %v6406_v12 = vpop.eup %6405 }
 0xb08   :  { %v6408_v32 = vpop.eup %6407  ;;  %v1589_v33 = vmul.f32 %v6406_v12, %v8725_v60 }
 0xb09   :  { %v1611_v13 = vmul.f32 %v6408_v32, %v8726_v59  ;;  %v6410_v44 = vpop.eup %6409 }
 0xb0a   :  { %v1590_v16 = vadd.f32 %v1589_v33, %v8727_v45  ;;  %v6412_v29 = vpop.eup %6411  ;;  %v1554_v25 = vmul.f32 %v6410_v44, %v8677_v27  ;;  %v1569_v44 = vmul.f32 %v1567_v46, %v7036_v38 }
 0xb0b   :  { %v1612_v4 = vadd.f32 %v1611_v13, %v8728_v36  ;;  %v1555_v12 = vmul.f32 %v6412_v29, %v8729_v31  ;;  %v8730_v36 = vld [vmem:[#allocation50_spill] sm:$0xff]  ;;  %v1570_v29 = vmul.f32 %v1568_v11, %v8681_v55  ;;  %v8733_v11 = vld [vmem:[#allocation92_spill] sm:$0xff] }
 0xb0c   :  { %1593 = vrot.lane.b32.xlu1 %v1590_v16, %s6639_s30  ;;  %v1556_v13 = vadd.f32 %v1554_v25, %v8635_v10  ;;  %6413 = vtanh.f32 %v1569_v44  ;;  %v1591_v25 = vmul.f32 %v1590_v16, %v7356_v9 }
 0xb0d   :  { %1615 = vrot.lane.b32.xlu0 %v1612_v4, %s6639_s30  ;;  %v1557_v59 = vadd.f32 %v1555_v12, %v8730_v36  ;;  %6415 = vtanh.f32 %v1570_v29  ;;  %v8732_v12 = vld [vmem:[#allocation95_spill] sm:$0xff] }
 0xb0f   :  { %v1559_v2 = vmul.f32 %v1557_v59, %v1556_v13 }
 0xb16   :  { %v6414_v1 = vpop.eup %6413 }
 0xb17   :  { %v6416_v53 = vpop.eup %6415 }
 0xb18   :  { %v1574_v46 = vmul.f32 %v6416_v53, %v8681_v55 }
 0xb1a   :  { %v1576_v44 = vadd.f32 %v1574_v46, %v8733_v11 }
 0xb7e   :  { %v1594_v32 = vpop.permute.xlu1 %1593 }
 0xb7f   :  { %v1596_v33 = vmul.f32 %v1594_v32, %v1590_v16  ;;  %v1616_v45 = vpop.permute.xlu0 %1615  ;;  %v1613_v32 = vmul.f32 %v1612_v4, %v8732_v12 }
 0xb80   :  { %v1618_v60 = vmul.f32 %v1616_v45, %v1612_v4 }
 0xb81   :  { %1598 = vrot.lane.b32.xlu1 %v1596_v33, %s6640_s0 }
 0xb82   :  { %1620 = vrot.lane.b32.xlu0 %v1618_v60, %s6640_s0 }
 0xb85   :  { %1561 = vrot.lane.b32.xlu1 %v1559_v2, %s6639_s30  ;;  %v1573_v2 = vmul.f32 %v6414_v1, %v7036_v38 }
 0xb87   :  { %v1575_v9 = vadd.f32 %v1573_v2, %v8683_v61 }
 0xbf3   :  { %v1599_v45 = vpop.permute.xlu1 %1598 }
 0xbf4   :  { %v7489_v33 = vadd.f32 %v1599_v45, %v1591_v25  ;;  %v1621_v60 = vpop.permute.xlu0 %1620  ;;  %v1578_v45 = vmul.f32 %v1576_v44, %v1575_v9 }
 0xbf5   :  { %v7491_v36 = vadd.f32 %v1621_v60, %v1613_v32  ;;  %v1558_v32 = vmul.f32 %v1556_v13, %v7370_v18  ;;  %v1577_v18 = vmul.f32 %v1575_v9, %v7380_v15  ;;  %v8735_v15 = vld [vmem:[#allocation101_spill] sm:$0xff] }
 0xbf6   :  { %6417 = vtanh.f32 %v7489_v33  ;;  %v8736_v9 = vld [vmem:[#allocation37_spill] sm:$0xff] }
 0xbf7   :  { %6419 = vtanh.f32 %v7491_v36  ;;  %v1562_v12 = vpop.permute.xlu1 %1561 }
 0xbf8   :  { %v7503_v60 = vadd.f32 %v1562_v12, %v1558_v32 }
 0xbfa   :  { %6421 = vtanh.f32 %v7503_v60 }
 0xc00   :  { %v6418_v29 = vpop.eup %6417 }
 0xc01   :  { %v6420_v25 = vpop.eup %6419  ;;  %1604 = vrot.lane.b32.xlu0 %v6418_v29, %s6639_s30 }
 0xc02   :  { %1626 = vrot.lane.b32.xlu1 %v6420_v25, %s6639_s30 }
 0xc04   :  { %v6422_v46 = vpop.eup %6421 }
 0xc05   :  { %1580 = vrot.lane.b32.xlu0 %v1578_v45, %s6639_s30  ;;  %v1566_v29 = vmul.f32 %v6422_v46, %v1557_v59  ;;  %v8740_v46 = vld [vmem:[#allocation39_spill] sm:$0xff] }
 0xc73   :  { %v1605_v1 = vpop.permute.xlu0 %1604 }
 0xc74   :  { %v1607_v53 = vmul.f32 %v1605_v1, %v1590_v16  ;;  %v1627_v2 = vpop.permute.xlu1 %1626 }
 0xc75   :  { %v7506_v11 = vmul.f32 %v1627_v2, %v1612_v4  ;;  %v8739_v2 = vld [vmem:[#allocation103_spill] sm:$0xff] }
 0xc76   :  { %1635 = vrot.lane.b32.xlu1 %v1607_v53, %s6640_s0  ;;  %v8738_v53 = vld [vmem:[#allocation102_spill] sm:$0xff] }
 0xc77   :  { %8734 = vst [vmem:[#allocation97_spill] sm:$0xff] %v7506_v11  ;;  %1639 = vrot.lane.b32.xlu0 %v7506_v11, %s6639_s30  ;;  %v1581_v25 = vpop.permute.xlu0 %1580  ;;  %v8750_v11 = vld [vmem:[#allocation52_spill] sm:$0xff] }
 0xc78   :  { %v7513_v13 = vadd.f32 %v1581_v25, %v1577_v18  ;;  %v8742_v25 = vld [vmem:[#allocation104_spill] sm:$0xff]  ;;  %v8743_v18 = vld [vmem:[#allocation105_spill] sm:$0xff] }
 0xc7a   :  { %1631 = vrot.lane.b32.xlu1 %v1566_v29, %s6639_s30  ;;  %6423 = vtanh.f32 %v7513_v13  ;;  %v8741_v29 = vld [vmem:[#allocation40_spill] sm:$0xff] }
 0xc84   :  { %v6424_v16 = vpop.eup %6423 }
 0xc85   :  { %v1585_v32 = vmul.f32 %v6424_v16, %v1576_v44  ;;  %v8737_v44 = vld [vmem:[#allocation38_spill] sm:$0xff]  ;;  %v8744_v16 = vld [vmem:[#allocation41_spill] sm:$0xff] }
 0xce8   :  { %v1636_v45 = vpop.permute.xlu1 %1635 }
 0xce9   :  { %v1640_v12 = vpop.permute.xlu0 %1639 }
 0xcea   :  { %v1643_v4 = vsel %vm1014_vm2, %v1636_v45, %v1640_v12  ;;  %v8745_v45 = vld [vmem:[#allocation42_spill] sm:$0xff] }
 0xceb   :  { %4547 = vmatprep.mubr.msk.f32.mxu0 %vm388_vm1, %v1643_v4  ;;  %4548 = vmatprep.mubr.msk.f32.mxu1 %vm388_vm1, %v1643_v4  ;;  %v8746_v12 = vld [vmem:[#allocation106_spill] sm:$0xff] }
 0xcec   :  { %v1632_v59 = vpop.permute.xlu1 %1631 }
 0xced   :  { %v1642_v1 = vsel %vm388_vm1, %v1632_v59, %v1585_v32  ;;  %v8748_v32 = vld [vmem:[#allocation43_spill] sm:$0xff]  ;;  %v8749_v59 = vld [vmem:[#allocation93_spill] sm:$0xff] }
 0xcee   :  { %1712 = vmatmul.mubr.f32.vlgmr.msra.gmra.mrb[12].mxu0 %v1642_v1  ;;  %1783 = vmatmul.mubr.f32.vlgmr.msra.gmra.mrb[28].mxu1 %v1642_v1 }
 0xcef   :  { %5668 = vmatpush1.bf16.msra.mxu1 %v7074_v30  ;;  %4549 = vmatprep.mubr.msk.f32.mxu1 %vm388_vm1, %v1643_v4  ;;  %v8747_v4 = vld [vmem:[#allocation51_spill] sm:$0xff] }
 0xcf0   :  { %5670 = vmatprep.subr.bf16.mxu1 %v7076_v63  ;;  %5716 = vmatpush1.bf16.msra.mxu0 %v8697_v40  ;;  %v8774_v40 = vld [vmem:[#allocation82_spill] sm:$0xff] }
 0xcf1   :  { %5718 = vmatprep.subr.bf16.mxu0 %v8698_v50  ;;  %v8773_v50 = vld [vmem:[#allocation45_spill] sm:$0xff] }
 0xcf3   :  { %5672 = vmatpush1.bf16.msra.mxu1 %v7084_v7 }
 0xcf4   :  { %5674 = vmatprep.subr.bf16.mxu1 %v7088_v24  ;;  %5720 = vmatpush1.bf16.msra.mxu0 %v8699_v37  ;;  %v8772_v37 = vld [vmem:[#allocation74_spill] sm:$0xff] }
 0xcf5   :  { %5722 = vmatprep.subr.bf16.mxu0 %v8700_v28  ;;  %v8771_v28 = vld [vmem:[#allocation73_spill] sm:$0xff] }
 0xcf7   :  { %5676 = vmatpush1.bf16.msra.mxu1 %v7093_v56 }
 0xcf8   :  { %5678 = vmatprep.subr.bf16.mxu1 %v8640_v49  ;;  %5724 = vmatpush1.bf16.msra.mxu0 %v8701_v23  ;;  %v8770_v23 = vld [vmem:[#allocation72_spill] sm:$0xff] }
 0xcf9   :  { %5726 = vmatprep.subr.bf16.mxu0 %v8702_v21  ;;  %v8769_v21 = vld [vmem:[#allocation71_spill] sm:$0xff] }
 0xcfb   :  { %5680 = vmatpush1.bf16.msra.mxu1 %v7101_v39 }
 0xcfc   :  { %5682 = vmatprep.subr.bf16.mxu1 %v8642_v35  ;;  %5728 = vmatpush1.bf16.msra.mxu0 %v8703_v0  ;;  %v8768_v0 = vld [vmem:[#allocation70_spill] sm:$0xff] }
 0xcfd   :  { %5730 = vmatprep.subr.bf16.mxu0 %v8704_v8  ;;  %v8767_v8 = vld [vmem:[#allocation69_spill] sm:$0xff] }
 0xcff   :  { %5684 = vmatpush1.bf16.msra.mxu1 %v7109_v14 }
 0xd00   :  { %5686 = vmatprep.subr.bf16.mxu1 %v8644_v5  ;;  %5732 = vmatpush1.bf16.msra.mxu0 %v8705_v6  ;;  %v8766_v6 = vld [vmem:[#allocation68_spill] sm:$0xff] }
 0xd01   :  { %5734 = vmatprep.subr.bf16.mxu0 %v8706_v19  ;;  %v8765_v19 = vld [vmem:[#allocation67_spill] sm:$0xff] }
 0xd03   :  { %5688 = vmatpush1.bf16.msra.mxu1 %v7117_v20 }
 0xd04   :  { %5690 = vmatprep.subr.bf16.mxu1 %v8646_v62  ;;  %5736 = vmatpush1.bf16.msra.mxu0 %v8707_v22  ;;  %v8764_v22 = vld [vmem:[#allocation66_spill] sm:$0xff] }
 0xd05   :  { %5738 = vmatprep.subr.bf16.mxu0 %v8708_v42  ;;  %v8763_v42 = vld [vmem:[#allocation65_spill] sm:$0xff] }
 0xd07   :  { %5692 = vmatpush1.bf16.msra.mxu1 %v7125_v26 }
 0xd08   :  { %5694 = vmatprep.subr.bf16.mxu1 %v8648_v51  ;;  %5740 = vmatpush1.bf16.msra.mxu0 %v8709_v43  ;;  %v8762_v43 = vld [vmem:[#allocation64_spill] sm:$0xff] }
 0xd09   :  { %5742 = vmatprep.subr.bf16.mxu0 %v8710_v48  ;;  %v8761_v48 = vld [vmem:[#allocation63_spill] sm:$0xff] }
 0xd0b   :  { %5696 = vmatpush1.bf16.msra.mxu1 %v7133_v34 }
 0xd0c   :  { %5698 = vmatprep.subr.bf16.mxu1 %v8650_v57  ;;  %5744 = vmatpush1.bf16.msra.mxu0 %v8711_v52  ;;  %v8759_v52 = vld [vmem:[#allocation61_spill] sm:$0xff] }
 0xd0d   :  { %5746 = vmatprep.subr.bf16.mxu0 %v8712_v54  ;;  %v8757_v54 = vld [vmem:[#allocation59_spill] sm:$0xff] }
 0xd0f   :  { %5700 = vmatpush1.bf16.msra.mxu1 %v7141_v41  ;;  %v8777_v41 = vld [vmem:[#allocation77_spill] sm:$0xff] }
 0xd10   :  { %5702 = vmatprep.subr.bf16.mxu1 %v8735_v15  ;;  %5748 = vmatpush1.bf16.msra.mxu0 %v8736_v9  ;;  %v8756_v9 = vld [vmem:[#allocation58_spill] sm:$0xff] }
 0xd11   :  { %5750 = vmatprep.subr.bf16.mxu0 %v8737_v44  ;;  %v8753_v44 = vld [vmem:[#allocation55_spill] sm:$0xff] }
 0xd13   :  { %5704 = vmatpush1.bf16.msra.mxu1 %v8738_v53 }
 0xd14   :  { %5706 = vmatprep.subr.bf16.mxu1 %v8739_v2  ;;  %5752 = vmatpush1.bf16.msra.mxu0 %v8740_v46  ;;  %v8752_v46 = vld [vmem:[#allocation54_spill] sm:$0xff] }
 0xd15   :  { %5754 = vmatprep.subr.bf16.mxu0 %v8741_v29  ;;  %v8751_v29 = vld [vmem:[#allocation53_spill] sm:$0xff] }
 0xd17   :  { %5708 = vmatpush1.bf16.msra.mxu1 %v8742_v25 }
 0xd18   :  { %5710 = vmatprep.subr.bf16.mxu1 %v8743_v18  ;;  %5756 = vmatpush1.bf16.msra.mxu0 %v8744_v16  ;;  %v8754_v16 = vld [vmem:[#allocation56_spill] sm:$0xff]  ;;  %v8776_v18 = vld [vmem:[#allocation83_spill] sm:$0xff] }
 0xd19   :  { %5758 = vmatprep.subr.bf16.mxu0 %v8745_v45  ;;  %v8755_v45 = vld [vmem:[#allocation57_spill] sm:$0xff] }
 0xd1b   :  { %5712 = vmatpush1.bf16.msra.mxu1 %v8746_v12  ;;  %v8775_v12 = vld [vmem:[#allocation46_spill] sm:$0xff] }
 0xd1c   :  { %5762 = vmatprep.subr.bf16.mxu1 %v8747_v4  ;;  %5760 = vmatpush1.bf16.msra.mxu0 %v8748_v32  ;;  %v8758_v32 = vld [vmem:[#allocation60_spill] sm:$0xff]  ;;  %v198_v25 = vadd.f32 %v8776_v18, %v8775_v12 }
 0xd1d   :  { %5810 = vmatprep.subr.bf16.mxu0 %v8749_v59  ;;  %v196_v59 = vadd.f32 %v8774_v40, %v8773_v50 }
 0xd1e   :  { %1854 = vmatmul.mubr.f32.vlgmr.msra.gmra.mrb[30].mxu1 %v1642_v1  ;;  %v8760_v1 = vld [vmem:[#allocation62_spill] sm:$0xff] }
 0xd1f   :  { %5764 = vmatpush1.bf16.msra.mxu1 %v8750_v11 }
 0xd20   :  { %5766 = vmatprep.subr.bf16.mxu1 %v8751_v29 }
 0xd23   :  { %5768 = vmatpush1.bf16.msra.mxu1 %v8752_v46 }
 0xd24   :  { %5770 = vmatprep.subr.bf16.mxu1 %v8753_v44 }
 0xd27   :  { %5772 = vmatpush1.bf16.msra.mxu1 %v8754_v16 }
 0xd28   :  { %5774 = vmatprep.subr.bf16.mxu1 %v8755_v45 }
 0xd2b   :  { %5776 = vmatpush1.bf16.msra.mxu1 %v8756_v9 }
 0xd2c   :  { %5778 = vmatprep.subr.bf16.mxu1 %v8757_v54 }
 0xd2f   :  { %5780 = vmatpush1.bf16.msra.mxu1 %v8758_v32 }
 0xd30   :  { %5782 = vmatprep.subr.bf16.mxu1 %v8759_v52 }
 0xd33   :  { %5784 = vmatpush1.bf16.msra.mxu1 %v8760_v1 }
 0xd34   :  { %5786 = vmatprep.subr.bf16.mxu1 %v8761_v48 }
 0xd37   :  { %5788 = vmatpush1.bf16.msra.mxu1 %v8762_v43 }
 0xd38   :  { %5790 = vmatprep.subr.bf16.mxu1 %v8763_v42 }
 0xd3b   :  { %5792 = vmatpush1.bf16.msra.mxu1 %v8764_v22 }
 0xd3c   :  { %5794 = vmatprep.subr.bf16.mxu1 %v8765_v19  ;;  %v8778_v19 = vld [vmem:[#allocation75_spill] sm:$0xff] }
 0xd3f   :  { %5796 = vmatpush1.bf16.msra.mxu1 %v8766_v6 }
 0xd40   :  { %5798 = vmatprep.subr.bf16.mxu1 %v8767_v8 }
 0xd43   :  { %5800 = vmatpush1.bf16.msra.mxu1 %v8768_v0 }
 0xd44   :  { %5802 = vmatprep.subr.bf16.mxu1 %v8769_v21 }
 0xd47   :  { %5804 = vmatpush1.bf16.msra.mxu1 %v8770_v23 }
 0xd48   :  { %5806 = vmatprep.subr.bf16.mxu1 %v8771_v28 }
 0xd4b   :  { %5808 = vmatpush1.bf16.msra.mxu1 %v8772_v37 }
 0xd4c   :  { %5906 = vmatprep.subr.bf16.mxu1 %v8747_v4 }
 0xdc1   :  { %v1713_v2 = vpop.f32.mrb[12].mxu0  ;;  %v1784_v53 = vpop.f32.mrb[28].mxu1 }
 0xdc2   :  { %v1862_v8 = vadd.f32 %v1713_v2, %v196_v59  ;;  %v1715_v0 = vpop.f32.mrb[13].mxu0  ;;  %v1786_v6 = vpop.f32.mrb[29].mxu1  ;;  %v8779_v59 = vld [vmem:[#allocation107_spill] sm:$0xff] }
 0xdc3   :  { %v1863_v21 = vadd.f32 %v1715_v0, %v198_v25  ;;  %v8780_v25 = vld [vmem:[#allocation94_spill] sm:$0xff] }
 0xdf1   :  { %v1855_v15 = vpop.f32.mrb[30].mxu1 }
 0xdf2   :  { %v1900_v23 = vadd.f32 %v1855_v15, %v8723_v17  ;;  %v1857_v28 = vpop.f32.mrb[31].mxu1  ;;  %v1865_v17 = vmul.f32 %v1863_v21, %v8729_v31  ;;  %v1881_v21 = vadd.f32 %v1784_v53, %v8679_v58 }
 0xdf3   :  { %v1922_v37 = vadd.f32 %v1857_v28, %v8724_v47  ;;  %v1864_v47 = vmul.f32 %v1862_v8, %v8677_v27 }
 0xdf4   :  { %v1901_v4 = vmul.f32 %v1900_v23, %v8777_v41 }
 0xdf5   :  { %v1923_v22 = vmul.f32 %v1922_v37, %v8778_v19 }
 0xdf6   :  { %6425 = vtanh.f32 %v1901_v4  ;;  %v8781_v4 = vld [vmem:[#allocation50_spill] sm:$0xff] }
 0xdf7   :  { %6427 = vtanh.f32 %v1923_v22 }
 0xdf8   :  { %6429 = vtanh.f32 %v1864_v47 }
 0xdf9   :  { %6431 = vtanh.f32 %v1865_v17 }
 0xe00   :  { %v6426_v40 = vpop.eup %6425 }
 0xe01   :  { %v6428_v18 = vpop.eup %6427  ;;  %v1903_v12 = vmul.f32 %v6426_v40, %v8777_v41 }
 0xe02   :  { %v1925_v2 = vmul.f32 %v6428_v18, %v8778_v19  ;;  %v6430_v23 = vpop.eup %6429 }
 0xe03   :  { %v1904_v0 = vadd.f32 %v1903_v12, %v8779_v59  ;;  %v6432_v37 = vpop.eup %6431  ;;  %v1868_v41 = vmul.f32 %v6430_v23, %v8677_v27  ;;  %v1883_v59 = vmul.f32 %v1881_v21, %v7036_v38 }
 0xe04   :  { %v1926_v50 = vadd.f32 %v1925_v2, %v8780_v25  ;;  %v1869_v19 = vmul.f32 %v6432_v37, %v8729_v31  ;;  %v1882_v2 = vadd.f32 %v1786_v6, %v8731_v3 }
 0xe05   :  { %1907 = vrot.lane.b32.xlu0 %v1904_v0, %s6639_s30  ;;  %v1870_v12 = vadd.f32 %v1868_v41, %v8635_v10  ;;  %6433 = vtanh.f32 %v1883_v59  ;;  %v1905_v47 = vmul.f32 %v1904_v0, %v7489_v33 }
 0xe06   :  { %1929 = vrot.lane.b32.xlu1 %v1926_v50, %s6639_s30  ;;  %v1871_v40 = vadd.f32 %v1869_v19, %v8781_v4  ;;  %v1884_v25 = vmul.f32 %v1882_v2, %v8681_v55  ;;  %v1927_v23 = vmul.f32 %v1926_v50, %v7491_v36 }
 0xe07   :  { %v1872_v59 = vmul.f32 %v1870_v12, %v7503_v60 }
 0xe08   :  { %v1873_v8 = vmul.f32 %v1871_v40, %v1870_v12  ;;  %6435 = vtanh.f32 %v1884_v25 }
 0xe0f   :  { %v6434_v53 = vpop.eup %6433 }
 0xe12   :  { %v6436_v6 = vpop.eup %6435 }
 0xe77   :  { %v1908_v28 = vpop.permute.xlu0 %1907 }
 0xe78   :  { %v1910_v22 = vmul.f32 %v1908_v28, %v1904_v0  ;;  %v1930_v15 = vpop.permute.xlu1 %1929  ;;  %v1887_v28 = vmul.f32 %v6434_v53, %v7036_v38 }
 0xe79   :  { %v1932_v18 = vmul.f32 %v1930_v15, %v1926_v50  ;;  %v8782_v15 = vld [vmem:[#allocation92_spill] sm:$0xff] }
 0xe7a   :  { %1912 = vrot.lane.b32.xlu0 %v1910_v22, %s6640_s0  ;;  %v1888_v22 = vmul.f32 %v6436_v6, %v8681_v55  ;;  %v1889_v33 = vadd.f32 %v1887_v28, %v8683_v61 }
 0xe7b   :  { %1934 = vrot.lane.b32.xlu1 %v1932_v18, %s6640_s0 }
 0xe7c   :  { %v1890_v18 = vadd.f32 %v1888_v22, %v8782_v15  ;;  %v1891_v60 = vmul.f32 %v1889_v33, %v7513_v13  ;;  %v8784_v13 = vld [vmem:[#allocation66_spill] sm:$0xff] }
 0xe7e   :  { %1875 = vrot.lane.b32.xlu0 %v1873_v8, %s6639_s30  ;;  %v1892_v21 = vmul.f32 %v1890_v18, %v1889_v33  ;;  %v8785_v33 = vld [vmem:[#allocation67_spill] sm:$0xff] }
 0xeec   :  { %v1913_v17 = vpop.permute.xlu0 %1912 }
 0xeed   :  { %v7622_v37 = vadd.f32 %v1913_v17, %v1905_v47  ;;  %v1935_v41 = vpop.permute.xlu1 %1934 }
 0xeee   :  { %v7624_v19 = vadd.f32 %v1935_v41, %v1927_v23 }
 0xeef   :  { %6437 = vtanh.f32 %v7622_v37 }
 0xef0   :  { %6439 = vtanh.f32 %v7624_v19  ;;  %v1876_v2 = vpop.permute.xlu0 %1875 }
 0xef1   :  { %v7636_v25 = vadd.f32 %v1876_v2, %v1872_v59  ;;  %v8787_v2 = vld [vmem:[#allocation101_spill] sm:$0xff]  ;;  %v8788_v59 = vld [vmem:[#allocation68_spill] sm:$0xff] }
 0xef3   :  { %6441 = vtanh.f32 %v7636_v25 }
 0xef9   :  { %v6438_v36 = vpop.eup %6437 }
 0xefa   :  { %v6440_v8 = vpop.eup %6439  ;;  %1918 = vrot.lane.b32.xlu1 %v6438_v36, %s6639_s30 }
 0xefb   :  { %1940 = vrot.lane.b32.xlu0 %v6440_v8, %s6639_s30 }
 0xefd   :  { %v6442_v41 = vpop.eup %6441 }
 0xefe   :  { %1894 = vrot.lane.b32.xlu1 %v1892_v21, %s6639_s30  ;;  %v1880_v6 = vmul.f32 %v6442_v41, %v1871_v40  ;;  %v8792_v41 = vld [vmem:[#allocation70_spill] sm:$0xff] }
 0xf6c   :  { %v1919_v47 = vpop.permute.xlu1 %1918 }
 0xf6d   :  { %v1921_v17 = vmul.f32 %v1919_v47, %v1904_v0  ;;  %v1941_v23 = vpop.permute.xlu0 %1940  ;;  %v8789_v47 = vld [vmem:[#allocation69_spill] sm:$0xff] }
 0xf6e   :  { %v7639_v53 = vmul.f32 %v1941_v23, %v1926_v50  ;;  %v8791_v23 = vld [vmem:[#allocation103_spill] sm:$0xff] }
 0xf6f   :  { %1949 = vrot.lane.b32.xlu0 %v1921_v17, %s6640_s0  ;;  %v8790_v17 = vld [vmem:[#allocation102_spill] sm:$0xff] }
 0xf70   :  { %8783 = vst [vmem:[#allocation98_spill] sm:$0xff] %v7639_v53  ;;  %1953 = vrot.lane.b32.xlu1 %v7639_v53, %s6639_s30  ;;  %v1895_v28 = vpop.permute.xlu1 %1894  ;;  %v8802_v53 = vld [vmem:[#allocation21_spill] sm:$0xff] }
 0xf71   :  { %v7646_v12 = vadd.f32 %v1895_v28, %v1891_v60  ;;  %v8794_v28 = vld [vmem:[#allocation104_spill] sm:$0xff]  ;;  %v8795_v60 = vld [vmem:[#allocation105_spill] sm:$0xff] }
 0xf73   :  { %1945 = vrot.lane.b32.xlu0 %v1880_v6, %s6639_s30  ;;  %6443 = vtanh.f32 %v7646_v12  ;;  %v8793_v6 = vld [vmem:[#allocation71_spill] sm:$0xff] }
 0xf7d   :  { %v6444_v0 = vpop.eup %6443 }
 0xf7e   :  { %v1899_v8 = vmul.f32 %v6444_v0, %v1890_v18  ;;  %v8786_v18 = vld [vmem:[#allocation100_spill] sm:$0xff] }
 0xf7f   :  { %v8796_v0 = vld [vmem:[#allocation72_spill] sm:$0xff] }
 0xfe1   :  { %v1950_v22 = vpop.permute.xlu0 %1949 }
 0xfe2   :  { %v1954_v36 = vpop.permute.xlu1 %1953 }
 0xfe3   :  { %v1957_v50 = vsel %vm1014_vm2, %v1950_v22, %v1954_v36  ;;  %v8797_v22 = vld [vmem:[#allocation73_spill] sm:$0xff]  ;;  %v8798_v36 = vld [vmem:[#allocation106_spill] sm:$0xff] }
 0xfe4   :  { %4550 = vmatprep.mubr.msk.f32.mxu0 %vm388_vm1, %v1957_v50  ;;  %4551 = vmatprep.mubr.msk.f32.mxu1 %vm388_vm1, %v1957_v50 }
 0xfe5   :  { %v1946_v40 = vpop.permute.xlu0 %1945 }
 0xfe6   :  { %v1956_v21 = vsel %vm388_vm1, %v1946_v40, %v1899_v8  ;;  %v8800_v8 = vld [vmem:[#allocation74_spill] sm:$0xff]  ;;  %v8801_v40 = vld [vmem:[#allocation93_spill] sm:$0xff] }
 0xfe7   :  { %2026 = vmatmul.mubr.f32.vlgmr.msra.gmra.mrb[14].mxu0 %v1956_v21  ;;  %2097 = vmatmul.mubr.f32.vlgmr.msra.gmra.mrb[32].mxu1 %v1956_v21 }
 0xfe8   :  { %5812 = vmatpush1.bf16.msra.mxu0 %v7074_v30  ;;  %4552 = vmatprep.mubr.msk.f32.mxu0 %vm388_vm1, %v1957_v50  ;;  %v8799_v50 = vld [vmem:[#allocation20_spill] sm:$0xff] }
 0xfe9   :  { %5814 = vmatprep.subr.bf16.mxu0 %v7076_v63  ;;  %5908 = vmatpush1.bf16.msra.mxu1 %v8750_v11 }
 0xfea   :  { %5910 = vmatprep.subr.bf16.mxu1 %v8751_v29 }
 0xfec   :  { %5816 = vmatpush1.bf16.msra.mxu0 %v7084_v7 }
 0xfed   :  { %5818 = vmatprep.subr.bf16.mxu0 %v7088_v24  ;;  %5912 = vmatpush1.bf16.msra.mxu1 %v8752_v46 }
 0xfee   :  { %5914 = vmatprep.subr.bf16.mxu1 %v8753_v44 }
 0xff0   :  { %5820 = vmatpush1.bf16.msra.mxu0 %v7093_v56 }
 0xff1   :  { %5822 = vmatprep.subr.bf16.mxu0 %v8640_v49  ;;  %5916 = vmatpush1.bf16.msra.mxu1 %v8754_v16 }
 0xff2   :  { %5918 = vmatprep.subr.bf16.mxu1 %v8755_v45 }
 0xff4   :  { %5824 = vmatpush1.bf16.msra.mxu0 %v7101_v39 }
 0xff5   :  { %5826 = vmatprep.subr.bf16.mxu0 %v8642_v35  ;;  %5920 = vmatpush1.bf16.msra.mxu1 %v8756_v9 }
 0xff6   :  { %5922 = vmatprep.subr.bf16.mxu1 %v8757_v54 }
 0xff8   :  { %5828 = vmatpush1.bf16.msra.mxu0 %v7109_v14 }
 0xff9   :  { %5830 = vmatprep.subr.bf16.mxu0 %v8644_v5  ;;  %5924 = vmatpush1.bf16.msra.mxu1 %v8758_v32 }
 0xffa   :  { %5926 = vmatprep.subr.bf16.mxu1 %v8759_v52 }
 0xffc   :  { %5832 = vmatpush1.bf16.msra.mxu0 %v7117_v20 }
 0xffd   :  { %5834 = vmatprep.subr.bf16.mxu0 %v8646_v62  ;;  %5928 = vmatpush1.bf16.msra.mxu1 %v8760_v1 }
 0xffe   :  { %5930 = vmatprep.subr.bf16.mxu1 %v8761_v48 }
0x1000   :  { %5836 = vmatpush1.bf16.msra.mxu0 %v7125_v26 }
0x1001   :  { %5838 = vmatprep.subr.bf16.mxu0 %v8648_v51  ;;  %5932 = vmatpush1.bf16.msra.mxu1 %v8762_v43 }
0x1002   :  { %5934 = vmatprep.subr.bf16.mxu1 %v8763_v42 }
0x1004   :  { %5840 = vmatpush1.bf16.msra.mxu0 %v7133_v34 }
0x1005   :  { %5842 = vmatprep.subr.bf16.mxu0 %v8650_v57  ;;  %5936 = vmatpush1.bf16.msra.mxu1 %v8784_v13 }
0x1006   :  { %5938 = vmatprep.subr.bf16.mxu1 %v8785_v33 }
0x1008   :  { %5844 = vmatpush1.bf16.msra.mxu0 %v8786_v18  ;;  %v7733_v18 = vld [vmem:[#allocation6 + $0x4d9] ss:$0 sm:$0xff] }
0x1009   :  { %5846 = vmatprep.subr.bf16.mxu0 %v8787_v2  ;;  %5940 = vmatpush1.bf16.msra.mxu1 %v8788_v59  ;;  %8831 = vst [vmem:[#allocation78_spill] sm:$0xff] %v7733_v18 }
0x100a   :  { %5942 = vmatprep.subr.bf16.mxu1 %v8789_v47 }
0x100c   :  { %5848 = vmatpush1.bf16.msra.mxu0 %v8790_v17 }
0x100d   :  { %5850 = vmatprep.subr.bf16.mxu0 %v8791_v23  ;;  %5944 = vmatpush1.bf16.msra.mxu1 %v8792_v41  ;;  %v8829_v23 = vld [vmem:[#allocation85_spill] sm:$0xff] }
0x100e   :  { %5946 = vmatprep.subr.bf16.mxu1 %v8793_v6  ;;  %v8803_v6 = vld [vmem:[#allocation22_spill] sm:$0xff] }
0x1010   :  { %5852 = vmatpush1.bf16.msra.mxu0 %v8794_v28  ;;  %v8804_v28 = vld [vmem:[#allocation23_spill] sm:$0xff] }
0x1011   :  { %5854 = vmatprep.subr.bf16.mxu0 %v8795_v60  ;;  %5948 = vmatpush1.bf16.msra.mxu1 %v8796_v0  ;;  %v8805_v60 = vld [vmem:[#allocation24_spill] sm:$0xff]  ;;  %v8806_v0 = vld [vmem:[#allocation25_spill] sm:$0xff] }
0x1012   :  { %5950 = vmatprep.subr.bf16.mxu1 %v8797_v22  ;;  %v8807_v22 = vld [vmem:[#allocation26_spill] sm:$0xff] }
0x1014   :  { %5856 = vmatpush1.bf16.msra.mxu0 %v8798_v36  ;;  %v8808_v36 = vld [vmem:[#allocation27_spill] sm:$0xff] }
0x1015   :  { %5858 = vmatprep.subr.bf16.mxu0 %v8799_v50  ;;  %5952 = vmatpush1.bf16.msra.mxu1 %v8800_v8  ;;  %v8809_v50 = vld [vmem:[#allocation28_spill] sm:$0xff]  ;;  %v8810_v8 = vld [vmem:[#allocation29_spill] sm:$0xff] }
0x1016   :  { %5954 = vmatprep.subr.bf16.mxu1 %v8801_v40  ;;  %v8811_v40 = vld [vmem:[#allocation30_spill] sm:$0xff] }
0x1017   :  { %2168 = vmatmul.mubr.f32.vlgmr.msra.gmra.mrb[16].mxu0 %v1956_v21  ;;  %v8812_v21 = vld [vmem:[#allocation31_spill] sm:$0xff] }
0x1018   :  { %5860 = vmatpush1.bf16.msra.mxu0 %v8802_v53  ;;  %v8813_v53 = vld [vmem:[#allocation32_spill] sm:$0xff] }
0x1019   :  { %5862 = vmatprep.subr.bf16.mxu0 %v8803_v6  ;;  %v8814_v6 = vld [vmem:[#allocation33_spill] sm:$0xff] }
0x101c   :  { %5864 = vmatpush1.bf16.msra.mxu0 %v8804_v28  ;;  %v8815_v28 = vld [vmem:[#allocation34_spill] sm:$0xff] }
0x101d   :  { %5866 = vmatprep.subr.bf16.mxu0 %v8805_v60  ;;  %v8816_v60 = vld [vmem:[#allocation35_spill] sm:$0xff] }
0x1020   :  { %5868 = vmatpush1.bf16.msra.mxu0 %v8806_v0  ;;  %v8817_v0 = vld [vmem:[#allocation36_spill] sm:$0xff] }
0x1021   :  { %5870 = vmatprep.subr.bf16.mxu0 %v8807_v22  ;;  %v8818_v22 = vld [vmem:[#allocation37_spill] sm:$0xff] }
0x1024   :  { %5872 = vmatpush1.bf16.msra.mxu0 %v8808_v36  ;;  %v8819_v36 = vld [vmem:[#allocation38_spill] sm:$0xff] }
0x1025   :  { %5874 = vmatprep.subr.bf16.mxu0 %v8809_v50  ;;  %v8820_v50 = vld [vmem:[#allocation39_spill] sm:$0xff] }
0x1028   :  { %5876 = vmatpush1.bf16.msra.mxu0 %v8810_v8  ;;  %v8821_v8 = vld [vmem:[#allocation40_spill] sm:$0xff] }
0x1029   :  { %5878 = vmatprep.subr.bf16.mxu0 %v8811_v40  ;;  %v8822_v40 = vld [vmem:[#allocation41_spill] sm:$0xff] }
0x102c   :  { %5880 = vmatpush1.bf16.msra.mxu0 %v8812_v21  ;;  %v8823_v21 = vld [vmem:[#allocation42_spill] sm:$0xff] }
0x102d   :  { %5882 = vmatprep.subr.bf16.mxu0 %v8813_v53  ;;  %v8824_v53 = vld [vmem:[#allocation43_spill] sm:$0xff] }
0x1030   :  { %5884 = vmatpush1.bf16.msra.mxu0 %v8814_v6  ;;  %v8825_v6 = vld [vmem:[#allocation51_spill] sm:$0xff] }
0x1031   :  { %5886 = vmatprep.subr.bf16.mxu0 %v8815_v28  ;;  %v8826_v28 = vld [vmem:[#allocation45_spill] sm:$0xff] }
0x1034   :  { %5888 = vmatpush1.bf16.msra.mxu0 %v8816_v60  ;;  %v8827_v60 = vld [vmem:[#allocation84_spill] sm:$0xff] }
0x1035   :  { %5890 = vmatprep.subr.bf16.mxu0 %v8817_v0  ;;  %v202_v41 = vadd.f32 %v8827_v60, %v8826_v28  ;;  %v8828_v0 = vld [vmem:[#allocation46_spill] sm:$0xff]  ;;  %v7736_v60 = vld [vmem:[#allocation6 + $0x4d2] ss:$0 sm:$0xff] }
0x1036   :  { %8832 = vst [vmem:[#allocation79_spill] sm:$0xff] %v7736_v60 }
0x1038   :  { %5892 = vmatpush1.bf16.msra.mxu0 %v8818_v22  ;;  %v204_v22 = vadd.f32 %v8829_v23, %v8828_v0  ;;  %v7739_v0 = vld [vmem:[#allocation6 + $0x4da] ss:$0 sm:$0xff] }
0x1039   :  { %5894 = vmatprep.subr.bf16.mxu0 %v8819_v36  ;;  %8833 = vst [vmem:[#allocation47_spill] sm:$0xff] %v7739_v0 }
0x103c   :  { %5896 = vmatpush1.bf16.msra.mxu0 %v8820_v50 }
0x103d   :  { %5898 = vmatprep.subr.bf16.mxu0 %v8821_v8 }
0x1040   :  { %5900 = vmatpush1.bf16.msra.mxu0 %v8822_v40  ;;  %v7730_v40 = vld [vmem:[#allocation6 + $0x4d1] ss:$0 sm:$0xff] }
0x1041   :  { %5902 = vmatprep.subr.bf16.mxu0 %v8823_v21  ;;  %8830 = vst [vmem:[#allocation99_spill] sm:$0xff] %v7730_v40 }
0x1044   :  { %5904 = vmatpush1.bf16.msra.mxu0 %v8824_v53 }
0x1045   :  { %6002 = vmatprep.subr.bf16.mxu0 %v8825_v6 }
0x10ba   :  { %v2027_v17 = vpop.f32.mrb[14].mxu0  ;;  %v2098_v36 = vpop.f32.mrb[32].mxu1 }
0x10bb   :  { %v2176_v47 = vadd.f32 %v2027_v17, %v202_v41  ;;  %v2029_v50 = vpop.f32.mrb[15].mxu0  ;;  %v2100_v59 = vpop.f32.mrb[33].mxu1 }
0x10bc   :  { %v2177_v8 = vadd.f32 %v2029_v50, %v204_v22 }
0x10ea   :  { %v2169_v2 = vpop.f32.mrb[16].mxu0 }
0x10eb   :  { %v2214_v21 = vadd.f32 %v7730_v40, %v2169_v2  ;;  %v2171_v53 = vpop.f32.mrb[17].mxu0  ;;  %v7744_v40 = vld [vmem:[#allocation6 + $0x4d3] ss:$0 sm:$0xff] }
0x10ec   :  { %v2236_v6 = vadd.f32 %v7733_v18, %v2171_v53  ;;  %8834 = vst [vmem:[#allocation88_spill] sm:$0xff] %v7744_v40  ;;  %v7747_v18 = vld [vmem:[#allocation6 + $0x4db] ss:$0 sm:$0xff] }
0x10ed   :  { %v2215_v23 = vmul.f32 %v7736_v60, %v2214_v21  ;;  %8835 = vst [vmem:[#allocation90_spill] sm:$0xff] %v7747_v18 }
0x10ee   :  { %v2237_v17 = vmul.f32 %v7739_v0, %v2236_v6  ;;  %v2178_v6 = vmul.f32 %v2176_v47, %v8677_v27 }
0x10ef   :  { %6445 = vtanh.f32 %v2215_v23  ;;  %v2179_v23 = vmul.f32 %v2177_v8, %v8729_v31  ;;  %v2195_v8 = vadd.f32 %v2098_v36, %v8679_v58 }
0x10f0   :  { %6447 = vtanh.f32 %v2237_v17 }
0x10f1   :  { %6449 = vtanh.f32 %v2178_v6  ;;  %v2196_v6 = vadd.f32 %v2100_v59, %v8731_v3 }
0x10f2   :  { %6451 = vtanh.f32 %v2179_v23  ;;  %v2197_v23 = vmul.f32 %v2195_v8, %v7036_v38 }
0x10f4   :  { %6453 = vtanh.f32 %v2197_v23 }
0x10f9   :  { %v6446_v41 = vpop.eup %6445 }
0x10fa   :  { %v6448_v22 = vpop.eup %6447  ;;  %v2217_v50 = vmul.f32 %v7736_v60, %v6446_v41 }
0x10fb   :  { %v2239_v2 = vmul.f32 %v7739_v0, %v6448_v22  ;;  %v6450_v17 = vpop.eup %6449 }
0x10fc   :  { %v2218_v53 = vadd.f32 %v7744_v40, %v2217_v50  ;;  %v6452_v41 = vpop.eup %6451  ;;  %v2182_v22 = vmul.f32 %v6450_v17, %v8677_v27 }
0x10fd   :  { %v2240_v21 = vadd.f32 %v7747_v18, %v2239_v2  ;;  %v2183_v50 = vmul.f32 %v6452_v41, %v8729_v31 }
0x10fe   :  { %2221 = vrot.lane.b32.xlu1 %v2218_v53, %s6639_s30  ;;  %v2184_v2 = vadd.f32 %v2182_v22, %v8635_v10  ;;  %v2219_v17 = vmul.f32 %v2218_v53, %v7622_v37  ;;  %v6454_v36 = vpop.eup %6453 }
0x10ff   :  { %2243 = vrot.lane.b32.xlu0 %v2240_v21, %s6639_s30  ;;  %v2185_v18 = vadd.f32 %v2183_v50, %v8781_v4  ;;  %v2201_v50 = vmul.f32 %v6454_v36, %v7036_v38 }
0x1101   :  { %v2187_v47 = vmul.f32 %v2185_v18, %v2184_v2  ;;  %v2203_v37 = vadd.f32 %v2201_v50, %v8683_v61 }
0x1170   :  { %v2222_v40 = vpop.permute.xlu1 %2221 }
0x1171   :  { %v2224_v0 = vmul.f32 %v2222_v40, %v2218_v53  ;;  %v2244_v60 = vpop.permute.xlu0 %2243  ;;  %v2198_v40 = vmul.f32 %v2196_v6, %v8681_v55 }
0x1172   :  { %v2246_v28 = vmul.f32 %v2244_v60, %v2240_v21 }
0x1173   :  { %2226 = vrot.lane.b32.xlu1 %v2224_v0, %s6640_s0  ;;  %6455 = vtanh.f32 %v2198_v40  ;;  %v2241_v0 = vmul.f32 %v2240_v21, %v7624_v19 }
0x1174   :  { %2248 = vrot.lane.b32.xlu0 %v2246_v28, %s6640_s0 }
0x1177   :  { %2189 = vrot.lane.b32.xlu1 %v2187_v47, %s6639_s30 }
0x117d   :  { %v6456_v59 = vpop.eup %6455 }
0x117e   :  { %v2202_v47 = vmul.f32 %v6456_v59, %v8681_v55 }
0x1180   :  { %v2204_v8 = vadd.f32 %v2202_v47, %v8782_v15 }
0x1182   :  { %v2206_v23 = vmul.f32 %v2204_v8, %v2203_v37 }
0x11e5   :  { %v2227_v60 = vpop.permute.xlu1 %2226 }
0x11e6   :  { %v7767_v41 = vadd.f32 %v2227_v60, %v2219_v17  ;;  %v2249_v28 = vpop.permute.xlu0 %2248  ;;  %v2186_v17 = vmul.f32 %v2184_v2, %v7636_v25  ;;  %v2205_v25 = vmul.f32 %v2203_v37, %v7646_v12  ;;  %v8850_v12 = vld [vmem:[#allocation74_spill] sm:$0xff] }
0x11e7   :  { %v7769_v22 = vadd.f32 %v2249_v28, %v2241_v0 }
0x11e8   :  { %6457 = vtanh.f32 %v7767_v41 }
0x11e9   :  { %6459 = vtanh.f32 %v7769_v22  ;;  %v2190_v40 = vpop.permute.xlu1 %2189 }
0x11ea   :  { %v7781_v60 = vadd.f32 %v2190_v40, %v2186_v17 }
0x11ec   :  { %6461 = vtanh.f32 %v7781_v60 }
0x11f2   :  { %v6458_v19 = vpop.eup %6457 }
0x11f3   :  { %v6460_v6 = vpop.eup %6459  ;;  %2232 = vrot.lane.b32.xlu0 %v6458_v19, %s6639_s30 }
0x11f4   :  { %2254 = vrot.lane.b32.xlu1 %v6460_v6, %s6639_s30 }
0x11f6   :  { %v6462_v59 = vpop.eup %6461 }
0x11f7   :  { %2208 = vrot.lane.b32.xlu0 %v2206_v23, %s6639_s30  ;;  %v2194_v47 = vmul.f32 %v6462_v59, %v2185_v18 }
0x1265   :  { %v2233_v0 = vpop.permute.xlu0 %2232 }
0x1266   :  { %v2235_v28 = vmul.f32 %v2233_v0, %v2218_v53  ;;  %v2255_v36 = vpop.permute.xlu1 %2254  ;;  %v8854_v0 = vld [vmem:[#allocation87_spill] sm:$0xff] }
0x1267   :  { %v7784_v50 = vmul.f32 %v2255_v36, %v2240_v21 }
0x1268   :  { %2263 = vrot.lane.b32.xlu1 %v2235_v28, %s6640_s0 }
0x1269   :  { %2267 = vrot.lane.b32.xlu0 %v7784_v50, %s6639_s30  ;;  %v2209_v19 = vpop.permute.xlu0 %2208 }
0x126a   :  { %v7791_v2 = vadd.f32 %v2209_v19, %v2205_v25 }
0x126c   :  { %2259 = vrot.lane.b32.xlu1 %v2194_v47, %s6639_s30  ;;  %6463 = vtanh.f32 %v7791_v2 }
0x1276   :  { %v6464_v53 = vpop.eup %6463 }
0x1277   :  { %v2213_v40 = vmul.f32 %v6464_v53, %v2204_v8  ;;  %v8853_v8 = vld [vmem:[#allocation46_spill] sm:$0xff] }
0x1278   :  { %v210_v28 = vadd.f32 %v8854_v0, %v8853_v8 }
0x12da   :  { %v2264_v6 = vpop.permute.xlu1 %2263 }
0x12db   :  { %v2268_v23 = vpop.permute.xlu0 %2267 }
0x12dc   :  { %v2271_v21 = vsel %vm1014_vm2, %v2264_v6, %v2268_v23  ;;  %v8855_v23 = vld [vmem:[#allocation99_spill] sm:$0xff] }
0x12dd   :  { %4553 = vmatprep.mubr.msk.f32.mxu0 %vm388_vm1, %v2271_v21  ;;  %4554 = vmatprep.mubr.msk.f32.mxu1 %vm388_vm1, %v2271_v21 }
0x12de   :  { %v2260_v18 = vpop.permute.xlu1 %2259 }
0x12df   :  { %v2270_v17 = vsel %vm388_vm1, %v2260_v18, %v2213_v40  ;;  %v8856_v18 = vld [vmem:[#allocation78_spill] sm:$0xff] }
0x12e0   :  { %2340 = vmatmul.mubr.f32.vlgmr.msra.gmra.mrb[18].mxu0 %v2270_v17  ;;  %2411 = vmatmul.mubr.f32.vlgmr.msra.gmra.mrb[34].mxu1 %v2270_v17 }
0x12e1   :  { %5956 = vmatpush1.bf16.msra.mxu1 %v7074_v30  ;;  %4555 = vmatprep.mubr.msk.f32.mxu1 %vm388_vm1, %v2271_v21 }
0x12e2   :  { %5958 = vmatprep.subr.bf16.mxu1 %v7076_v63  ;;  %6004 = vmatpush1.bf16.msra.mxu0 %v8750_v11  ;;  %v8839_v11 = vld [vmem:[#allocation69_spill] sm:$0xff] }
0x12e3   :  { %6006 = vmatprep.subr.bf16.mxu0 %v8751_v29  ;;  %v8845_v29 = vld [vmem:[#allocation105_spill] sm:$0xff] }
0x12e5   :  { %5960 = vmatpush1.bf16.msra.mxu1 %v7084_v7 }
0x12e6   :  { %5962 = vmatprep.subr.bf16.mxu1 %v7088_v24  ;;  %6008 = vmatpush1.bf16.msra.mxu0 %v8752_v46  ;;  %v8844_v46 = vld [vmem:[#allocation104_spill] sm:$0xff] }
0x12e7   :  { %6010 = vmatprep.subr.bf16.mxu0 %v8753_v44  ;;  %v8843_v44 = vld [vmem:[#allocation71_spill] sm:$0xff] }
0x12e9   :  { %5964 = vmatpush1.bf16.msra.mxu1 %v7093_v56 }
0x12ea   :  { %5966 = vmatprep.subr.bf16.mxu1 %v8640_v49  ;;  %6012 = vmatpush1.bf16.msra.mxu0 %v8754_v16  ;;  %v8846_v16 = vld [vmem:[#allocation72_spill] sm:$0xff] }
0x12eb   :  { %6014 = vmatprep.subr.bf16.mxu0 %v8755_v45  ;;  %v8847_v45 = vld [vmem:[#allocation73_spill] sm:$0xff] }
0x12ed   :  { %5968 = vmatpush1.bf16.msra.mxu1 %v7101_v39 }
0x12ee   :  { %5970 = vmatprep.subr.bf16.mxu1 %v8642_v35  ;;  %6016 = vmatpush1.bf16.msra.mxu0 %v8756_v9  ;;  %v8840_v9 = vld [vmem:[#allocation102_spill] sm:$0xff] }
0x12ef   :  { %6018 = vmatprep.subr.bf16.mxu0 %v8757_v54  ;;  %v8836_v54 = vld [vmem:[#allocation100_spill] sm:$0xff] }
0x12f1   :  { %5972 = vmatpush1.bf16.msra.mxu1 %v7109_v14 }
0x12f2   :  { %5974 = vmatprep.subr.bf16.mxu1 %v8644_v5  ;;  %6020 = vmatpush1.bf16.msra.mxu0 %v8758_v32  ;;  %v8848_v32 = vld [vmem:[#allocation106_spill] sm:$0xff] }
0x12f3   :  { %6022 = vmatprep.subr.bf16.mxu0 %v8759_v52  ;;  %v8837_v52 = vld [vmem:[#allocation101_spill] sm:$0xff] }
0x12f5   :  { %5976 = vmatpush1.bf16.msra.mxu1 %v7117_v20 }
0x12f6   :  { %5978 = vmatprep.subr.bf16.mxu1 %v8646_v62  ;;  %6024 = vmatpush1.bf16.msra.mxu0 %v8760_v1  ;;  %v8849_v1 = vld [vmem:[#allocation93_spill] sm:$0xff] }
0x12f7   :  { %6026 = vmatprep.subr.bf16.mxu0 %v8761_v48  ;;  %v8838_v48 = vld [vmem:[#allocation68_spill] sm:$0xff] }
0x12f9   :  { %5980 = vmatpush1.bf16.msra.mxu1 %v7125_v26 }
0x12fa   :  { %5982 = vmatprep.subr.bf16.mxu1 %v8648_v51  ;;  %6028 = vmatpush1.bf16.msra.mxu0 %v8762_v43  ;;  %v8841_v43 = vld [vmem:[#allocation103_spill] sm:$0xff] }
0x12fb   :  { %6030 = vmatprep.subr.bf16.mxu0 %v8763_v42  ;;  %v8842_v42 = vld [vmem:[#allocation70_spill] sm:$0xff] }
0x12fd   :  { %5984 = vmatpush1.bf16.msra.mxu1 %v7133_v34 }
0x12fe   :  { %5986 = vmatprep.subr.bf16.mxu1 %v8650_v57  ;;  %6032 = vmatpush1.bf16.msra.mxu0 %v8784_v13  ;;  %v8851_v13 = vld [vmem:[#allocation45_spill] sm:$0xff] }
0x12ff   :  { %6034 = vmatprep.subr.bf16.mxu0 %v8785_v33  ;;  %v8852_v33 = vld [vmem:[#allocation86_spill] sm:$0xff] }
0x1300   :  { %v208_v37 = vadd.f32 %v8852_v33, %v8851_v13  ;;  %v8859_v13 = vld [vmem:[#allocation88_spill] sm:$0xff] }
0x1301   :  { %5988 = vmatpush1.bf16.msra.mxu1 %v8836_v54 }
0x1302   :  { %5990 = vmatprep.subr.bf16.mxu1 %v8837_v52  ;;  %6036 = vmatpush1.bf16.msra.mxu0 %v8838_v48  ;;  %v8857_v48 = vld [vmem:[#allocation79_spill] sm:$0xff] }
0x1303   :  { %6038 = vmatprep.subr.bf16.mxu0 %v8839_v11 }
0x1305   :  { %5992 = vmatpush1.bf16.msra.mxu1 %v8840_v9 }
0x1306   :  { %5994 = vmatprep.subr.bf16.mxu1 %v8841_v43  ;;  %6040 = vmatpush1.bf16.msra.mxu0 %v8842_v42  ;;  %v8858_v42 = vld [vmem:[#allocation47_spill] sm:$0xff] }
0x1307   :  { %6042 = vmatprep.subr.bf16.mxu0 %v8843_v44 }
0x1309   :  { %5996 = vmatpush1.bf16.msra.mxu1 %v8844_v46 }
0x130a   :  { %5998 = vmatprep.subr.bf16.mxu1 %v8845_v29  ;;  %6044 = vmatpush1.bf16.msra.mxu0 %v8846_v16 }
0x130b   :  { %6046 = vmatprep.subr.bf16.mxu0 %v8847_v45 }
0x130d   :  { %6000 = vmatpush1.bf16.msra.mxu1 %v8848_v32 }
0x130e   :  { %6050 = vmatprep.subr.bf16.mxu1 %v8849_v1  ;;  %6048 = vmatpush1.bf16.msra.mxu0 %v8850_v12 }
0x130f   :  { %6098 = vmatprep.subr.bf16.mxu0 %v8849_v1 }
0x1310   :  { %2482 = vmatmul.mubr.f32.vlgmr.msra.gmra.mrb[36].mxu1 %v2270_v17 }
0x1311   :  { %6052 = vmatpush1.bf16.msra.mxu1 %v7074_v30 }
0x1312   :  { %6054 = vmatprep.subr.bf16.mxu1 %v7076_v63 }
0x1315   :  { %6056 = vmatpush1.bf16.msra.mxu1 %v7084_v7 }
0x1316   :  { %6058 = vmatprep.subr.bf16.mxu1 %v7088_v24 }
0x1319   :  { %6060 = vmatpush1.bf16.msra.mxu1 %v7093_v56 }
0x131a   :  { %6062 = vmatprep.subr.bf16.mxu1 %v8640_v49 }
0x131d   :  { %6064 = vmatpush1.bf16.msra.mxu1 %v7101_v39 }
0x131e   :  { %6066 = vmatprep.subr.bf16.mxu1 %v8642_v35 }
0x1321   :  { %6068 = vmatpush1.bf16.msra.mxu1 %v7109_v14 }
0x1322   :  { %6070 = vmatprep.subr.bf16.mxu1 %v8644_v5 }
0x1325   :  { %6072 = vmatpush1.bf16.msra.mxu1 %v7117_v20 }
0x1326   :  { %6074 = vmatprep.subr.bf16.mxu1 %v8646_v62 }
0x1329   :  { %6076 = vmatpush1.bf16.msra.mxu1 %v7125_v26 }
0x132a   :  { %6078 = vmatprep.subr.bf16.mxu1 %v8648_v51 }
0x132d   :  { %6080 = vmatpush1.bf16.msra.mxu1 %v7133_v34 }
0x132e   :  { %6082 = vmatprep.subr.bf16.mxu1 %v8650_v57 }
0x1331   :  { %6084 = vmatpush1.bf16.msra.mxu1 %v8836_v54 }
0x1332   :  { %6086 = vmatprep.subr.bf16.mxu1 %v8837_v52 }
0x1335   :  { %6088 = vmatpush1.bf16.msra.mxu1 %v8840_v9 }
0x1336   :  { %6090 = vmatprep.subr.bf16.mxu1 %v8841_v43 }
0x1339   :  { %6092 = vmatpush1.bf16.msra.mxu1 %v8844_v46 }
0x133a   :  { %6094 = vmatprep.subr.bf16.mxu1 %v8845_v29 }
0x133d   :  { %6096 = vmatpush1.bf16.msra.mxu1 %v8848_v32 }
0x133e   :  { %6146 = vmatprep.subr.bf16.mxu1 %v8849_v1 }
0x13b3   :  { %v2341_v36 = vpop.f32.mrb[18].mxu0  ;;  %v2412_v59 = vpop.f32.mrb[34].mxu1 }
0x13b4   :  { %v2490_v47 = vadd.f32 %v2341_v36, %v208_v37  ;;  %v2343_v19 = vpop.f32.mrb[19].mxu0  ;;  %v2414_v25 = vpop.f32.mrb[35].mxu1  ;;  %v8860_v37 = vld [vmem:[#allocation90_spill] sm:$0xff] }
0x13b5   :  { %v2491_v53 = vadd.f32 %v2343_v19, %v210_v28 }
0x13b6   :  { %v2492_v0 = vmul.f32 %v2490_v47, %v8677_v27 }
0x13b7   :  { %v2493_v28 = vmul.f32 %v2491_v53, %v8729_v31  ;;  %v2509_v53 = vadd.f32 %v2412_v59, %v8679_v58 }
0x13e3   :  { %v2483_v6 = vpop.f32.mrb[36].mxu1 }
0x13e4   :  { %v2528_v21 = vadd.f32 %v8855_v23, %v2483_v6  ;;  %v2485_v40 = vpop.f32.mrb[37].mxu1 }
0x13e5   :  { %v2550_v17 = vadd.f32 %v8856_v18, %v2485_v40 }
0x13e6   :  { %v2529_v11 = vmul.f32 %v8857_v48, %v2528_v21 }
0x13e7   :  { %v2551_v44 = vmul.f32 %v8858_v42, %v2550_v17 }
0x13e8   :  { %6465 = vtanh.f32 %v2529_v11 }
0x13e9   :  { %6467 = vtanh.f32 %v2551_v44 }
0x13ea   :  { %6469 = vtanh.f32 %v2492_v0 }
0x13eb   :  { %6471 = vtanh.f32 %v2493_v28 }
0x13f2   :  { %v6466_v16 = vpop.eup %6465 }
0x13f3   :  { %v6468_v45 = vpop.eup %6467  ;;  %v2531_v1 = vmul.f32 %v8857_v48, %v6466_v16 }
0x13f4   :  { %v2553_v12 = vmul.f32 %v8858_v42, %v6468_v45  ;;  %v6470_v36 = vpop.eup %6469 }
0x13f5   :  { %v2532_v33 = vadd.f32 %v8859_v13, %v2531_v1  ;;  %v6472_v19 = vpop.eup %6471  ;;  %v2496_v6 = vmul.f32 %v6470_v36, %v8677_v27  ;;  %v2510_v27 = vadd.f32 %v2414_v25, %v8731_v3 }
0x13f6   :  { %v2554_v8 = vadd.f32 %v8860_v37, %v2553_v12  ;;  %v2497_v21 = vmul.f32 %v6472_v19, %v8729_v31  ;;  %v2511_v31 = vmul.f32 %v2509_v53, %v7036_v38 }
0x13f7   :  { %2535 = vrot.lane.b32.xlu0 %v2532_v33, %s6639_s30  ;;  %v2498_v44 = vadd.f32 %v2496_v6, %v8635_v10  ;;  %v2512_v1 = vmul.f32 %v2510_v27, %v8681_v55  ;;  %v2533_v10 = vmul.f32 %v2532_v33, %v7767_v41 }
0x13f8   :  { %2557 = vrot.lane.b32.xlu1 %v2554_v8, %s6639_s30  ;;  %v2499_v16 = vadd.f32 %v2497_v21, %v8781_v4  ;;  %6473 = vtanh.f32 %v2511_v31  ;;  %v2555_v12 = vmul.f32 %v2554_v8, %v7769_v22 }
0x13f9   :  { %6475 = vtanh.f32 %v2512_v1 }
0x13fa   :  { %v2501_v47 = vmul.f32 %v2499_v16, %v2498_v44 }
0x1402   :  { %v6474_v59 = vpop.eup %6473 }
0x1403   :  { %v6476_v25 = vpop.eup %6475  ;;  %v2515_v19 = vmul.f32 %v6474_v59, %v7036_v38 }
0x1404   :  { %v2516_v6 = vmul.f32 %v6476_v25, %v8681_v55 }
0x1405   :  { %v2517_v41 = vadd.f32 %v2515_v19, %v8683_v61 }
0x1406   :  { %v2518_v21 = vadd.f32 %v2516_v6, %v8782_v15 }
0x1469   :  { %v2536_v40 = vpop.permute.xlu0 %2535 }
0x146a   :  { %v2538_v17 = vmul.f32 %v2536_v40, %v2532_v33  ;;  %v2558_v11 = vpop.permute.xlu1 %2557 }
0x146b   :  { %v2560_v45 = vmul.f32 %v2558_v11, %v2554_v8 }
0x146c   :  { %2540 = vrot.lane.b32.xlu0 %v2538_v17, %s6640_s0  ;;  %v2520_v17 = vmul.f32 %v2518_v21, %v2517_v41 }
0x146d   :  { %2562 = vrot.lane.b32.xlu1 %v2560_v45, %s6640_s0  ;;  %v2500_v45 = vmul.f32 %v2498_v44, %v7781_v60 }
0x1470   :  { %2503 = vrot.lane.b32.xlu0 %v2501_v47, %s6639_s30 }
0x14de   :  { %v2541_v4 = vpop.permute.xlu0 %2540 }
0x14df   :  { %v7900_v0 = vadd.f32 %v2541_v4, %v2533_v10  ;;  %v2563_v28 = vpop.permute.xlu1 %2562 }
0x14e0   :  { %v7902_v36 = vadd.f32 %v2563_v28, %v2555_v12  ;;  %v2519_v28 = vmul.f32 %v2517_v41, %v7791_v2 }
0x14e1   :  { %6477 = vtanh.f32 %v7900_v0 }
0x14e2   :  { %6479 = vtanh.f32 %v7902_v36  ;;  %v2504_v11 = vpop.permute.xlu0 %2503 }
0x14e3   :  { %v2506_v47 = vadd.f32 %v2504_v11, %v2500_v45 }
0x14e5   :  { %6481 = vtanh.f32 %v2506_v47 }
0x14eb   :  { %v6478_v22 = vpop.eup %6477 }
0x14ec   :  { %v6480_v40 = vpop.eup %6479  ;;  %2546 = vrot.lane.b32.xlu1 %v6478_v22, %s6639_s30 }
0x14ed   :  { %2568 = vrot.lane.b32.xlu0 %v6480_v40, %s6639_s30 }
0x14ef   :  { %v6482_v1 = vpop.eup %6481 }
0x14f0   :  { %2522 = vrot.lane.b32.xlu1 %v2520_v17, %s6639_s30  ;;  %v2508_v4 = vmul.f32 %v6482_v1, %v2499_v16 }
0x155e   :  { %v2547_v53 = vpop.permute.xlu1 %2546 }
0x155f   :  { %v2549_v27 = vmul.f32 %v2547_v53, %v2532_v33  ;;  %v2569_v31 = vpop.permute.xlu0 %2568 }
0x1560   :  { %v7914_v10 = vmul.f32 %v2569_v31, %v2554_v8 }
0x1561   :  { %2577 = vrot.lane.b32.xlu0 %v2549_v27, %s6640_s0 }
0x1562   :  { %2581 = vrot.lane.b32.xlu1 %v7914_v10, %s6639_s30  ;;  %v2523_v12 = vpop.permute.xlu1 %2522 }
0x1563   :  { %v7921_v60 = vadd.f32 %v2523_v12, %v2519_v28 }
0x1565   :  { %2573 = vrot.lane.b32.xlu0 %v2508_v4, %s6639_s30  ;;  %6483 = vtanh.f32 %v7921_v60 }
0x156f   :  { %v6484_v33 = vpop.eup %6483 }
0x1570   :  { %v2527_v25 = vmul.f32 %v6484_v33, %v2518_v21 }
0x15d3   :  { %v2578_v44 = vpop.permute.xlu0 %2577 }
0x15d4   :  { %v2582_v59 = vpop.permute.xlu1 %2581 }
0x15d5   :  { %v2585_v8 = vsel %vm1014_vm2, %v2578_v44, %v2582_v59 }
0x15d6   :  { %4556 = vmatprep.mubr.msk.f32.mxu0 %vm388_vm1, %v2585_v8  ;;  %4557 = vmatprep.mubr.msk.f32.mxu1 %vm388_vm1, %v2585_v8 }
0x15d7   :  { %v7927_v16 = vpop.permute.xlu0 %2573 }
0x15d8   :  { %v2584_v19 = vsel %vm388_vm1, %v7927_v16, %v2527_v25 }
0x15d9   :  { %2654 = vmatmul.mubr.f32.vlgmr.msra.gmra.mrb[20].mxu0 %v2584_v19  ;;  %2725 = vmatmul.mubr.f32.vlgmr.msra.gmra.mrb[38].mxu1 %v2584_v19 }
0x15da   :  { %6100 = vmatpush1.bf16.msra.mxu0 %v7074_v30  ;;  %6148 = vmatpush1.bf16.msra.mxu1 %v7074_v30 }
0x15db   :  { %6102 = vmatprep.subr.bf16.mxu0 %v7076_v63  ;;  %6150 = vmatprep.subr.bf16.mxu1 %v7076_v63 }
0x15de   :  { %6104 = vmatpush1.bf16.msra.mxu0 %v7084_v7  ;;  %6152 = vmatpush1.bf16.msra.mxu1 %v7084_v7 }
0x15df   :  { %6106 = vmatprep.subr.bf16.mxu0 %v7088_v24  ;;  %6154 = vmatprep.subr.bf16.mxu1 %v7088_v24 }
0x15e2   :  { %6108 = vmatpush1.bf16.msra.mxu0 %v7093_v56  ;;  %6156 = vmatpush1.bf16.msra.mxu1 %v7093_v56 }
0x15e3   :  { %6110 = vmatprep.subr.bf16.mxu0 %v8640_v49  ;;  %6158 = vmatprep.subr.bf16.mxu1 %v8640_v49 }
0x15e6   :  { %6112 = vmatpush1.bf16.msra.mxu0 %v7101_v39  ;;  %6160 = vmatpush1.bf16.msra.mxu1 %v7101_v39 }
0x15e7   :  { %6114 = vmatprep.subr.bf16.mxu0 %v8642_v35  ;;  %6162 = vmatprep.subr.bf16.mxu1 %v8642_v35 }
0x15ea   :  { %6116 = vmatpush1.bf16.msra.mxu0 %v7109_v14  ;;  %6164 = vmatpush1.bf16.msra.mxu1 %v7109_v14 }
0x15eb   :  { %6118 = vmatprep.subr.bf16.mxu0 %v8644_v5  ;;  %6166 = vmatprep.subr.bf16.mxu1 %v8644_v5 }
0x15ee   :  { %6120 = vmatpush1.bf16.msra.mxu0 %v7117_v20  ;;  %6168 = vmatpush1.bf16.msra.mxu1 %v7117_v20 }
0x15ef   :  { %6122 = vmatprep.subr.bf16.mxu0 %v8646_v62  ;;  %6170 = vmatprep.subr.bf16.mxu1 %v8646_v62 }
0x15f2   :  { %6124 = vmatpush1.bf16.msra.mxu0 %v7125_v26  ;;  %6172 = vmatpush1.bf16.msra.mxu1 %v7125_v26 }
0x15f3   :  { %6126 = vmatprep.subr.bf16.mxu0 %v8648_v51  ;;  %6174 = vmatprep.subr.bf16.mxu1 %v8648_v51 }
0x15f6   :  { %6128 = vmatpush1.bf16.msra.mxu0 %v7133_v34  ;;  %6176 = vmatpush1.bf16.msra.mxu1 %v7133_v34 }
0x15f7   :  { %6130 = vmatprep.subr.bf16.mxu0 %v8650_v57  ;;  %6178 = vmatprep.subr.bf16.mxu1 %v8650_v57 }
0x15fa   :  { %6132 = vmatpush1.bf16.msra.mxu0 %v8836_v54  ;;  %6180 = vmatpush1.bf16.msra.mxu1 %v8836_v54 }
0x15fb   :  { %6134 = vmatprep.subr.bf16.mxu0 %v8837_v52  ;;  %6182 = vmatprep.subr.bf16.mxu1 %v8837_v52 }
0x15fe   :  { %6136 = vmatpush1.bf16.msra.mxu0 %v8840_v9  ;;  %6184 = vmatpush1.bf16.msra.mxu1 %v8840_v9 }
0x15ff   :  { %6138 = vmatprep.subr.bf16.mxu0 %v8841_v43  ;;  %6186 = vmatprep.subr.bf16.mxu1 %v8841_v43 }
0x1602   :  { %6140 = vmatpush1.bf16.msra.mxu0 %v8844_v46  ;;  %6188 = vmatpush1.bf16.msra.mxu1 %v8844_v46 }
0x1603   :  { %6142 = vmatprep.subr.bf16.mxu0 %v8845_v29  ;;  %6190 = vmatprep.subr.bf16.mxu1 %v8845_v29 }
0x1606   :  { %6144 = vmatpush1.bf16.msra.mxu0 %v8848_v32  ;;  %6192 = vmatpush1.bf16.msra.mxu1 %v8848_v32 }
0x16ac   :  { %v2655_v14 = vpop.f32.mrb[20].mxu0  ;;  %v2726_v20 = vpop.f32.mrb[38].mxu1 }
0x16ad   :  { %v2750_v26 = vadd.f32 %v8855_v23, %v2726_v20  ;;  %v2657_v34 = vpop.f32.mrb[21].mxu0  ;;  %v2728_v63 = vpop.f32.mrb[39].mxu1  ;;  %v2731_v52 = vadd.f32 %v2655_v14, %v8679_v58 }
0x16ae   :  { %v2772_v30 = vadd.f32 %v8856_v18, %v2728_v63  ;;  %v2732_v9 = vadd.f32 %v2657_v34, %v8731_v3 }
0x16af   :  { %v2751_v7 = vmul.f32 %v8857_v48, %v2750_v26  ;;  %v2733_v43 = vmul.f32 %v2731_v52, %v7036_v38 }
0x16b0   :  { %v2773_v24 = vmul.f32 %v8858_v42, %v2772_v30  ;;  %v2734_v46 = vmul.f32 %v2732_v9, %v8681_v55 }
0x16b1   :  { %6485 = vtanh.f32 %v2751_v7 }
0x16b2   :  { %6487 = vtanh.f32 %v2773_v24 }
0x16b3   :  { %6489 = vtanh.f32 %v2733_v43 }
0x16b4   :  { %6491 = vtanh.f32 %v2734_v46 }
0x16bb   :  { %v6486_v56 = vpop.eup %6485 }
0x16bc   :  { %v2753_v39 = vmul.f32 %v8857_v48, %v6486_v56  ;;  %v6488_v49 = vpop.eup %6487 }
0x16bd   :  { %v2775_v5 = vmul.f32 %v8858_v42, %v6488_v49  ;;  %v6490_v40 = vpop.eup %6489 }
0x16be   :  { %v2754_v35 = vadd.f32 %v8859_v13, %v2753_v39  ;;  %v6492_v17 = vpop.eup %6491  ;;  %v2737_v58 = vmul.f32 %v6490_v40, %v7036_v38 }
0x16bf   :  { %v2776_v62 = vadd.f32 %v8860_v37, %v2775_v5  ;;  %v2738_v3 = vmul.f32 %v6492_v17, %v8681_v55 }
0x16c0   :  { %2757 = vrot.lane.b32.xlu1 %v2754_v35, %s6639_s30  ;;  %v2755_v29 = vmul.f32 %v2754_v35, %v7900_v0  ;;  %v2739_v11 = vadd.f32 %v2737_v58, %v8683_v61 }
0x16c1   :  { %2779 = vrot.lane.b32.xlu0 %v2776_v62, %s6639_s30  ;;  %v2777_v41 = vmul.f32 %v2776_v62, %v7902_v36  ;;  %v2740_v45 = vadd.f32 %v2738_v3, %v8782_v15 }
0x16c2   :  { %v2741_v55 = vmul.f32 %v2739_v11, %v7921_v60 }
0x16c3   :  { %v2742_v36 = vmul.f32 %v2740_v45, %v2739_v11 }
0x1732   :  { %v2758_v51 = vpop.permute.xlu1 %2757 }
0x1733   :  { %v2760_v57 = vmul.f32 %v2758_v51, %v2754_v35  ;;  %v2780_v2 = vpop.permute.xlu0 %2779 }
0x1734   :  { %v2782_v54 = vmul.f32 %v2780_v2, %v2776_v62 }
0x1735   :  { %2762 = vrot.lane.b32.xlu1 %v2760_v57, %s6640_s0 }
0x1736   :  { %2784 = vrot.lane.b32.xlu0 %v2782_v54, %s6640_s0 }
0x17a7   :  { %v2763_v32 = vpop.permute.xlu1 %2762 }
0x17a8   :  { %v2765_v6 = vadd.f32 %v2763_v32, %v2755_v29  ;;  %v2785_v21 = vpop.permute.xlu0 %2784 }
0x17a9   :  { %v2787_v22 = vadd.f32 %v2785_v21, %v2777_v41 }
0x17aa   :  { %6493 = vtanh.f32 %v2765_v6 }
0x17ab   :  { %6495 = vtanh.f32 %v2787_v22 }
0x17b4   :  { %v6494_v47 = vpop.eup %6493 }
0x17b5   :  { %2768 = vrot.lane.b32.xlu1 %v6494_v47, %s6639_s30  ;;  %v6496_v0 = vpop.eup %6495 }
0x17b6   :  { %2790 = vrot.lane.b32.xlu0 %v6496_v0, %s6639_s30 }
0x17b9   :  { %2744 = vrot.lane.b32.xlu1 %v2742_v36, %s6639_s30 }
0x1827   :  { %v2769_v53 = vpop.permute.xlu1 %2768 }
0x1828   :  { %v2771_v27 = vmul.f32 %v2769_v53, %v2754_v35  ;;  %v2791_v31 = vpop.permute.xlu0 %2790 }
0x1829   :  { %v8002_v1 = vmul.f32 %v2791_v31, %v2776_v62 }
0x182a   :  { %2795 = vrot.lane.b32.xlu0 %v2771_v27, %s6640_s0 }
0x182b   :  { %2799 = vrot.lane.b32.xlu1 %v8002_v1, %s6639_s30  ;;  %v2745_v38 = vpop.permute.xlu1 %2744 }
0x182c   :  { %v2747_v61 = vadd.f32 %v2745_v38, %v2741_v55 }
0x182e   :  { %6497 = vtanh.f32 %v2747_v61 }
0x1838   :  { %v6498_v15 = vpop.eup %6497 }
0x1839   :  { %v2749_v12 = vmul.f32 %v6498_v15, %v2740_v45 }
0x183b   :  { %v2802_v44 = vsel %vm388_vm1, %v7927_v16, %v2749_v12 }
0x189c   :  { %v2796_v4 = vpop.permute.xlu0 %2795 }
0x189d   :  { %v2800_v28 = vpop.permute.xlu1 %2799 }
0x189e   :  { %v2803_v33 = vsel %vm1014_vm2, %v2796_v4, %v2800_v28 }
0x189f   :  { %4558 = vmatprep.mubr.msk.f32.mxu0 %vm388_vm1, %v2803_v33 }
0x18a0   :  { %2872 = vmatmul.mubr.f32.vlgmr.msra.gmra.mrb[22].mxu0 %v2802_v44 }
0x1973   :  { %v2873_v59 = vpop.f32.mrb[22].mxu0 }
0x1974   :  { %v2878_v8 = vadd.f32 %v8855_v23, %v2873_v59  ;;  %v2875_v25 = vpop.f32.mrb[23].mxu0 }
0x1975   :  { %v2900_v60 = vadd.f32 %v8856_v18, %v2875_v25 }
0x1976   :  { %v2879_v19 = vmul.f32 %v8857_v48, %v2878_v8 }
0x1977   :  { %v2901_v14 = vmul.f32 %v8858_v42, %v2900_v60 }
0x1978   :  { %6499 = vtanh.f32 %v2879_v19 }
0x1979   :  { %6501 = vtanh.f32 %v2901_v14 }
0x1982   :  { %v6500_v20 = vpop.eup %6499 }
0x1983   :  { %v6502_v26 = vpop.eup %6501  ;;  %v2881_v34 = vmul.f32 %v8857_v48, %v6500_v20 }
0x1984   :  { %v2903_v63 = vmul.f32 %v8858_v42, %v6502_v26 }
0x1985   :  { %v2882_v16 = vadd.f32 %v8859_v13, %v2881_v34 }
0x1986   :  { %v2904_v30 = vadd.f32 %v8860_v37, %v2903_v63 }
0x1987   :  { %2885 = vrot.lane.b32.xlu0 %v2882_v16, %s6639_s30  ;;  %v2883_v39 = vmul.f32 %v2882_v16, %v2765_v6 }
0x1988   :  { %2907 = vrot.lane.b32.xlu1 %v2904_v30, %s6639_s30  ;;  %v2905_v49 = vmul.f32 %v2904_v30, %v2787_v22 }
0x19f9   :  { %v2886_v23 = vpop.permute.xlu0 %2885 }
0x19fa   :  { %v2888_v7 = vmul.f32 %v2886_v23, %v2882_v16  ;;  %v2908_v24 = vpop.permute.xlu1 %2907 }
0x19fb   :  { %v2910_v56 = vmul.f32 %v2908_v24, %v2904_v30 }
0x19fc   :  { %2890 = vrot.lane.b32.xlu0 %v2888_v7, %s6640_s0 }
0x19fd   :  { %2912 = vrot.lane.b32.xlu1 %v2910_v56, %s6640_s0 }
0x1a6e   :  { %v2891_v48 = vpop.permute.xlu0 %2890 }
0x1a6f   :  { %v2893_v35 = vadd.f32 %v2891_v48, %v2883_v39  ;;  %v2913_v5 = vpop.permute.xlu1 %2912 }
0x1a70   :  { %v2915_v13 = vadd.f32 %v2913_v5, %v2905_v49 }
0x1a71   :  { %6503 = vtanh.f32 %v2893_v35 }
0x1a72   :  { %6505 = vtanh.f32 %v2915_v13 }
0x1a7b   :  { %v6504_v62 = vpop.eup %6503 }
0x1a7c   :  { %v6506_v51 = vpop.eup %6505  ;;  %2896 = vrot.lane.b32.xlu0 %v6504_v62, %s6639_s30 }
0x1a7d   :  { %2918 = vrot.lane.b32.xlu1 %v6506_v51, %s6639_s30 }
0x1aee   :  { %v2897_v57 = vpop.permute.xlu0 %2896 }
0x1aef   :  { %v2899_v2 = vmul.f32 %v2897_v57, %v2882_v16  ;;  %v2919_v54 = vpop.permute.xlu1 %2918 }
0x1af0   :  { %v8026_v52 = vmul.f32 %v2919_v54, %v2904_v30 }
0x1af1   :  { %2923 = vrot.lane.b32.xlu0 %v2899_v2, %s6640_s0 }
0x1af2   :  { %2927 = vrot.lane.b32.xlu1 %v8026_v52, %s6639_s30 }
0x1b63   :  { %v2924_v9 = vpop.permute.xlu0 %2923 }
0x1b64   :  { %v2928_v43 = vpop.permute.xlu1 %2927 }
0x1b65   :  { %v2930_v46 = vsel %vm1014_vm2, %v2924_v9, %v2928_v43 }
0x1b66   :  { %4559 = vmatprep.mubr.msk.f32.mxu1 %vm388_vm1, %v2930_v46 }
0x1b67   :  { %2999 = vmatmul.mubr.f32.vlgmr.msra.gmra.mrb[40].mxu1 %v2802_v44 }
0x1c3a   :  { %v3000_v29 = vpop.f32.mrb[40].mxu1 }
0x1c3b   :  { %v3001_v32 = vpop.f32.mrb[41].mxu1 }
0x1c3c   :  { %v3004_v6 = vadd.f32 %v8856_v18, %v3001_v32 }
0x1c3e   :  { %v3005_v41 = vmul.f32 %v8858_v42, %v3004_v6 }
0x1c40   :  { %6507 = vtanh.f32 %v3005_v41 }
0x1c4a   :  { %v6508_v21 = vpop.eup %6507 }
0x1c4b   :  { %v3007_v22 = vmul.f32 %v8858_v42, %v6508_v21 }
0x1c4d   :  { %v3008_v40 = vadd.f32 %v8860_v37, %v3007_v22 }
0x1c4f   :  { %3011 = vrot.lane.b32.xlu0 %v3008_v40, %s6639_s30  ;;  %v3009_v3 = vmul.f32 %v3008_v40, %v2915_v13 }
0x1cc1   :  { %v3012_v17 = vpop.permute.xlu0 %3011 }
0x1cc2   :  { %v3014_v58 = vmul.f32 %v3012_v17, %v3008_v40 }
0x1cc4   :  { %3016 = vrot.lane.b32.xlu1 %v3014_v58, %s6640_s0 }
0x1d36   :  { %v3017_v18 = vpop.permute.xlu1 %3016 }
0x1d37   :  { %6570 = shalt.err (!%p6567_p10)  }
0x1d38   :  { %s6571_s29 = scalar_lea.vmem %s36_s20, 2176  ;;  %p6576_p12 = scmp.lt.s32.totalorder %s36_s20, %s36_s20 }
0x1d39   :  { %p6572_p11 = scmp.ne.s32.totalorder %s36_s20, %s6571_s29  ;;  %p6577_p13 = scmp.lt.s32.totalorder %s6571_s29, %s6571_s29 }
0x1d3b   :  { %p6578_p0 = por %p6577_p13, %p6576_p12 }
0x1d3d   :  { %p6579_p1 = pnand %p6578_p0, %p6572_p11 }
0x1d3f   :  { %6582 = shalt.err (!%p6579_p1)  }
0x1d40   :  { %38 = dma.hbm_to_vmem [thread:$0]  %s8298_s2, 2176, %s36_s20, [#allocation5]  ;;  %v3019_v42 = vadd.f32 %v3017_v18, %v3009_v3 }
0x1d41   :  { %s6583_s9 = scalar_lea.hbm %s8299_s3, 4736 }
0x1d42   :  { %p6584_p2 = scmp.ne.s32.totalorder %s8299_s3, %s6583_s9  ;;  %p6587_p3 = scmp.lt.u32.totalorder %s6583_s9, %s8299_s3 }
0x1d44   :  { %p6589_p4 = pnand %p6587_p3, %p6584_p2 }
0x1d46   :  { %6592 = shalt.err (!%p6589_p4)  }
0x1d47   :  { %s6593_s14 = scalar_lea.vmem %s48_s22, 4736  ;;  %p6598_p6 = scmp.lt.s32.totalorder %s48_s22, %s48_s22 }
0x1d48   :  { %p6594_p5 = scmp.ne.s32.totalorder %s48_s22, %s6593_s14  ;;  %p6599_p7 = scmp.lt.s32.totalorder %s6593_s14, %s6593_s14 }
0x1d4a   :  { %p6600_p8 = por %p6599_p7, %p6598_p6 }
0x1d4c   :  { %p6601_p9 = pnand %p6600_p8, %p6594_p5 }
0x1d4e   :  { %6604 = shalt.err (!%p6601_p9)  }
0x1d4f   :  { %50 = dma.hbm_to_vmem [thread:$0]  %s8299_s3, 4736, %s48_s22, [#allocation5 + $0x1]  ;;  %6509 = vtanh.f32 %v3019_v42 }
0x1d59   :  { %v6510_v37 = vpop.eup %6509 }
0x1d5a   :  { %3022 = vrot.lane.b32.xlu0 %v6510_v37, %s6639_s30 }
0x1dcc   :  { %v3023_v11 = vpop.permute.xlu0 %3022 }
0x1dcd   :  { %v3025_v45 = vmul.f32 %v3023_v11, %v3008_v40 }
0x1dce   :  { %6629 = dma.done.wait [#allocation5], 2176 }
0x1dcf   :  { %6630 = vsyncadd [#allocation5], 4294965120  ;;  %3057 = vrot.lane.b32.xlu0 %v3025_v45, %s6640_s0  ;;  %v8861_v47 = vld [vmem:[#allocation97_spill] sm:$0xff] }
0x1dd0   :  { %3137 = vrot.lane.b32.xlu1 %v8861_v47, %s6640_s0 }
0x1dd1   :  { %6631 = dma.done.wait [#allocation5 + $0x1], 4736 }
0x1dd2   :  { %6632 = vsyncadd [#allocation5 + $0x1], 4294962560  ;;  %v6643_v0 = vmov 0.0|0.0   ;;  %vm6644_vm3 = vmmov 0   ;;  %v8862_v36 = vmov 0.0   ;;  %v8863_v53 = vld [vmem:[#allocation96_spill] sm:$0xff]  ;;  %v8865_v7 = vlaneseq }
0x1dd3   :  { %6193 = vmatprep.subr.bf16.mxu0 %v6643_v0  ;;  %4767 = vmatprep.mubr.msk.f32.mxu0 %vm6644_vm3, %v8862_v36  ;;  %v8864_v27 = vld [vmem:[#allocation98_spill] sm:$0xff]  ;;  %v3032_v31 = vld [vmem:[#allocation3] sm:$0xff]  ;;  %v3034_v55 = vld [vmem:[#allocation3 + $0x10] sm:$0xff]  ;;  %v6645_v62 = vmov 1.0|1.0   ;;  %s6646_s3 = smov [#allocation9]  }
0x1dd4   :  { %3135 = vrot.lane.b32.xlu0 %v8863_v53, %s6640_s0  ;;  %3139 = vrot.lane.b32.xlu1 %v8864_v27, %s6640_s0  ;;  %v3033_v38 = vld [vmem:[#allocation3 + $0x8] sm:$0xff]  ;;  %v3035_v15 = vld [vmem:[#allocation3 + $0x18] sm:$0xff]  ;;  %v3036_v4 = vld [vmem:[#allocation3 + $0x20] sm:$0xff]  ;;  %v8101_v24 = vand.u32 127, %v8865_v7  ;;  %s4509_s30 = sshll.u32 %s6646_s3, 4  ;;  %s4510_s30 = int_to_ptr.vmem [resolvable:$true] %s4509_s30 }
0x1dd5   :  { %v6194_v61 = vpack.c.bf16 %v3033_v38, %v3032_v31  ;;  %v3037_v12 = vld [vmem:[#allocation3 + $0x28] sm:$0xff]  ;;  %v6197_v28 = vpack.c.bf16 %v3035_v15, %v3034_v55  ;;  %v3039_v44 = vld [vmem:[#allocation3 + $0x38] sm:$0xff]  ;;  %v3040_v25 = vld [vmem:[#allocation3 + $0x40] sm:$0xff]  ;;  %s6605_s16 = scalar_lea.vmem %s4510_s30, 128  ;;  %p6610_p11 = scmp.lt.s32.totalorder %s4510_s30, %s4510_s30 }
0x1dd6   :  { %v6199_v33 = vpack.c.bf16 %v3037_v12, %v3036_v4  ;;  %v3041_v60 = vld [vmem:[#allocation3 + $0x48] sm:$0xff]  ;;  %v3043_v26 = vld [vmem:[#allocation3 + $0x58] sm:$0xff]  ;;  %v8108_v49 = vmul.u32 8, %v8101_v24  ;;  %v3389_v35 = vadd.s32 1, %v8101_v24  ;;  %v4560_v9 = vld [vmem:[#allocation3 + $0x80] ss:$0 sm:$0xff]  ;;  %p6606_p10 = scmp.ne.s32.totalorder %s4510_s30, %s6605_s16  ;;  %p6611_p12 = scmp.lt.s32.totalorder %s6605_s16, %s6605_s16 }
0x1dd7   :  { %6195 = vmatpush3.bf16.msra.mxu0 %v6194_v61  ;;  %v6207_v19 = vpack.c.bf16 %v3041_v60, %v3040_v25  ;;  %v8866_v56 = vld [vmem:[#allocation44_spill] sm:$0xff]  ;;  %v4562_v25 = vld [vmem:[#allocation3 + $0x81] ss:$0 sm:$0xff] }
0x1dd8   :  { %3141 = vrot.lane.b32.xlu0 %v7784_v50, %s6640_s0  ;;  %3143 = vrot.lane.b32.xlu1 %v7914_v10, %s6640_s0  ;;  %v3038_v50 = vld [vmem:[#allocation3 + $0x30] sm:$0xff]  ;;  %v3419_v39 = vand.u32 7, %v8866_v56  ;;  %v3379_v5 = vadd.s32 8, %v8866_v56  ;;  %vm3385_vm5 = vcmp.ge.s32.totalorder %v8866_v56, %v8108_v49  ;;  %v8114_v13 = vmul.u32 8, %v3389_v35  ;;  %p6612_p13 = por %p6611_p12, %p6610_p11 }
0x1dd9   :  { %6196 = vmatprep.subr.bf16.mxu0 %v6643_v0  ;;  %v6203_v10 = vpack.c.bf16 %v3039_v44, %v3038_v50  ;;  %v3380_v51 = vadd.s32 16, %v8866_v56  ;;  %v3381_v2 = vadd.s32 24, %v8866_v56  ;;  %v3416_v46 = vadd.s32 40, %v8866_v56 }
0x1dda   :  { %vm3427_vm4 = vcmp.eq.s32.totalorder %v3419_v39, %v8101_v24  ;;  %vm3386_vm6 = vcmp.ge.s32.totalorder %v3379_v5, %v8108_v49  ;;  %vm3391_vm7 = vcmp.lt.s32.totalorder %v8866_v56, %v8114_v13  ;;  %vm3392_vm8 = vcmp.lt.s32.totalorder %v3379_v5, %v8114_v13  ;;  %p6613_p0 = pnand %p6612_p13, %p6606_p10 }
0x1ddb   :  { %6198 = vmatpush3.bf16.msra.mxu0 %v6197_v28  ;;  %v4585_v48 = vsel %vm3427_vm4, 1.0, %v8862_v36  ;;  %vm3395_vm9 = vmand %vm3385_vm5, %vm3391_vm7  ;;  %v3420_v57 = vand.u32 7, %v3379_v5  ;;  %v3421_v54 = vand.u32 7, %v3380_v51  ;;  %v3422_v43 = vand.u32 7, %v3381_v2 }
0x1ddc   :  { %3145 = vrot.lane.b32.xlu0 %v8002_v1, %s6640_s0  ;;  %3147 = vrot.lane.b32.xlu1 %v8026_v52, %s6640_s0  ;;  %v3042_v1 = vld [vmem:[#allocation3 + $0x50] sm:$0xff]  ;;  %vm3396_vm10 = vmand %vm3386_vm6, %vm3392_vm8  ;;  %v3415_v52 = vadd.s32 32, %v8866_v56  ;;  %v3417_v6 = vadd.s32 48, %v8866_v56  ;;  %v3424_v17 = vand.u32 7, %v3416_v46  ;;  %v3418_v58 = vadd.s32 56, %v8866_v56 }
0x1ddd   :  { %6200 = vmatprep.subr.bf16.mxu0 %v6199_v33  ;;  %v6211_v34 = vpack.c.bf16 %v3043_v26, %v3042_v1  ;;  %vm6215_vm11 = vmpackc.low %vm3396_vm10, %vm3395_vm9  ;;  %vm3428_vm12 = vcmp.eq.s32.totalorder %v3420_v57, %v8101_v24  ;;  %vm3429_vm13 = vcmp.eq.s32.totalorder %v3421_v54, %v8101_v24  ;;  %vm3430_vm14 = vcmp.eq.s32.totalorder %v3422_v43, %v8101_v24 }
0x1dde   :  { %6216 = vmatprep.subr.msk.bf16.mxu1 %vm6215_vm11, %v6645_v62  ;;  %v3423_v32 = vand.u32 7, %v3415_v52  ;;  %v4586_v22 = vsel %vm3428_vm12, 1.0, %v8862_v36  ;;  %v4587_v40 = vsel %vm3429_vm13, 1.0, %v8862_v36  ;;  %v3425_v3 = vand.u32 7, %v3417_v6 }
0x1ddf   :  { %6218 = vmatpush3.bf16.msk.msra.mxu1 %vm6215_vm11, %v6645_v62  ;;  %v4588_v18 = vsel %vm3430_vm14, 1.0, %v8862_v36  ;;  %vm3432_vm4 = vcmp.eq.s32.totalorder %v3424_v17, %v8101_v24  ;;  %v3426_v37 = vand.u32 7, %v3418_v58  ;;  %vm3388_vm7 = vcmp.ge.s32.totalorder %v3381_v2, %v8108_v49 }
0x1de0   :  { %vm3431_vm15 = vcmp.eq.s32.totalorder %v3423_v32, %v8101_v24  ;;  %vm3433_vm5 = vcmp.eq.s32.totalorder %v3425_v3, %v8101_v24  ;;  %v4590_v47 = vsel %vm3432_vm4, 1.0, %v8862_v36  ;;  %vm3393_vm8 = vcmp.lt.s32.totalorder %v3380_v51, %v8114_v13 }
0x1de1   :  { %v4589_v42 = vsel %vm3431_vm15, 1.0, %v8862_v36  ;;  %v4591_v53 = vsel %vm3433_vm5, 1.0, %v8862_v36  ;;  %vm3434_vm6 = vcmp.eq.s32.totalorder %v3426_v37, %v8101_v24  ;;  %vm3394_vm9 = vcmp.lt.s32.totalorder %v3381_v2, %v8114_v13 }
0x1de2   :  { %v4592_v38 = vsel %vm3434_vm6, 1.0, %v8862_v36  ;;  %vm3398_vm11 = vmand %vm3388_vm7, %vm3394_vm9  ;;  %vm3729_vm13 = vcmask 31744   ;;  %vm3815_vm4 = vcmask 1043456  }
0x1e41   :  { %v3058_v59 = vpop.permute.xlu0 %3057 }
0x1e42   :  { %v3138_v8 = vpop.permute.xlu1 %3137  ;;  %4768 = vmatmul.mubr.msk.f32.vlgmr.msra.gmra.mrb[24].mxu0 %vm1014_vm2, %v3058_v59 }
0x1e43   :  { %6202 = vmatpush3.bf16.msra.mxu0 %v6199_v33 }
0x1e44   :  { %6204 = vmatprep.subr.bf16.mxu0 %v6203_v10 }
0x1e46   :  { %v3136_v14 = vpop.permute.xlu0 %3135  ;;  %v3140_v20 = vpop.permute.xlu1 %3139 }
0x1e47   :  { %4778 = vmatprep.mubr.msk.f32.mxu0 %vm1014_vm2, %v3136_v14  ;;  %6206 = vmatpush3.bf16.msra.mxu0 %v6203_v10 }
0x1e48   :  { %6208 = vmatprep.subr.bf16.mxu0 %v6207_v19 }
0x1e4a   :  { %v3142_v63 = vpop.permute.xlu0 %3141  ;;  %4779 = vmatmul.mubr.msk.f32.vlgmr.msra.gmra.mrb[26].mxu0 %vm1014_vm2, %v3138_v8  ;;  %v3144_v16 = vpop.permute.xlu1 %3143 }
0x1e4b   :  { %4781 = vmatprep.mubr.msk.f32.mxu0 %vm1014_vm2, %v3140_v20  ;;  %6210 = vmatpush3.bf16.msra.mxu0 %v6207_v19 }
0x1e4c   :  { %6212 = vmatprep.subr.bf16.mxu0 %v6211_v34 }
0x1e4e   :  { %4782 = vmatmul.mubr.msk.f32.gmra.mrb[28].mxu0 %vm1014_vm2, %v3142_v63  ;;  %v3146_v30 = vpop.permute.xlu0 %3145  ;;  %v3148_v23 = vpop.permute.xlu1 %3147 }
0x1e4f   :  { %4784 = vmatprep.mubr.msk.f32.mxu0 %vm1014_vm2, %v3144_v16  ;;  %6214 = vmatpush3.bf16.msra.mxu0 %v6211_v34 }
0x1e52   :  { %4785 = vmatmul.mubr.msk.f32.gmra.mrb[30].mxu0 %vm1014_vm2, %v3146_v30 }
0x1e53   :  { %4787 = vmatprep.mubr.msk.f32.mxu0 %vm1014_vm2, %v3148_v23 }
0x1e56   :  { %4788 = vmatmul.mubr.msk.f32.gmra.mrb[32].mxu0 %vm1014_vm2, %v3058_v59 }
0x1e57   :  { %4798 = vmatprep.mubr.msk.f32.mxu0 %vm1014_vm2, %v3136_v14 }
0x1e5a   :  { %4799 = vmatmul.mubr.msk.f32.vlgmr.msra.gmra.mrb[34].mxu0 %vm1014_vm2, %v3138_v8 }
0x1e5b   :  { %4801 = vmatprep.mubr.msk.f32.mxu0 %vm1014_vm2, %v3140_v20 }
0x1e5e   :  { %4802 = vmatmul.mubr.msk.f32.gmra.mrb[36].mxu0 %vm1014_vm2, %v3142_v63 }
0x1e5f   :  { %4804 = vmatprep.mubr.msk.f32.mxu0 %vm1014_vm2, %v3144_v16 }
0x1e62   :  { %4805 = vmatmul.mubr.msk.f32.gmra.mrb[38].mxu0 %vm1014_vm2, %v3146_v30 }
0x1e63   :  { %4807 = vmatprep.mubr.msk.f32.mxu0 %vm1014_vm2, %v3148_v23 }
0x1e66   :  { %4808 = vmatmul.mubr.msk.f32.gmra.mrb[40].mxu0 %vm1014_vm2, %v3058_v59 }
0x1e67   :  { %4812 = vmatprep.mubr.msk.f32.mxu0 %vm74_vm0, %v4585_v48 }
0x1f15   :  { %v3127_v29 = vpop.f32.mrb[24].mxu0 }
0x1f16   :  { %v3128_v41 = vadd.f32 %v4560_v9, %v3127_v29  ;;  %v4769_v21 = vpop.f32.mrb[25].mxu0 }
0x1f18   :  { %4810 = vmatprep.subr.mxu0 %v3128_v41 }
0x1f19   :  { %4811 = vmatpush3.msra.mxu0 %v3128_v41 }
0x1f1a   :  { %4813 = vmatmul.mubr.msk.f32.vlgmr.msra.gmra.mrb[42].mxu0 %vm74_vm0, %v4586_v22 }
0x1f1b   :  { %4815 = vmatprep.mubr.msk.f32.mxu0 %vm74_vm0, %v4587_v40 }
0x1f1d   :  { %v4780_v11 = vpop.f32.mrb[26].mxu0 }
0x1f1e   :  { %4816 = vmatmul.mubr.msk.f32.gmra.mrb[44].mxu0 %vm74_vm0, %v4588_v18  ;;  %v3229_v45 = vpop.f32.mrb[27].mxu0  ;;  %v3235_v60 = vadd.f32 %v4780_v11, %v4562_v25 }
0x1f1f   :  { %4818 = vmatprep.mubr.msk.f32.mxu0 %vm74_vm0, %v4589_v42  ;;  %v3230_v19 = vadd.f32 %v4562_v25, %v3229_v45 }
0x1f21   :  { %v4783_v27 = vpop.f32.mrb[28].mxu0 }
0x1f22   :  { %4819 = vmatmul.mubr.msk.f32.gmra.mrb[46].mxu0 %vm74_vm0, %v4590_v47  ;;  %v3239_v31 = vpop.f32.mrb[29].mxu0  ;;  %v3245_v34 = vadd.f32 %v4783_v27, %v4562_v25 }
0x1f23   :  { %4821 = vmatprep.mubr.msk.f32.mxu0 %vm74_vm0, %v4591_v53  ;;  %v3240_v63 = vadd.f32 %v4562_v25, %v3239_v31 }
0x1f25   :  { %v4786_v55 = vpop.f32.mrb[30].mxu0 }
0x1f26   :  { %4822 = vmatmul.mubr.msk.f32.gmra.mrb[48].mxu0 %vm74_vm0, %v4592_v38  ;;  %v3249_v61 = vpop.f32.mrb[31].mxu0  ;;  %vm3387_vm0 = vcmp.ge.s32.totalorder %v3380_v51, %v8108_v49  ;;  %v3255_v39 = vadd.f32 %v4786_v55, %v4562_v25 }
0x1f27   :  { %vm3397_vm10 = vmand %vm3387_vm0, %vm3393_vm8  ;;  %v3250_v48 = vadd.f32 %v4562_v25, %v3249_v61  ;;  %v3407_v61 = vmul.u32 8, %v8866_v56 }
0x1f28   :  { %vm6219_vm12 = vmpackc.low %vm3398_vm11, %vm3397_vm10 }
0x1f29   :  { %v4789_v15 = vpop.f32.mrb[32].mxu0  ;;  %6220 = vmatprep.subr.msk.bf16.mxu1 %vm6219_vm12, %v6645_v62  ;;  %vm3408_vm14 = vcmp.ge.s32.totalorder %v8101_v24, %v3407_v61 }
0x1f2a   :  { %v3259_v4 = vpop.f32.mrb[33].mxu0  ;;  %6222 = vmatpush3.bf16.msk.msra.mxu1 %vm6219_vm12, %v6645_v62  ;;  %v3265_v62 = vadd.f32 %v4789_v15, %v4562_v25  ;;  %v3409_v15 = vadd.s32 1, %v8866_v56 }
0x1f2b   :  { %6223 = vmatprep.subr.bf16.mxu1 %v6643_v0  ;;  %v3260_v51 = vadd.f32 %v4562_v25, %v3259_v4 }
0x1f2c   :  { %v3410_v4 = vmul.u32 8, %v3409_v15 }
0x1f2d   :  { %v8149_v12 = vpop.f32.mrb[34].mxu0 }
0x1f2e   :  { %v8151_v28 = vpop.f32.mrb[35].mxu0  ;;  %vm3411_vm15 = vcmp.lt.s32.totalorder %v8101_v24, %v3410_v4 }
0x1f2f   :  { %vm3412_vm5 = vmand %vm3408_vm14, %vm3411_vm15 }
0x1f30   :  { %v8207_v25 = vsel %vm3412_vm5, 1.0, %v8862_v36 }
0x1f31   :  { %v8153_v33 = vpop.f32.mrb[36].mxu0  ;;  %4844 = vmatprep.subr.msk.mxu0 %vm3815_vm4, %v8207_v25 }
0x1f32   :  { %v8155_v50 = vpop.f32.mrb[37].mxu0  ;;  %4845 = vmatpush3.msk.msra.mxu0 %vm3815_vm4, %v8207_v25 }
0x1f33   :  { %6235 = vmatprep.subr.bf16.mxu0 %v6643_v0 }
0x1f35   :  { %v8157_v44 = vpop.f32.mrb[38].mxu0 }
0x1f36   :  { %v8159_v10 = vpop.f32.mrb[39].mxu0 }
0x1f39   :  { %v8161_v59 = vpop.f32.mrb[40].mxu0 }
0x1f3a   :  { %v8163_v8 = vpop.f32.mrb[41].mxu0 }
0x1fed   :  { %v4814_v14 = vpop.f32.mrb[42].mxu0 }
0x1fee   :  { %v3585_v20 = vmul.f32 %v4814_v14, %v3235_v60  ;;  %v3545_v1 = vpop.f32.mrb[43].mxu0 }
0x1fef   :  { %v3584_v26 = vmul.f32 %v3545_v1, %v3230_v19 }
0x1ff1   :  { %v4817_v16 = vpop.f32.mrb[44].mxu0  ;;  %4832 = vmatprep.mubr.msk.f32.mxu1 %vm1014_vm2, %v3584_v26 }
0x1ff2   :  { %v3587_v30 = vmul.f32 %v4817_v16, %v3245_v34  ;;  %v3555_v23 = vpop.f32.mrb[45].mxu0  ;;  %4833 = vmatmul.mubr.msk.f32.vlgmr.msra.gmra.mrb[42].mxu1 %vm1014_vm2, %v3585_v20 }
0x1ff3   :  { %v3586_v7 = vmul.f32 %v3555_v23, %v3240_v63 }
0x1ff5   :  { %v4820_v49 = vpop.f32.mrb[46].mxu0  ;;  %4835 = vmatprep.mubr.msk.f32.mxu1 %vm1014_vm2, %v3586_v7 }
0x1ff6   :  { %v3589_v35 = vmul.f32 %v4820_v49, %v3255_v39  ;;  %v3565_v5 = vpop.f32.mrb[47].mxu0  ;;  %4836 = vmatmul.mubr.msk.f32.gmra.mrb[44].mxu1 %vm1014_vm2, %v3587_v30 }
0x1ff7   :  { %v3588_v13 = vmul.f32 %v3565_v5, %v3250_v48 }
0x1ff9   :  { %v4823_v57 = vpop.f32.mrb[48].mxu0  ;;  %4838 = vmatprep.mubr.msk.f32.mxu1 %vm1014_vm2, %v3588_v13 }
0x1ffa   :  { %v3591_v2 = vmul.f32 %v4823_v57, %v3265_v62  ;;  %v3575_v54 = vpop.f32.mrb[49].mxu0  ;;  %4839 = vmatmul.mubr.msk.f32.gmra.mrb[46].mxu1 %vm1014_vm2, %v3589_v35 }
0x1ffb   :  { %v3590_v52 = vmul.f32 %v3575_v54, %v3260_v51 }
0x1ffd   :  { %4841 = vmatprep.mubr.msk.f32.mxu1 %vm1014_vm2, %v3590_v52 }
0x1ffe   :  { %4842 = vmatmul.mubr.msk.f32.gmra.mrb[48].mxu1 %vm1014_vm2, %v3591_v2 }
0x1fff   :  { %4874 = vmatprep.mubr.msk.f32.mxu1 %vm6644_vm3, %v8862_v36 }
0x20c5   :  { %v4834_v9 = vpop.f32.mrb[42].mxu1 }
0x20c6   :  { %v8182_v43 = vmul.f32 0.35355338, %v4834_v9  ;;  %v3682_v46 = vpop.f32.mrb[43].mxu1 }
0x20c7   :  { %v8184_v29 = vmul.f32 0.35355338, %v3682_v46 }
0x20c8   :  { %v3733_v32 = vsel %vm3729_vm13, %v8182_v43, -inf }
0x20c9   :  { %3734 = vmax.xlane.f32.xlu1 %v3733_v32  ;;  %v4837_v6 = vpop.f32.mrb[44].mxu1  ;;  %v3730_v41 = vsel %vm3729_vm13, %v8184_v29, -inf }
0x20ca   :  { %v8190_v21 = vmul.f32 0.35355338, %v4837_v6  ;;  %3731 = vmax.xlane.f32.xlu0 %v3730_v41  ;;  %v3692_v22 = vpop.f32.mrb[45].mxu1 }
0x20cb   :  { %v3723_v17 = vmul.f32 0.35355338, %v3692_v22 }
0x20cc   :  { %v3739_v40 = vsel %vm3729_vm13, %v8190_v21, -inf }
0x20cd   :  { %v4840_v58 = vpop.f32.mrb[46].mxu1  ;;  %v3736_v11 = vsel %vm3729_vm13, %v3723_v17, -inf }
0x20ce   :  { %3740 = vmax.xlane.f32.xlu0 %v3739_v40  ;;  %v3702_v3 = vpop.f32.mrb[47].mxu1  ;;  %v8194_v42 = vmul.f32 0.35355338, %v4840_v58 }
0x20cf   :  { %v3725_v18 = vmul.f32 0.35355338, %v3702_v3 }
0x20d0   :  { %v3745_v31 = vsel %vm3729_vm13, %v8194_v42, -inf }
0x20d1   :  { %v4843_v37 = vpop.f32.mrb[48].mxu1  ;;  %v3742_v45 = vsel %vm3729_vm13, %v3725_v18, -inf }
0x20d2   :  { %3737 = vmax.xlane.f32.xlu0 %v3736_v11  ;;  %3743 = vmax.xlane.f32.xlu1 %v3742_v45  ;;  %v3712_v47 = vpop.f32.mrb[49].mxu1  ;;  %v3728_v27 = vmul.f32 0.35355338, %v4843_v37 }
0x20d3   :  { %v3727_v53 = vmul.f32 0.35355338, %v3712_v47 }
0x20d4   :  { %v3751_v55 = vsel %vm3729_vm13, %v3728_v27, -inf }
0x20d5   :  { %v3748_v38 = vsel %vm3729_vm13, %v3727_v53, -inf }
0x20d6   :  { %3746 = vmax.xlane.f32.xlu0 %v3745_v31  ;;  %3749 = vmax.xlane.f32.xlu1 %v3748_v38  ;;  %v3451_v31 = vand.u32 7, %v8101_v24 }
0x20d8   :  { %vm3452_vm6 = vcmp.eq.s32.totalorder %v3451_v31, %v8866_v56  ;;  %v4235_v31 = vld [vmem:[#allocation4 + $0x40] sm:$0xff] }
0x20d9   :  { %v4593_v4 = vsel %vm3452_vm6, 1.0, %v8862_v36 }
0x20da   :  { %3752 = vmax.xlane.f32.xlu0 %v3751_v55 }
0x2156   :  { %v3735_v19 = vpop.xlane.xlu1 %3734 }
0x2157   :  { %v3732_v60 = vpop.xlane.xlu0 %3731 }
0x215b   :  { %v3741_v14 = vpop.xlane.xlu0 %3740 }
0x215f   :  { %v3738_v20 = vpop.xlane.xlu0 %3737  ;;  %v3744_v1 = vpop.xlane.xlu1 %3743 }
0x2160   :  { %v3754_v30 = vmax.f32 %v3732_v60, %v3744_v1  ;;  %v4571_v60 = vld [vmem:[#allocation3 + $0x82] ss:$0 sm:$0xff] }
0x2161   :  { %v3339_v56 = vadd.f32 %v4571_v60, %v8151_v28 }
0x2163   :  { %v3747_v26 = vpop.xlane.xlu0 %3746  ;;  %v3750_v34 = vpop.xlane.xlu1 %3749 }
0x2164   :  { %v3755_v63 = vmax.f32 %v3735_v19, %v3747_v26  ;;  %v3756_v23 = vmax.f32 %v3738_v20, %v3750_v34  ;;  %v3344_v19 = vadd.f32 %v8149_v12, %v4571_v60  ;;  %v3354_v34 = vadd.f32 %v8153_v33, %v4571_v60 }
0x2165   :  { %v3359_v12 = vadd.f32 %v4571_v60, %v8159_v10  ;;  %v3374_v33 = vadd.f32 %v8161_v59, %v4571_v60  ;;  %v3044_v59 = vld [vmem:[#allocation3 + $0x60] sm:$0xff] }
0x2166   :  { %v3758_v39 = vmax.f32 %v3754_v30, %v3755_v63  ;;  %v3349_v63 = vadd.f32 %v4571_v60, %v8155_v50  ;;  %v3369_v50 = vadd.f32 %v4571_v60, %v8163_v8  ;;  %v3045_v8 = vld [vmem:[#allocation3 + $0x68] sm:$0xff] }
0x2167   :  { %v3753_v16 = vpop.xlane.xlu0 %3752 }
0x2168   :  { %v3757_v7 = vmax.f32 %v3741_v14, %v3753_v16 }
0x216a   :  { %v3759_v48 = vmax.f32 %v3756_v23, %v3757_v7 }
0x216c   :  { %v3760_v49 = vmax.f32 %v3758_v39, %v3759_v48  ;;  %v3364_v48 = vadd.f32 %v8157_v44, %v4571_v60  ;;  %v4239_v60 = vld [vmem:[#allocation4 + $0x60] sm:$0xff] }
0x216e   :  { %v3761_v35 = vrot.slane %v3760_v49, 4 }
0x2170   :  { %v3762_v5 = vmax.f32 %v3760_v49, %v3761_v35 }
0x2172   :  { %v3763_v13 = vrot.slane %v3762_v5, 2 }
0x2174   :  { %v3764_v62 = vmax.f32 %v3762_v5, %v3763_v13 }
0x2176   :  { %v3765_v51 = vrot.slane %v3764_v62, 1 }
0x2178   :  { %v3766_v57 = vmax.f32 %v3764_v62, %v3765_v51 }
0x217a   :  { %v3767_v2 = vsub.f32 %v8184_v29, %v3766_v57  ;;  %v3768_v54 = vsub.f32 %v8182_v43, %v3766_v57  ;;  %v3769_v52 = vsub.f32 %v3723_v17, %v3766_v57  ;;  %v3770_v9 = vsub.f32 %v8190_v21, %v3766_v57 }
0x217b   :  { %v3771_v46 = vsub.f32 %v3725_v18, %v3766_v57  ;;  %v3772_v22 = vsub.f32 %v8194_v42, %v3766_v57  ;;  %v3773_v58 = vsub.f32 %v3727_v53, %v3766_v57  ;;  %v3774_v37 = vsub.f32 %v3728_v27, %v3766_v57 }
0x217c   :  { %v3775_v32 = vmul.f32 1.442695, %v3767_v2  ;;  %v3777_v6 = vmul.f32 1.442695, %v3768_v54  ;;  %v3779_v41 = vmul.f32 1.442695, %v3769_v52 }
0x217d   :  { %v3781_v40 = vmul.f32 1.442695, %v3770_v9  ;;  %v3783_v3 = vmul.f32 1.442695, %v3771_v46  ;;  %v3785_v11 = vmul.f32 1.442695, %v3772_v22  ;;  %v6248_v46 = vpack.c.bf16 %v3045_v8, %v3044_v59 }
0x217e   :  { %6517 = vpow2.f32 %v3777_v6  ;;  %v3787_v29 = vmul.f32 1.442695, %v3773_v58  ;;  %v3789_v43 = vmul.f32 1.442695, %v3774_v37  ;;  %v3046_v9 = vld [vmem:[#allocation3 + $0x70] sm:$0xff]  ;;  %v4258_v59 = vld [vmem:[#allocation4 + $0xf8] sm:$0xff] }
0x217f   :  { %6519 = vpow2.f32 %v3775_v32  ;;  %v3047_v32 = vld [vmem:[#allocation3 + $0x78] sm:$0xff] }
0x2180   :  { %6521 = vpow2.f32 %v3779_v41  ;;  %v6251_v6 = vpack.c.bf16 %v3047_v32, %v3046_v9  ;;  %v4228_v41 = vld [vmem:[#allocation4 + $0x8] sm:$0xff]  ;;  %v4259_v9 = vld [vmem:[#allocation4 + $0x100] sm:$0xff] }
0x2181   :  { %6523 = vpow2.f32 %v3781_v40 }
0x2182   :  { %6525 = vpow2.f32 %v3783_v3 }
0x2183   :  { %6527 = vpow2.f32 %v3785_v11 }
0x2184   :  { %6529 = vpow2.f32 %v3787_v29 }
0x2185   :  { %6531 = vpow2.f32 %v3789_v43  ;;  %v4229_v43 = vld [vmem:[#allocation4 + $0x10] sm:$0xff] }
0x2188   :  { %v6518_v21 = vpop.eup %6517 }
0x2189   :  { %v6520_v17 = vpop.eup %6519 }
0x218a   :  { %v6522_v18 = vpop.eup %6521  ;;  %4846 = vmatprep.mubr.msk.f32.mxu0 %vm3729_vm13, %v6520_v17  ;;  %v6236_v42 = vpack.c.bf16 %v6518_v21, %v6520_v17 }
0x218b   :  { %v6524_v45 = vpop.eup %6523  ;;  %4847 = vmatmul.mubr.msk.f32.vlgmr.msra.gmra.mrb[50].mxu0 %vm3729_vm13, %v6518_v21  ;;  %v4230_v21 = vld [vmem:[#allocation4 + $0x18] sm:$0xff] }
0x218c   :  { %4849 = vmatprep.mubr.msk.f32.mxu0 %vm3729_vm13, %v6522_v18  ;;  %6237 = vmatpush3.bf16.msra.mxu0 %v6236_v42  ;;  %v6526_v47 = vpop.eup %6525  ;;  %v6239_v53 = vpack.c.bf16 %v6524_v45, %v6522_v18  ;;  %v6257_v17 = vpack.c.bf16 %v4230_v21, %v4229_v43  ;;  %v4231_v18 = vld [vmem:[#allocation4 + $0x20] sm:$0xff]  ;;  %v4232_v42 = vld [vmem:[#allocation4 + $0x28] sm:$0xff] }
0x218d   :  { %6238 = vmatprep.subr.bf16.mxu0 %v6643_v0  ;;  %v6528_v27 = vpop.eup %6527 }
0x218e   :  { %v6530_v38 = vpop.eup %6529  ;;  %v6242_v55 = vpack.c.bf16 %v6528_v27, %v6526_v47 }
0x218f   :  { %4850 = vmatmul.mubr.msk.f32.gmra.mrb[52].mxu0 %vm3729_vm13, %v6524_v45  ;;  %v6532_v61 = vpop.eup %6531  ;;  %v4233_v45 = vld [vmem:[#allocation4 + $0x30] sm:$0xff] }
0x2190   :  { %4852 = vmatprep.mubr.msk.f32.mxu0 %vm3729_vm13, %v6526_v47  ;;  %6240 = vmatpush3.bf16.msra.mxu0 %v6239_v53  ;;  %v6245_v15 = vpack.c.bf16 %v6532_v61, %v6530_v38  ;;  %v6260_v47 = vpack.c.bf16 %v4232_v42, %v4231_v18  ;;  %v4234_v53 = vld [vmem:[#allocation4 + $0x38] sm:$0xff]  ;;  %v4632_v18 = vld [vmem:[#allocation4 + $0x122] ss:$0 sm:$0xff] }
0x2191   :  { %6241 = vmatprep.subr.bf16.mxu0 %v6643_v0 }
0x2193   :  { %4853 = vmatmul.mubr.msk.f32.gmra.mrb[54].mxu0 %vm3729_vm13, %v6528_v27  ;;  %v6263_v27 = vpack.c.bf16 %v4234_v53, %v4233_v45 }
0x2194   :  { %4855 = vmatprep.mubr.msk.f32.mxu0 %vm3729_vm13, %v6530_v38  ;;  %6243 = vmatpush3.bf16.msra.mxu0 %v6242_v55  ;;  %v4236_v38 = vld [vmem:[#allocation4 + $0x48] sm:$0xff] }
0x2195   :  { %6244 = vmatprep.subr.bf16.mxu0 %v6643_v0  ;;  %v6266_v55 = vpack.c.bf16 %v4236_v38, %v4235_v31 }
0x2197   :  { %4856 = vmatmul.mubr.msk.f32.gmra.mrb[56].mxu0 %vm3729_vm13, %v6532_v61  ;;  %v4237_v61 = vld [vmem:[#allocation4 + $0x50] sm:$0xff] }
0x2198   :  { %6246 = vmatpush3.bf16.msra.mxu0 %v6245_v15  ;;  %4893 = vmatprep.mubr.msk.f32.mxu0 %vm6644_vm3, %v8862_v36  ;;  %v4238_v15 = vld [vmem:[#allocation4 + $0x58] sm:$0xff] }
0x2199   :  { %6253 = vmatprep.subr.bf16.mxu0 %v6643_v0 }
0x219b   :  { %4894 = vmatmul.mubr.msk.f32.vlgmr.msra.gmra.mrb[58].mxu0 %vm388_vm1, %v4593_v4 }
0x219c   :  { %4920 = vmatprep.mubr.msk.f32.mxu0 %vm6644_vm3, %v8862_v36 }
0x225e   :  { %v4848_v14 = vpop.f32.mrb[50].mxu0 }
0x225f   :  { %v3925_v20 = vmul.f32 %v4848_v14, %v3344_v19  ;;  %v3885_v1 = vpop.f32.mrb[51].mxu0  ;;  %v4240_v19 = vld [vmem:[#allocation4 + $0x68] sm:$0xff]  ;;  %v4241_v14 = vld [vmem:[#allocation4 + $0x70] sm:$0xff] }
0x2260   :  { %v3924_v26 = vmul.f32 %v3885_v1, %v3339_v56  ;;  %v6272_v56 = vpack.c.bf16 %v4240_v19, %v4239_v60 }
0x2262   :  { %v6224_v16 = vpack.c.bf16 %v3925_v20, %v3924_v26  ;;  %v4851_v30 = vpop.f32.mrb[52].mxu0  ;;  %v4242_v20 = vld [vmem:[#allocation4 + $0x78] sm:$0xff]  ;;  %v4243_v26 = vld [vmem:[#allocation4 + $0x80] sm:$0xff] }
0x2263   :  { %v3927_v23 = vmul.f32 %v4851_v30, %v3354_v34  ;;  %v3895_v7 = vpop.f32.mrb[53].mxu0  ;;  %v6275_v1 = vpack.c.bf16 %v4242_v20, %v4241_v14  ;;  %v4244_v34 = vld [vmem:[#allocation4 + $0x88] sm:$0xff] }
0x2264   :  { %v3926_v39 = vmul.f32 %v3895_v7, %v3349_v63  ;;  %6225 = vmatpush3.bf16.msra.mxu1 %v6224_v16  ;;  %v6278_v63 = vpack.c.bf16 %v4244_v34, %v4243_v26  ;;  %v4627_v16 = vld [vmem:[#allocation3 + $0x83] ss:$0 sm:$0xff] }
0x2265   :  { %6226 = vmatprep.subr.bf16.mxu1 %v6643_v0 }
0x2266   :  { %v6227_v28 = vpack.c.bf16 %v3927_v23, %v3926_v39  ;;  %v4854_v49 = vpop.f32.mrb[54].mxu0  ;;  %v4245_v39 = vld [vmem:[#allocation4 + $0x90] sm:$0xff] }
0x2267   :  { %v3929_v35 = vmul.f32 %v4854_v49, %v3364_v48  ;;  %v3905_v5 = vpop.f32.mrb[55].mxu0  ;;  %v4246_v48 = vld [vmem:[#allocation4 + $0x98] sm:$0xff]  ;;  %v4248_v49 = vld [vmem:[#allocation4 + $0xa8] sm:$0xff] }
0x2268   :  { %v3928_v13 = vmul.f32 %v3905_v5, %v3359_v12  ;;  %6228 = vmatpush3.bf16.msra.mxu1 %v6227_v28  ;;  %v6281_v12 = vpack.c.bf16 %v4246_v48, %v4245_v39  ;;  %v4247_v28 = vld [vmem:[#allocation4 + $0xa0] sm:$0xff] }
0x2269   :  { %6229 = vmatprep.subr.bf16.mxu1 %v6643_v0  ;;  %v6284_v5 = vpack.c.bf16 %v4248_v49, %v4247_v28 }
0x226a   :  { %v6230_v62 = vpack.c.bf16 %v3929_v35, %v3928_v13  ;;  %v4857_v51 = vpop.f32.mrb[56].mxu0  ;;  %v4249_v35 = vld [vmem:[#allocation4 + $0xb0] sm:$0xff]  ;;  %v4250_v13 = vld [vmem:[#allocation4 + $0xb8] sm:$0xff] }
0x226b   :  { %v3931_v57 = vmul.f32 %v4857_v51, %v3374_v33  ;;  %v3915_v44 = vpop.f32.mrb[57].mxu0  ;;  %v6287_v33 = vpack.c.bf16 %v4250_v13, %v4249_v35 }
0x226c   :  { %v3930_v2 = vmul.f32 %v3915_v44, %v3369_v50  ;;  %6231 = vmatpush3.bf16.msra.mxu1 %v6230_v62  ;;  %v4251_v50 = vld [vmem:[#allocation4 + $0xc0] sm:$0xff]  ;;  %v4252_v62 = vld [vmem:[#allocation4 + $0xc8] sm:$0xff] }
0x226d   :  { %6232 = vmatprep.subr.bf16.mxu1 %v6643_v0  ;;  %v6290_v51 = vpack.c.bf16 %v4252_v62, %v4251_v50 }
0x226e   :  { %v6233_v10 = vpack.c.bf16 %v3931_v57, %v3930_v2  ;;  %v4071_v54 = vpop.f32.mrb[58].mxu0  ;;  %v4254_v57 = vld [vmem:[#allocation4 + $0xd8] sm:$0xff]  ;;  %v4255_v2 = vld [vmem:[#allocation4 + $0xe0] sm:$0xff] }
0x226f   :  { %v4895_v52 = vpop.f32.mrb[59].mxu0 }
0x2270   :  { %6234 = vmatpush3.bf16.msra.mxu1 %v6233_v10  ;;  %v4256_v10 = vld [vmem:[#allocation4 + $0xe8] sm:$0xff]  ;;  %v4257_v52 = vld [vmem:[#allocation4 + $0xf0] sm:$0xff] }
0x2271   :  { %4896 = vmatprep.subr.mxu1 %v8862_v36  ;;  %v6299_v8 = vpack.c.bf16 %v4258_v59, %v4257_v52 }
0x2273   :  { %4875 = vmatmul.mubr.msk.f32.vlgmr.msra.gmra.mrb[50].mxu1 %vm388_vm1, %v4593_v4  ;;  %v6269_v4 = vpack.c.bf16 %v4238_v15, %v4237_v61  ;;  %vm4493_vm1 = vcmp.lt.s32.totalorder %v8101_v24, 1 }
0x2274   :  { %4897 = vmatpush3.msk.msra.mxu1 %vm3815_vm4, %v8207_v25  ;;  %4898 = vmatprep.mubr.msk.f32.mxu1 %vm6644_vm3, %v8862_v36  ;;  %v4227_v25 = vld [vmem:[#allocation4] sm:$0xff] }
0x2275   :  { %6247 = vmatprep.subr.bf16.mxu1 %v6643_v0  ;;  %v6254_v22 = vpack.c.bf16 %v4228_v41, %v4227_v25 }
0x2277   :  { %4899 = vmatmul.mubr.msk.f32.vlgmr.msra.gmra.mrb[52].mxu1 %vm3729_vm13, %v4071_v54  ;;  %6255 = vmatpush3.bf16.msra.mxu0 %v6254_v22  ;;  %v6296_v54 = vpack.c.bf16 %v4256_v10, %v4255_v2 }
0x2278   :  { %4909 = vmatprep.mubr.msk.f32.mxu1 %vm6644_vm3, %v8862_v36  ;;  %6249 = vmatpush3.bf16.msra.mxu1 %v6248_v46  ;;  %v4260_v46 = vld [vmem:[#allocation4 + $0x108] sm:$0xff] }
0x2279   :  { %6250 = vmatprep.subr.bf16.mxu1 %v6643_v0  ;;  %6256 = vmatprep.subr.bf16.mxu0 %v6643_v0  ;;  %v6302_v32 = vpack.c.bf16 %v4260_v46, %v4259_v9 }
0x227b   :  { %6258 = vmatpush3.bf16.msra.mxu0 %v6257_v17 }
0x227c   :  { %6252 = vmatpush3.bf16.msra.mxu1 %v6251_v6  ;;  %6283 = vmatprep.subr.bf16.mxu0 %v6643_v0  ;;  %v4629_v6 = vld [vmem:[#allocation4 + $0x120] ss:$0 sm:$0xff] }
0x227d   :  { %6259 = vmatprep.subr.bf16.mxu1 %v6643_v0 }
0x2346   :  { %v4001_v40 = vpop.f32.mrb[50].mxu1 }
0x2347   :  { %v4876_v58 = vpop.f32.mrb[51].mxu1 }
0x2348   :  { %v4261_v58 = vld [vmem:[#allocation4 + $0x110] sm:$0xff] }
0x234a   :  { %v4144_v3 = vpop.f32.mrb[52].mxu1 }
0x234b   :  { %6533 = vrcp.f32 %v4144_v3  ;;  %v4900_v37 = vpop.f32.mrb[53].mxu1  ;;  %v4262_v3 = vld [vmem:[#allocation4 + $0x118] sm:$0xff] }
0x234c   :  { %v6305_v37 = vpack.c.bf16 %v4262_v3, %v4261_v58 }
0x2355   :  { %v6534_v11 = vpop.eup %6533 }
0x2356   :  { %v4149_v29 = vmul.f32 %v6534_v11, %v4001_v40  ;;  %v4631_v11 = vld [vmem:[#allocation4 + $0x121] ss:$0 sm:$0xff] }
0x2358   :  { %4910 = vmatmul.mubr.msk.f32.vlgmr.msra.gmra.mrb[54].mxu1 %vm1014_vm2, %v4149_v29 }
0x2359   :  { %4955 = vmatprep.mubr.msk.f32.mxu1 %vm6644_vm3, %v8862_v36  ;;  %6261 = vmatpush3.bf16.msra.mxu1 %v6260_v47 }
0x235a   :  { %6262 = vmatprep.subr.bf16.mxu1 %v6643_v0 }
0x235d   :  { %6264 = vmatpush3.bf16.msra.mxu1 %v6263_v27 }
0x235e   :  { %6265 = vmatprep.subr.bf16.mxu1 %v6643_v0 }
0x2361   :  { %6267 = vmatpush3.bf16.msra.mxu1 %v6266_v55 }
0x2362   :  { %6268 = vmatprep.subr.bf16.mxu1 %v6643_v0 }
0x2365   :  { %6270 = vmatpush3.bf16.msra.mxu1 %v6269_v4 }
0x2366   :  { %6271 = vmatprep.subr.bf16.mxu1 %v6643_v0 }
0x2369   :  { %6273 = vmatpush3.bf16.msra.mxu1 %v6272_v56 }
0x236a   :  { %6274 = vmatprep.subr.bf16.mxu1 %v6643_v0 }
0x236d   :  { %6276 = vmatpush3.bf16.msra.mxu1 %v6275_v1 }
0x236e   :  { %6277 = vmatprep.subr.bf16.mxu1 %v6643_v0 }
0x2371   :  { %6279 = vmatpush3.bf16.msra.mxu1 %v6278_v63 }
0x2372   :  { %6280 = vmatprep.subr.bf16.mxu1 %v6643_v0 }
0x2375   :  { %6282 = vmatpush3.bf16.msra.mxu1 %v6281_v12 }
0x242b   :  { %v4223_v30 = vpop.f32.mrb[54].mxu1 }
0x242c   :  { %v4224_v23 = vadd.f32 %v4627_v16, %v4223_v30  ;;  %v4911_v7 = vpop.f32.mrb[55].mxu1 }
0x242e   :  { %4921 = vmatmul.mubr.msk.f32.vlgmr.msra.gmra.mrb[60].mxu0 %vm1014_vm2, %v4224_v23 }
0x242f   :  { %4990 = vmatprep.mubr.msk.f32.mxu0 %vm6644_vm3, %v8862_v36  ;;  %6285 = vmatpush3.bf16.msra.mxu0 %v6284_v5  ;;  %v4253_v36 = vld [vmem:[#allocation4 + $0xd0] sm:$0xff] }
0x2430   :  { %6286 = vmatprep.subr.bf16.mxu0 %v6643_v0  ;;  %v6293_v44 = vpack.c.bf16 %v4254_v57, %v4253_v36 }
0x2433   :  { %6288 = vmatpush3.bf16.msra.mxu0 %v6287_v33 }
0x2434   :  { %6289 = vmatprep.subr.bf16.mxu0 %v6643_v0 }
0x2437   :  { %6291 = vmatpush3.bf16.msra.mxu0 %v6290_v51 }
0x2438   :  { %6292 = vmatprep.subr.bf16.mxu0 %v6643_v0 }
0x243b   :  { %6294 = vmatpush3.bf16.msra.mxu0 %v6293_v44 }
0x243c   :  { %6295 = vmatprep.subr.bf16.mxu0 %v6643_v0 }
0x243f   :  { %6297 = vmatpush3.bf16.msra.mxu0 %v6296_v54 }
0x2440   :  { %6298 = vmatprep.subr.bf16.mxu0 %v6643_v0 }
0x2443   :  { %6300 = vmatpush3.bf16.msra.mxu0 %v6299_v8 }
0x2444   :  { %6301 = vmatprep.subr.bf16.mxu0 %v6643_v0 }
0x2447   :  { %6303 = vmatpush3.bf16.msra.mxu0 %v6302_v32 }
0x2448   :  { %6304 = vmatprep.subr.bf16.mxu0 %v6643_v0 }
0x244b   :  { %6306 = vmatpush3.bf16.msra.mxu0 %v6305_v37 }
0x2501   :  { %v4339_v25 = vpop.f32.mrb[60].mxu0 }
0x2502   :  { %v4340_v41 = vadd.f32 %v4629_v6, %v4339_v25  ;;  %v4922_v22 = vpop.f32.mrb[61].mxu0 }
0x2504   :  { %v4343_v40 = vmax.f32 %v4340_v41, 0.0 }
0x2506   :  { %4956 = vmatmul.mubr.f32.vlgmr.msra.gmra.mrb[56].mxu1 %v4343_v40 }
0x25d9   :  { %v4414_v29 = vpop.f32.mrb[56].mxu1 }
0x25da   :  { %v4415_v43 = vadd.f32 %v4631_v11, %v4414_v29  ;;  %v4957_v21 = vpop.f32.mrb[57].mxu1 }
0x25dc   :  { %v4418_v17 = vmax.f32 %v4415_v43, 0.0 }
0x25de   :  { %4991 = vmatmul.mubr.f32.vlgmr.msra.gmra.mrb[62].mxu0 %v4418_v17 }
0x26b1   :  { %v4489_v42 = vpop.f32.mrb[62].mxu0 }
0x26b2   :  { %v4490_v45 = vadd.f32 %v4632_v18, %v4489_v42  ;;  %v4992_v0 = vpop.f32.mrb[63].mxu0 }
0x26b4   :  { %v4633_v47 = vmul.f32 -1.442695, %v4490_v45  ;;  %v4494_v31 = vmax.f32 %v4490_v45, 0.0 }
0x26b6   :  { %6535 = vpow2.f32 %v4633_v47 }
0x26c0   :  { %v6536_v53 = vpop.eup %6535 }
0x26c1   :  { %v4498_v27 = vadd.f32 1.0, %v6536_v53 }
0x26c3   :  { %6537 = vrcp.f32 %v4498_v27 }
0x26cd   :  { %v6538_v38 = vpop.eup %6537 }
0x26ce   :  { %v4501_v55 = vsel %vm4493_vm1, %v4494_v31, %v6538_v38 }
0x26cf   :  { %4502 = vst [vmem:[#allocation9] sm:$0xff] %v4501_v55 }
0x26d0   :  { %6616 = shalt.err (!%p6613_p0)
}
0x26d1   :  { %s6617_s0 = scalar_lea.hbm %s8300_s4, 128 }
0x26d2   :  { %p6618_p1 = scmp.ne.s32.totalorder %s8300_s4, %s6617_s0  ;;  %p6621_p2 = scmp.lt.u32.totalorder %s6617_s0, %s8300_s4 }
0x26d4   :  { %p6623_p3 = pnand %p6621_p2, %p6618_p1 }
0x26d6   :  { %6626 = shalt.err (!%p6623_p3)
}
0x26d7   :  { %4512 = dma.vmem_to_hbm [thread:$0]  %s4510_s30, 128, %s8300_s4, [#allocation8]  }
0x26d8   :  { %6633 = dma.done.wait [#allocation8], 128  }
0x26d9   :  { %6634 = vsyncadd [#allocation8], 4294967168 }
0x26da   :  { %4516 = vsyncpa [#allocation7], 1 }
0x26db   :  { %4517 = vsyncpa [#allocation8], 1 }
0x26dc   :  { %4518 = vsyncmov [#allocation5] }
0x26df   :  { %s4519_s25 = vpop.sfrf %4518 }
0x26e0   :  { %p4634_p4 = scmp.ne.s32.totalorder %s4519_s25, 0 }
0x26e2   :  { %4523 = shalt.err (%p4634_p4)  }
0x26e3   :  { %4525 = vsyncmov [#allocation5 + $0x1] }
0x26e6   :  { %s4526_s26 = vpop.sfrf %4525 }
0x26e7   :  { %p4635_p5 = scmp.ne.s32.totalorder %s4526_s26, 0 }
0x26e9   :  { %4530 = shalt.err (%p4635_p5)  }

</bundles_post_ra>
